<compile_context>
chip_gen: v5e
topology: v5e:2x2
jax: 0.10.0
libtpu: 0.0.40
codegen_flags: <defaults>
</compile_context>

<pallas_src>
import jax
import jax.numpy as jnp
from jax.experimental import pallas as pl
from jax.experimental.pallas import tpu as pltpu


# ----------------------------------------------------------------------------
# In-kernel helpers
# ----------------------------------------------------------------------------
def _gelu_tanh(x):
    # 0.5*x*(1 + tanh(sqrt(2/pi)*(x + 0.044715*x^3))) with constants folded:
    #   inner = x * (c0 + c1 * x*x);  tanh lands on the EUP slot (free-ish).
    c0 = 0.7978845608028654            # sqrt(2/pi)
    c1 = c0 * 0.044715
    x2 = x * x
    return 0.5 * x * (1.0 + jnp.tanh(x * (c0 + c1 * x2)))


# ----------------------------------------------------------------------------
# Fused 3-layer MLP kernel (rows tiled over the grid, weights resident).
# Weights arrive already cast to the matmul dtype (hoisted to the wrapper);
# only the activations are cast per layer.  Biases stay f32 and are added to
# the f32 MXU accumulation.
# ----------------------------------------------------------------------------
def _mlp3_kernel(x_ref, w1_ref, b1_ref, w2_ref, b2_ref, w3_ref, b3_ref, o_ref):
    def mm(a, w_ref):
        return jnp.dot(a.astype(w_ref.dtype), w_ref[...],
                       preferred_element_type=jnp.float32)

    x = x_ref[...]
    h = _gelu_tanh(mm(x, w1_ref) + b1_ref[...])
    h = _gelu_tanh(mm(h, w2_ref) + b2_ref[...])
    o_ref[...] = (mm(h, w3_ref) + b3_ref[...]).astype(o_ref.dtype)


def _round_up(v, m):
    return ((v + m - 1) // m) * m


def proj_head_linear(x, params, *, tile_rows=256, matmul_dtype=jnp.bfloat16):
    """ProjHeadLinear forward.  x: (N, in_dim) f32 -> (N, bottleneck_dim) f32.

    params = (w1, b1, w2, b2, w3, b3) with weights stored (in, out) and biases
    stored (1, out).  matmul_dtype: MXU operand dtype (None keeps input dtype).
    """
    w1, b1, w2, b2, w3, b3 = params
    n, cin = x.shape
    hid = w1.shape[1]
    cout = w3.shape[1]

    # Hoist the weight cast out of the kernel: cast ONCE here, so DMA moves
    # bf16 bytes and the kernel does no per-step weight casts.
    if matmul_dtype is not None:
        w1 = w1.astype(matmul_dtype)
        w2 = w2.astype(matmul_dtype)
        w3 = w3.astype(matmul_dtype)

    n8 = _round_up(n, 8)
    tile_rows = min(tile_rows, n8)
    # Small-N fast path: one grid step (no masked partial block, no extra
    # per-step overhead).  For large N, tile_rows stays as requested (raise to
    # 512-1024 on v5e/v6e; re-derive against the 64 MiB VMEM budget on v7x).
    if n8 <= 512:
        tile_rows = n8
    grid = (pl.cdiv(n, tile_rows),)

    itemsize = x.dtype.itemsize
    w_bytes = (w1.size * w1.dtype.itemsize + w2.size * w2.dtype.itemsize
               + w3.size * w3.dtype.itemsize
               + (b1.size + b2.size + b3.size) * 4)
    io_bytes = 2 * tile_rows * (cin + cout) * itemsize          # dbl-buffered x/out tiles
    act_bytes = 2 * tile_rows * hid * 4                          # f32 GELU intermediates
    needed = w_bytes + io_bytes + act_bytes
    vmem_limit = int(max(32 * 1024 * 1024, needed + (8 << 20)))

    cost = pl.CostEstimate(
        flops=2 * n * (cin * hid + hid * hid + hid * cout),
        transcendentals=2 * n * hid,                             # two tanh stages
        bytes_accessed=(x.size * itemsize + w_bytes + n * cout * itemsize),
    )

    # Grid-invariant operands: single-buffered (constant index_map => the
    # second pipeline buffer would never be used).
    const_buf = pl.Buffered(1)

    return pl.pallas_call(
        _mlp3_kernel,
        out_shape=jax.ShapeDtypeStruct((n, cout), x.dtype),
        grid=grid,
        in_specs=[
            pl.BlockSpec((tile_rows, cin), lambda i: (i, 0)),
            pl.BlockSpec((cin, hid), lambda i: (0, 0), pipeline_mode=const_buf),
            pl.BlockSpec((1, hid), lambda i: (0, 0), pipeline_mode=const_buf),
            pl.BlockSpec((hid, hid), lambda i: (0, 0), pipeline_mode=const_buf),
            pl.BlockSpec((1, hid), lambda i: (0, 0), pipeline_mode=const_buf),
            pl.BlockSpec((hid, cout), lambda i: (0, 0), pipeline_mode=const_buf),
            pl.BlockSpec((1, cout), lambda i: (0, 0), pipeline_mode=const_buf),
        ],
        out_specs=pl.BlockSpec((tile_rows, cout), lambda i: (i, 0)),
        compiler_params=pltpu.CompilerParams(
            dimension_semantics=("parallel",),
            vmem_limit_bytes=vmem_limit),
        cost_estimate=cost,
    )(x, w1, b1, w2, b2, w3, b3)


# ----------------------------------------------------------------------------
# Pure-JAX reference (same tanh-GELU, f32 throughout) for correctness checking
# ----------------------------------------------------------------------------
def proj_head_linear_ref(x, params):
    w1, b1, w2, b2, w3, b3 = params
    h = _gelu_tanh(x @ w1 + b1)
    h = _gelu_tanh(h @ w2 + b2)
    return h @ w3 + b3


# ----------------------------------------------------------------------------
# Deterministic parameter init (trunc_normal std=0.02, zero bias — matches
# ProjHeadLinear._init_weights; weights stored transposed to (in, out)).
# ----------------------------------------------------------------------------
def init_proj_head_params(key, in_dim, hidden_dim, bottleneck_dim):
    k1, k2, k3 = jax.random.split(key, 3)
    tn = lambda k, s: jax.random.truncated_normal(k, -2.0, 2.0, s, jnp.float32) * 0.02
    return (tn(k1, (in_dim, hidden_dim)), jnp.zeros((1, hidden_dim), jnp.float32),
            tn(k2, (hidden_dim, hidden_dim)), jnp.zeros((1, hidden_dim), jnp.float32),
            tn(k3, (hidden_dim, bottleneck_dim)), jnp.zeros((1, bottleneck_dim), jnp.float32))


if __name__ == "__main__":
    key = jax.random.PRNGKey(0)
    kx, kp = jax.random.split(key, 2)

    # Small shapes consistent with the module: N = 392 rows (2 crops of a
    # flattened 14x14 feature map), in_dim=64, hidden=256, bottleneck=128
    # (lane-dense multiples of 128 for unmasked stores).  The small-N fast
    # path gives a single grid step covering all 392 rows.
    N, IN_DIM, HIDDEN, BOTTLENECK = 392, 64, 256, 128

    x = jax.random.normal(kx, (N, IN_DIM), jnp.float32)
    params = init_proj_head_params(kp, IN_DIM, HIDDEN, BOTTLENECK)

    fwd = jax.jit(proj_head_linear)            # default: bf16 MXU operands
    out = fwd(x, params)
    jax.block_until_ready(out)

    ref = proj_head_linear_ref(x, params)
    assert out.shape == (N, BOTTLENECK)
    assert bool(jnp.all(jnp.isfinite(out)))
    # bf16 matmul operands (f32 accumulation) => looser tolerance vs f32 ref.
    assert bool(jnp.allclose(out, ref, atol=2e-3, rtol=5e-2)), (
        float(jnp.max(jnp.abs(out - ref))))
    print("KERNEL_OK")
</pallas_src>

<mosaic_0001>
module attributes {stable_mosaic.version = 11 : i64} {
  func.func @_mlp3_kernel(%arg0: i32, %arg1: memref<392x64xf32, #tpu.memory_space<vmem>>, %arg2: memref<64x256xbf16, #tpu.memory_space<vmem>>, %arg3: memref<1x256xf32, #tpu.memory_space<vmem>>, %arg4: memref<256x256xbf16, #tpu.memory_space<vmem>>, %arg5: memref<1x256xf32, #tpu.memory_space<vmem>>, %arg6: memref<256x128xbf16, #tpu.memory_space<vmem>>, %arg7: memref<1x128xf32, #tpu.memory_space<vmem>>, %arg8: memref<392x128xf32, #tpu.memory_space<vmem>>) attributes {dimension_semantics = [#tpu.dimension_semantics<parallel>], iteration_bounds = array<i64: 1>, scalar_prefetch = 0 : i64, scratch_operands = 0 : i64, tpu.core_type = #tpu.core_type<tc>, window_params = [{transform_indices = @transform_0, window_bounds = array<i64: 392, 64>}, {pipeline_mode = #tpu.pipeline_mode<synchronous>, transform_indices = @transform_1, window_bounds = array<i64: 64, 256>}, {pipeline_mode = #tpu.pipeline_mode<synchronous>, transform_indices = @transform_2, window_bounds = array<i64: 1, 256>}, {pipeline_mode = #tpu.pipeline_mode<synchronous>, transform_indices = @transform_3, window_bounds = array<i64: 256, 256>}, {pipeline_mode = #tpu.pipeline_mode<synchronous>, transform_indices = @transform_4, window_bounds = array<i64: 1, 256>}, {pipeline_mode = #tpu.pipeline_mode<synchronous>, transform_indices = @transform_5, window_bounds = array<i64: 256, 128>}, {pipeline_mode = #tpu.pipeline_mode<synchronous>, transform_indices = @transform_6, window_bounds = array<i64: 1, 128>}, {transform_indices = @transform_7, window_bounds = array<i64: 392, 128>}]} {
    %c0 = arith.constant 0 : index
    %c0_0 = arith.constant 0 : index
    %0 = vector.load %arg1[%c0, %c0_0] : memref<392x64xf32, #tpu.memory_space<vmem>>, vector<392x64xf32>
    %1 = arith.truncf %0 : vector<392x64xf32> to vector<392x64xbf16>
    %c0_1 = arith.constant 0 : index
    %c0_2 = arith.constant 0 : index
    %2 = vector.load %arg2[%c0_1, %c0_2] : memref<64x256xbf16, #tpu.memory_space<vmem>>, vector<64x256xbf16>
    %cst = arith.constant dense<0.000000e+00> : vector<392x256xf32>
    %3 = tpu.matmul %1, %2, %cst {dimension_numbers = #tpu.dot_dimension_numbers<[1], [0], [0], [1], [0, 0, 1, 1], [], []>} : vector<392x64xbf16>, vector<64x256xbf16>, vector<392x256xf32> -> vector<392x256xf32>
    %c0_3 = arith.constant 0 : index
    %c0_4 = arith.constant 0 : index
    %4 = vector.load %arg3[%c0_3, %c0_4] : memref<1x256xf32, #tpu.memory_space<vmem>>, vector<1x256xf32>
    %5 = vector.broadcast %4 : vector<1x256xf32> to vector<392x256xf32>
    %6 = arith.addf %3, %5 : vector<392x256xf32>
    %7 = arith.mulf %6, %6 : vector<392x256xf32>
    %cst_5 = arith.constant 5.000000e-01 : f32
    %8 = vector.broadcast %cst_5 : f32 to vector<392x256xf32>
    %9 = arith.mulf %8, %6 : vector<392x256xf32>
    %cst_6 = arith.constant 0.0356774069 : f32
    %10 = vector.broadcast %cst_6 : f32 to vector<392x256xf32>
    %11 = arith.mulf %10, %7 : vector<392x256xf32>
    %cst_7 = arith.constant 0.797884583 : f32
    %12 = vector.broadcast %cst_7 : f32 to vector<392x256xf32>
    %13 = arith.addf %12, %11 : vector<392x256xf32>
    %14 = arith.mulf %6, %13 : vector<392x256xf32>
    %15 = math.tanh %14 : vector<392x256xf32>
    %cst_8 = arith.constant 1.000000e+00 : f32
    %16 = vector.broadcast %cst_8 : f32 to vector<392x256xf32>
    %17 = arith.addf %16, %15 : vector<392x256xf32>
    %18 = arith.mulf %9, %17 : vector<392x256xf32>
    %19 = arith.truncf %18 : vector<392x256xf32> to vector<392x256xbf16>
    %c0_9 = arith.constant 0 : index
    %c0_10 = arith.constant 0 : index
    %20 = vector.load %arg4[%c0_9, %c0_10] : memref<256x256xbf16, #tpu.memory_space<vmem>>, vector<256x256xbf16>
    %cst_11 = arith.constant dense<0.000000e+00> : vector<392x256xf32>
    %21 = tpu.matmul %19, %20, %cst_11 {dimension_numbers = #tpu.dot_dimension_numbers<[1], [0], [0], [1], [0, 0, 1, 1], [], []>} : vector<392x256xbf16>, vector<256x256xbf16>, vector<392x256xf32> -> vector<392x256xf32>
    %c0_12 = arith.constant 0 : index
    %c0_13 = arith.constant 0 : index
    %22 = vector.load %arg5[%c0_12, %c0_13] : memref<1x256xf32, #tpu.memory_space<vmem>>, vector<1x256xf32>
    %23 = vector.broadcast %22 : vector<1x256xf32> to vector<392x256xf32>
    %24 = arith.addf %21, %23 : vector<392x256xf32>
    %25 = arith.mulf %24, %24 : vector<392x256xf32>
    %cst_14 = arith.constant 5.000000e-01 : f32
    %26 = vector.broadcast %cst_14 : f32 to vector<392x256xf32>
    %27 = arith.mulf %26, %24 : vector<392x256xf32>
    %cst_15 = arith.constant 0.0356774069 : f32
    %28 = vector.broadcast %cst_15 : f32 to vector<392x256xf32>
    %29 = arith.mulf %28, %25 : vector<392x256xf32>
    %cst_16 = arith.constant 0.797884583 : f32
    %30 = vector.broadcast %cst_16 : f32 to vector<392x256xf32>
    %31 = arith.addf %30, %29 : vector<392x256xf32>
    %32 = arith.mulf %24, %31 : vector<392x256xf32>
    %33 = math.tanh %32 : vector<392x256xf32>
    %cst_17 = arith.constant 1.000000e+00 : f32
    %34 = vector.broadcast %cst_17 : f32 to vector<392x256xf32>
    %35 = arith.addf %34, %33 : vector<392x256xf32>
    %36 = arith.mulf %27, %35 : vector<392x256xf32>
    %37 = arith.truncf %36 : vector<392x256xf32> to vector<392x256xbf16>
    %c0_18 = arith.constant 0 : index
    %c0_19 = arith.constant 0 : index
    %38 = vector.load %arg6[%c0_18, %c0_19] : memref<256x128xbf16, #tpu.memory_space<vmem>>, vector<256x128xbf16>
    %cst_20 = arith.constant dense<0.000000e+00> : vector<392x128xf32>
    %39 = tpu.matmul %37, %38, %cst_20 {dimension_numbers = #tpu.dot_dimension_numbers<[1], [0], [0], [1], [0, 0, 1, 1], [], []>} : vector<392x256xbf16>, vector<256x128xbf16>, vector<392x128xf32> -> vector<392x128xf32>
    %c0_21 = arith.constant 0 : index
    %c0_22 = arith.constant 0 : index
    %40 = vector.load %arg7[%c0_21, %c0_22] : memref<1x128xf32, #tpu.memory_space<vmem>>, vector<1x128xf32>
    %41 = vector.broadcast %40 : vector<1x128xf32> to vector<392x128xf32>
    %42 = arith.addf %39, %41 : vector<392x128xf32>
    %c0_23 = arith.constant 0 : index
    %c0_24 = arith.constant 0 : index
    %43 = vector.load %arg8[%c0_23, %c0_24] : memref<392x128xf32, #tpu.memory_space<vmem>>, vector<392x128xf32>
    tpu.vector_store %arg8[%c0_23, %c0_24], %42 {strides = array<i32>} : memref<392x128xf32, #tpu.memory_space<vmem>>, vector<392x128xf32>,
    return
  }
  func.func @transform_0(%arg0: i32) -> (i32, i32) {
    %c0_i32 = arith.constant 0 : i32
    %c0_i32_0 = arith.constant 0 : i32
    return %arg0, %c0_i32 : i32, i32
  }
  func.func @transform_1(%arg0: i32) -> (i32, i32) {
    %c0_i32 = arith.constant 0 : i32
    %c0_i32_0 = arith.constant 0 : i32
    %c0_i32_1 = arith.constant 0 : i32
    return %c0_i32, %c0_i32_0 : i32, i32
  }
  func.func @transform_2(%arg0: i32) -> (i32, i32) {
    %c0_i32 = arith.constant 0 : i32
    %c0_i32_0 = arith.constant 0 : i32
    %c0_i32_1 = arith.constant 0 : i32
    return %c0_i32, %c0_i32_0 : i32, i32
  }
  func.func @transform_3(%arg0: i32) -> (i32, i32) {
    %c0_i32 = arith.constant 0 : i32
    %c0_i32_0 = arith.constant 0 : i32
    %c0_i32_1 = arith.constant 0 : i32
    return %c0_i32, %c0_i32_0 : i32, i32
  }
  func.func @transform_4(%arg0: i32) -> (i32, i32) {
    %c0_i32 = arith.constant 0 : i32
    %c0_i32_0 = arith.constant 0 : i32
    %c0_i32_1 = arith.constant 0 : i32
    return %c0_i32, %c0_i32_0 : i32, i32
  }
  func.func @transform_5(%arg0: i32) -> (i32, i32) {
    %c0_i32 = arith.constant 0 : i32
    %c0_i32_0 = arith.constant 0 : i32
    %c0_i32_1 = arith.constant 0 : i32
    return %c0_i32, %c0_i32_0 : i32, i32
  }
  func.func @transform_6(%arg0: i32) -> (i32, i32) {
    %c0_i32 = arith.constant 0 : i32
    %c0_i32_0 = arith.constant 0 : i32
    %c0_i32_1 = arith.constant 0 : i32
    return %c0_i32, %c0_i32_0 : i32, i32
  }
  func.func @transform_7(%arg0: i32) -> (i32, i32) {
    %c0_i32 = arith.constant 0 : i32
    %c0_i32_0 = arith.constant 0 : i32
    return %arg0, %c0_i32 : i32, i32
  }
}

</mosaic_0001>

<bundles_post_ra>
// kernel: proj_head_linear.1
= control target key start
LH: loop header
LB: loop body
LE: loop exit
PB: predicated region body
PF: predicated region fallthrough
CT: control target
= control target key end

     0   :  { %s6273_s0 = inlined_call_operand.vmem [shape: f32[392,64], index: 0, kind: input, shape index: {}]   ;;  %s6274_s1 = inlined_call_operand.vmem [shape: bf16[64,256], index: 1, kind: input, shape index: {}]   ;;  %s6275_s2 = inlined_call_operand.vmem [shape: f32[1,256], index: 2, kind: input, shape index: {}]   ;;  %s6276_s3 = inlined_call_operand.vmem [shape: bf16[256,256], index: 3, kind: input, shape index: {}]   ;;  %s6277_s4 = inlined_call_operand.vmem [shape: f32[1,256], index: 4, kind: input, shape index: {}]   ;;  %s6278_s5 = inlined_call_operand.vmem [shape: bf16[256,128], index: 5, kind: input, shape index: {}]   ;;  %s6279_s6 = inlined_call_operand.vmem [shape: f32[1,128], index: 6, kind: input, shape index: {}]   ;;  %s6280_s7 = inlined_call_operand.hbm [shape: f32[392,128], index: 7, kind: output, shape index: {}]  }
   0x1   :  { %v3387_v0 = vld [vmem:[%s6274_s1 + $0x30] sm:$0xf]  ;;  %v3642_v1 = vld [vmem:[%s6274_s1 + $0x34] sm:$0xf0]  ;;  %v3641_v2 = vld [vmem:[%s6274_s1 + $0x34] sm:$0xf] }
   0x2   :  { %v3388_v3 = vor.u32 %v3642_v1, %v3387_v0  ;;  %v3389_v4 = vld [vmem:[%s6274_s1 + $0x38] sm:$0xf0]  ;;  %v3379_v5 = vld [vmem:[%s6274_s1 + $0x20] sm:$0xf]  ;;  %v3640_v6 = vld [vmem:[%s6274_s1 + $0x24] sm:$0xf0] }
   0x3   :  { %v3392_v7 = vor.u32 %v3641_v2, %v3389_v4  ;;  %v3639_v8 = vld [vmem:[%s6274_s1 + $0x24] sm:$0xf]  ;;  %v3381_v9 = vld [vmem:[%s6274_s1 + $0x28] sm:$0xf0]  ;;  %v3380_v10 = vor.u32 %v3640_v6, %v3379_v5  ;;  %v3371_v12 = vld [vmem:[%s6274_s1 + $0x10] sm:$0xf] }
   0x4   :  { %236 = vmatpush.bf16.msra.mxu0 %v3388_v3  ;;  %v3384_v11 = vor.u32 %v3639_v8, %v3381_v9  ;;  %v3638_v13 = vld [vmem:[%s6274_s1 + $0x14] sm:$0xf0]  ;;  %v3637_v14 = vld [vmem:[%s6274_s1 + $0x14] sm:$0xf]  ;;  %v3373_v15 = vld [vmem:[%s6274_s1 + $0x18] sm:$0xf0] }
   0x5   :  { %369 = vmatpush.bf16.msra.mxu1 %v3392_v7  ;;  %v3372_v16 = vor.u32 %v3638_v13, %v3371_v12  ;;  %v3363_v17 = vld [vmem:[%s6274_s1] sm:$0xf]  ;;  %v3636_v18 = vld [vmem:[%s6274_s1 + $0x4] sm:$0xf0]  ;;  %v3376_v19 = vor.u32 %v3637_v14, %v3373_v15  ;;  %v3635_v20 = vld [vmem:[%s6274_s1 + $0x4] sm:$0xf] }
   0x6   :  { %v3365_v21 = vld [vmem:[%s6274_s1 + $0x8] sm:$0xf0]  ;;  %v3657_v22 = vld [vmem:[%s6276_s3 + $0x74] sm:$0xf]  ;;  %v3503_v23 = vld [vmem:[%s6276_s3 + $0x78] sm:$0xf0] }
   0x8   :  { %237 = vmatpush.bf16.msra.mxu0 %v3380_v10 }
   0x9   :  { %370 = vmatpush.bf16.msra.mxu1 %v3384_v11 }
   0xa   :  { %12 = vsyncpa [#allocation3], 0  ;;  %v3673_v24 = vld [vmem:[%s6276_s3 + $0xf4] sm:$0xf]  ;;  %v3567_v25 = vld [vmem:[%s6276_s3 + $0xf8] sm:$0xf0]  ;;  %v3364_v26 = vor.u32 %v3636_v18, %v3363_v17  ;;  %v3368_v29 = vor.u32 %v3635_v20, %v3365_v21  ;;  %v3506_v30 = vor.u32 %v3657_v22, %v3503_v23 }
   0xb   :  { %v28_v27 = vld [vmem:[%s6273_s0] sm:$0xff]  ;;  %v29_v28 = vld [vmem:[%s6273_s0 + $0x8] sm:$0xff]  ;;  %v3570_v31 = vor.u32 %v3673_v24, %v3567_v25  ;;  %vm156_vm0 = vcmask 523264   ;;  %v30_v33 = vld [vmem:[%s6273_s0 + $0x10] sm:$0xff]  ;;  %s3349_s29 = sshll.u32 %s6280_s7, 4  ;;  %s4116_s30 = smov 128   ;;  %s3350_s29 = int_to_ptr.hbm [resolvable:$true] %s3349_s29 }
   0xc   :  { %238 = vmatpush.bf16.msra.mxu0 %v3372_v16  ;;  %v77_v32 = vpack.c.bf16 %v29_v28, %v28_v27  ;;  %v31_v34 = vld [vmem:[%s6273_s0 + $0x18] sm:$0xff]  ;;  %v3655_v36 = vld [vmem:[%s6276_s3 + $0x64] sm:$0xf]  ;;  %v3495_v37 = vld [vmem:[%s6276_s3 + $0x68] sm:$0xf0]  ;;  %s4117_s8 = smov 8  }
   0xd   :  { %371 = vmatpush.bf16.msra.mxu1 %v3376_v19  ;;  %v78_v35 = vpack.c.bf16 %v31_v34, %v30_v33  ;;  %v3671_v38 = vld [vmem:[%s6276_s3 + $0xe4] sm:$0xf]  ;;  %v3498_v39 = vor.u32 %v3655_v36, %v3495_v37  ;;  %v3559_v40 = vld [vmem:[%s6276_s3 + $0xe8] sm:$0xf0]  ;;  %v34_v45 = vld [vmem:[%s6273_s0 + $0x30] sm:$0xff] }
   0xe   :  { %v3562_v41 = vor.u32 %v3671_v38, %v3559_v40  ;;  %v32_v42 = vld [vmem:[%s6273_s0 + $0x20] sm:$0xff]  ;;  %v33_v43 = vld [vmem:[%s6273_s0 + $0x28] sm:$0xff]  ;;  %v35_v46 = vld [vmem:[%s6273_s0 + $0x38] sm:$0xff] }
   0xf   :  { %v79_v44 = vpack.c.bf16 %v33_v43, %v32_v42  ;;  %v80_v47 = vpack.c.bf16 %v35_v46, %v34_v45  ;;  %v36_v48 = vld [vmem:[%s6273_s0 + $0x40] sm:$0xff]  ;;  %v37_v49 = vld [vmem:[%s6273_s0 + $0x48] sm:$0xff]  ;;  %v3653_v51 = vld [vmem:[%s6276_s3 + $0x54] sm:$0xf] }
  0x10   :  { %239 = vmatpush.bf16.msra.mxu0 %v3364_v26  ;;  %v81_v50 = vpack.c.bf16 %v37_v49, %v36_v48  ;;  %v3487_v52 = vld [vmem:[%s6276_s3 + $0x58] sm:$0xf0]  ;;  %v3669_v53 = vld [vmem:[%s6276_s3 + $0xd4] sm:$0xf]  ;;  %v40_v60 = vld [vmem:[%s6273_s0 + $0x60] sm:$0xff] }
  0x11   :  { %372 = vmatpush.bf16.msra.mxu1 %v3368_v29  ;;  %v3490_v54 = vor.u32 %v3653_v51, %v3487_v52  ;;  %v3551_v55 = vld [vmem:[%s6276_s3 + $0xd8] sm:$0xf0]  ;;  %v38_v57 = vld [vmem:[%s6273_s0 + $0x50] sm:$0xff]  ;;  %v41_v61 = vld [vmem:[%s6273_s0 + $0x68] sm:$0xff] }
  0x12   :  { %v3554_v56 = vor.u32 %v3669_v53, %v3551_v55  ;;  %v39_v58 = vld [vmem:[%s6273_s0 + $0x58] sm:$0xff]  ;;  %v83_v62 = vpack.c.bf16 %v41_v61, %v40_v60  ;;  %v3501_v63 = vld [vmem:[%s6276_s3 + $0x70] sm:$0xf]  ;;  %v3493_v5 = vld [vmem:[%s6276_s3 + $0x60] sm:$0xf] }
  0x13   :  { %3393 = vmatmul.msk.bf16.vlgmr.msra.gmra.mxu0 %vm156_vm0, %v77_v32  ;;  %v82_v59 = vpack.c.bf16 %v39_v58, %v38_v57  ;;  %v3658_v0 = vld [vmem:[%s6276_s3 + $0x74] sm:$0xf0]  ;;  %v3565_v1 = vld [vmem:[%s6276_s3 + $0xf0] sm:$0xf]  ;;  %v3656_v6 = vld [vmem:[%s6276_s3 + $0x64] sm:$0xf0] }
  0x14   :  { %1796 = vmatpush.bf16.msrb.mxu0 %v3506_v30  ;;  %3418 = vmatmul.msk.bf16.vlgmr.msra.gmra.mxu1 %vm156_vm0, %v77_v32  ;;  %v3502_v2 = vor.u32 %v3658_v0, %v3501_v63  ;;  %v3674_v3 = vld [vmem:[%s6276_s3 + $0xf4] sm:$0xf0]  ;;  %v3557_v7 = vld [vmem:[%s6276_s3 + $0xe0] sm:$0xf]  ;;  %v3494_v8 = vor.u32 %v3656_v6, %v3493_v5  ;;  %v3672_v9 = vld [vmem:[%s6276_s3 + $0xe4] sm:$0xf0] }
  0x15   :  { %1929 = vmatpush.bf16.msrb.mxu1 %v3570_v31  ;;  %v3566_v4 = vor.u32 %v3674_v3, %v3565_v1  ;;  %v3558_v10 = vor.u32 %v3672_v9, %v3557_v7  ;;  %v3485_v11 = vld [vmem:[%s6276_s3 + $0x50] sm:$0xf]  ;;  %v3654_v12 = vld [vmem:[%s6276_s3 + $0x54] sm:$0xf0]  ;;  %v3477_v17 = vld [vmem:[%s6276_s3 + $0x40] sm:$0xf] }
  0x16   :  { %1530 = vmatpush.bf16.msra.mxu2 %v3502_v2  ;;  %v3549_v13 = vld [vmem:[%s6276_s3 + $0xd0] sm:$0xf]  ;;  %v3486_v14 = vor.u32 %v3654_v12, %v3485_v11  ;;  %v3670_v15 = vld [vmem:[%s6276_s3 + $0xd4] sm:$0xf0]  ;;  %v3652_v18 = vld [vmem:[%s6276_s3 + $0x44] sm:$0xf0] }
  0x17   :  { %1663 = vmatpush.bf16.msra.mxu3 %v3566_v4  ;;  %v3550_v16 = vor.u32 %v3670_v15, %v3549_v13  ;;  %v3541_v19 = vld [vmem:[%s6276_s3 + $0xc0] sm:$0xf]  ;;  %v42_v20 = vld [vmem:[%s6273_s0 + $0x70] sm:$0xff]  ;;  %v43_v21 = vld [vmem:[%s6273_s0 + $0x78] sm:$0xff]  ;;  %v3478_v22 = vor.u32 %v3652_v18, %v3477_v17 }
  0x18   :  { %1797 = vmatpush.bf16.msrb.mxu0 %v3498_v39  ;;  %v3668_v23 = vld [vmem:[%s6276_s3 + $0xc4] sm:$0xf0]  ;;  %v84_v25 = vpack.c.bf16 %v43_v21, %v42_v20  ;;  %v3469_v26 = vld [vmem:[%s6276_s3 + $0x30] sm:$0xf]  ;;  %v3650_v27 = vld [vmem:[%s6276_s3 + $0x34] sm:$0xf0] }
  0x19   :  { %1930 = vmatpush.bf16.msrb.mxu1 %v3562_v41  ;;  %v3542_v24 = vor.u32 %v3668_v23, %v3541_v19  ;;  %v3533_v28 = vld [vmem:[%s6276_s3 + $0xb0] sm:$0xf]  ;;  %v3470_v29 = vor.u32 %v3650_v27, %v3469_v26  ;;  %v3666_v30 = vld [vmem:[%s6276_s3 + $0xb4] sm:$0xf0]  ;;  %v3461_v32 = vld [vmem:[%s6276_s3 + $0x20] sm:$0xf] }
  0x1a   :  { %1531 = vmatpush.bf16.msra.mxu2 %v3494_v8  ;;  %v3534_v31 = vor.u32 %v3666_v30, %v3533_v28  ;;  %v3648_v33 = vld [vmem:[%s6276_s3 + $0x24] sm:$0xf0]  ;;  %v3525_v34 = vld [vmem:[%s6276_s3 + $0xa0] sm:$0xf]  ;;  %v3453_v38 = vld [vmem:[%s6276_s3 + $0x10] sm:$0xf] }
  0x1b   :  { %1664 = vmatpush.bf16.msra.mxu3 %v3558_v10  ;;  %v3664_v36 = vld [vmem:[%s6276_s3 + $0xa4] sm:$0xf0]  ;;  %v3646_v39 = vld [vmem:[%s6276_s3 + $0x14] sm:$0xf0]  ;;  %v3517_v40 = vld [vmem:[%s6276_s3 + $0x90] sm:$0xf] }
  0x1c   :  { %1798 = vmatpush.bf16.msrb.mxu0 %v3490_v54  ;;  %v3526_v37 = vor.u32 %v3664_v36, %v3525_v34  ;;  %v3454_v41 = vor.u32 %v3646_v39, %v3453_v38  ;;  %v3662_v42 = vld [vmem:[%s6276_s3 + $0x94] sm:$0xf0]  ;;  %v3445_v45 = vld [vmem:[%s6276_s3] sm:$0xf]  ;;  %v3644_v46 = vld [vmem:[%s6276_s3 + $0x4] sm:$0xf0] }
  0x1d   :  { %1931 = vmatpush.bf16.msrb.mxu1 %v3554_v56  ;;  %v3518_v43 = vor.u32 %v3662_v42, %v3517_v40  ;;  %v44_v48 = vld [vmem:[%s6273_s0 + $0x80] sm:$0xff]  ;;  %v45_v49 = vld [vmem:[%s6273_s0 + $0x88] sm:$0xff]  ;;  %v47_v17 = vld [vmem:[%s6273_s0 + $0x98] sm:$0xff] }
  0x1e   :  { %1532 = vmatpush.bf16.msra.mxu2 %v3486_v14  ;;  %v3660_v51 = vld [vmem:[%s6276_s3 + $0x84] sm:$0xf0]  ;;  %v85_v55 = vpack.c.bf16 %v45_v49, %v44_v48  ;;  %v3479_v63 = vld [vmem:[%s6276_s3 + $0x48] sm:$0xf0]  ;;  %v3667_v2 = vld [vmem:[%s6276_s3 + $0xc4] sm:$0xf] }
  0x1f   :  { %1665 = vmatpush.bf16.msra.mxu3 %v3550_v16  ;;  %v3543_v3 = vld [vmem:[%s6276_s3 + $0xc8] sm:$0xf0]  ;;  %v46_v14 = vld [vmem:[%s6273_s0 + $0x90] sm:$0xff]  ;;  %v3682_v18 = vld [vmem:[%s6278_s5 + $0x38] sm:$0xff] }
  0x20   :  { %v3546_v5 = vor.u32 %v3667_v2, %v3543_v3  ;;  %v3690_v19 = vld [vmem:[%s6278_s5 + $0x78] sm:$0xff]  ;;  %v86_v23 = vpack.c.bf16 %v47_v17, %v46_v14 }
  0x22   :  { %1533 = vmatpush.bf16.msra.mxu2 %v3478_v22  ;;  %1932 = vmatpush.bf16.msrb.mxu1 %v3546_v5 }
  0x23   :  { %3394 = vmatmul.msk.bf16.gmra.mxu0 %vm156_vm0, %v78_v35  ;;  %1666 = vmatpush.bf16.msra.mxu3 %v3542_v24 }
  0x24   :  { %3419 = vmatmul.msk.bf16.gmra.mxu1 %vm156_vm0, %v78_v35  ;;  %v3462_v35 = vor.u32 %v3648_v33, %v3461_v32 }
  0x26   :  { %1534 = vmatpush.bf16.msra.mxu2 %v3470_v29 }
  0x27   :  { %1667 = vmatpush.bf16.msra.mxu3 %v3534_v31 }
  0x2a   :  { %1535 = vmatpush.bf16.msra.mxu2 %v3462_v35 }
  0x2b   :  { %1668 = vmatpush.bf16.msra.mxu3 %v3526_v37 }
  0x2e   :  { %1536 = vmatpush.bf16.msra.mxu2 %v3454_v41 }
  0x2f   :  { %1669 = vmatpush.bf16.msra.mxu3 %v3518_v43 }
  0x33   :  { %3395 = vmatmul.msk.bf16.gmra.mxu0 %vm156_vm0, %v79_v44 }
  0x34   :  { %3420 = vmatmul.msk.bf16.gmra.mxu1 %vm156_vm0, %v79_v44  ;;  %v110_v44 = vld [vmem:[%s6275_s2] sm:$0x3] }
  0x35   :  { %v4411_v52 = vperm.slane %v110_v44, 0  ;;  %v4413_v54 = vperm.slane %v110_v44, 1 }
  0x43   :  { %3396 = vmatmul.msk.bf16.gmra.mxu0 %vm156_vm0, %v80_v47 }
  0x44   :  { %3421 = vmatmul.msk.bf16.gmra.mxu1 %vm156_vm0, %v80_v47  ;;  %v3509_v47 = vld [vmem:[%s6276_s3 + $0x80] sm:$0xf] }
  0x45   :  { %v3510_v53 = vor.u32 %v3660_v51, %v3509_v47 }
  0x47   :  { %1670 = vmatpush.bf16.msra.mxu3 %v3510_v53 }
  0x4b   :  { %3161 = vmatpush.bf16.msrb.mxu3 %v3690_v19 }
  0x53   :  { %3397 = vmatmul.msk.bf16.gmra.mxu0 %vm156_vm0, %v81_v50 }
  0x54   :  { %3422 = vmatmul.msk.bf16.gmra.mxu1 %vm156_vm0, %v81_v50  ;;  %v3446_v50 = vor.u32 %v3644_v46, %v3445_v45 }
  0x56   :  { %1537 = vmatpush.bf16.msra.mxu2 %v3446_v50 }
  0x5a   :  { %3028 = vmatpush.bf16.msrb.mxu2 %v3682_v18 }
  0x63   :  { %3398 = vmatmul.msk.bf16.gmra.mxu0 %vm156_vm0, %v82_v59 }
  0x64   :  { %3423 = vmatmul.msk.bf16.gmra.mxu1 %vm156_vm0, %v82_v59 }
  0x73   :  { %3399 = vmatmul.msk.bf16.gmra.mxu0 %vm156_vm0, %v83_v62 }
  0x74   :  { %3424 = vmatmul.msk.bf16.gmra.mxu1 %vm156_vm0, %v83_v62  ;;  %v3651_v62 = vld [vmem:[%s6276_s3 + $0x44] sm:$0xf] }
  0x75   :  { %v3482_v1 = vor.u32 %v3651_v62, %v3479_v63  ;;  %v48_v62 = vld [vmem:[%s6273_s0 + $0xa0] sm:$0xff] }
  0x77   :  { %1799 = vmatpush.bf16.msrb.mxu0 %v3482_v1 }
  0x83   :  { %3400 = vmatmul.msk.bf16.gmra.mxu0 %vm156_vm0, %v84_v25 }
  0x84   :  { %3425 = vmatmul.msk.bf16.gmra.mxu1 %vm156_vm0, %v84_v25 }
  0x90   :  { %v241_v56 = vpop.f32.mrf.mxu0 }
  0x91   :  { %v242_v57 = vadd.f32 %v241_v56, %v4411_v52  ;;  %v374_v58 = vpop.f32.mrf.mxu1 }
  0x92   :  { %v4417_v59 = vadd.f32 %v374_v58, %v4413_v54 }
  0x93   :  { %v498_v60 = vmul.f32 %v242_v57, %v242_v57  ;;  %3401 = vmatmul.msk.bf16.gmra.mxu0 %vm156_vm0, %v85_v55  ;;  %v596_v42 = vmul.f32 0.5, %v242_v57 }
  0x94   :  { %v499_v61 = vmul.f32 %v4417_v59, %v4417_v59  ;;  %3426 = vmatmul.msk.bf16.gmra.mxu1 %vm156_vm0, %v85_v55  ;;  %v597_v47 = vmul.f32 0.5, %v4417_v59 }
  0x95   :  { %v694_v0 = vmul.f32 0.035677407, %v498_v60 }
  0x96   :  { %v695_v4 = vmul.f32 0.035677407, %v499_v61 }
  0x97   :  { %v792_v6 = vadd.f32 0.7978846, %v694_v0 }
  0x98   :  { %v793_v7 = vadd.f32 0.7978846, %v695_v4  ;;  %v243_v8 = vpop.f32.mrf.mxu0 }
  0x99   :  { %v244_v9 = vadd.f32 %v243_v8, %v4411_v52  ;;  %v376_v10 = vpop.f32.mrf.mxu1  ;;  %v890_v12 = vmul.f32 %v792_v6, %v242_v57 }
  0x9a   :  { %v377_v11 = vadd.f32 %v376_v10, %v4413_v54  ;;  %v891_v15 = vmul.f32 %v793_v7, %v4417_v59  ;;  %v49_v59 = vld [vmem:[%s6273_s0 + $0xa8] sm:$0xff] }
  0x9b   :  { %v500_v13 = vmul.f32 %v244_v9, %v244_v9  ;;  %3695 = vtanh.f32 %v890_v12  ;;  %v598_v49 = vmul.f32 0.5, %v244_v9  ;;  %v87_v6 = vpack.c.bf16 %v49_v59, %v48_v62 }
  0x9c   :  { %v501_v16 = vmul.f32 %v377_v11, %v377_v11  ;;  %3697 = vtanh.f32 %v891_v15  ;;  %v599_v55 = vmul.f32 0.5, %v377_v11 }
  0x9d   :  { %v696_v20 = vmul.f32 0.035677407, %v500_v13 }
  0x9e   :  { %v697_v21 = vmul.f32 0.035677407, %v501_v16 }
  0x9f   :  { %v794_v22 = vadd.f32 0.7978846, %v696_v20 }
  0xa0   :  { %v795_v24 = vadd.f32 0.7978846, %v697_v21  ;;  %v246_v25 = vpop.f32.mrf.mxu0 }
  0xa1   :  { %v892_v26 = vmul.f32 %v794_v22, %v244_v9  ;;  %v4451_v27 = vadd.f32 %v246_v25, %v4411_v52  ;;  %v379_v28 = vpop.f32.mrf.mxu1  ;;  %v3696_v33 = vpop.eup %3695 }
  0xa2   :  { %v893_v29 = vmul.f32 %v795_v24, %v377_v11  ;;  %v4454_v30 = vadd.f32 %v379_v28, %v4413_v54  ;;  %v3698_v35 = vpop.eup %3697  ;;  %v1086_v40 = vadd.f32 1.0, %v3696_v33 }
  0xa3   :  { %3699 = vtanh.f32 %v892_v26  ;;  %v502_v31 = vmul.f32 %v4451_v27, %v4451_v27  ;;  %3402 = vmatmul.msk.bf16.gmra.mxu0 %vm156_vm0, %v86_v23  ;;  %v1087_v45 = vadd.f32 1.0, %v3698_v35  ;;  %v600_v25 = vmul.f32 0.5, %v4451_v27 }
  0xa4   :  { %3701 = vtanh.f32 %v893_v29  ;;  %v503_v32 = vmul.f32 %v4454_v30, %v4454_v30  ;;  %3427 = vmatmul.msk.bf16.gmra.mxu1 %vm156_vm0, %v86_v23  ;;  %v1184_v57 = vmul.f32 %v1086_v40, %v596_v42 }
  0xa5   :  { %v698_v34 = vmul.f32 0.035677407, %v502_v31  ;;  %v1185_v0 = vmul.f32 %v1087_v45, %v597_v47 }
  0xa6   :  { %v699_v36 = vmul.f32 0.035677407, %v503_v32  ;;  %v601_v32 = vmul.f32 0.5, %v4454_v30 }
  0xa7   :  { %v796_v37 = vadd.f32 0.7978846, %v698_v34 }
  0xa8   :  { %v797_v38 = vadd.f32 0.7978846, %v699_v36  ;;  %v248_v39 = vpop.f32.mrf.mxu0 }
  0xa9   :  { %v3700_v41 = vpop.eup %3699  ;;  %v249_v43 = vadd.f32 %v248_v39, %v4411_v52  ;;  %v381_v44 = vpop.f32.mrf.mxu1  ;;  %v894_v51 = vmul.f32 %v796_v37, %v4451_v27 }
  0xaa   :  { %v3702_v46 = vpop.eup %3701  ;;  %v382_v48 = vadd.f32 %v381_v44, %v4413_v54  ;;  %v1088_v50 = vadd.f32 1.0, %v3700_v41  ;;  %v895_v58 = vmul.f32 %v797_v38, %v4454_v30  ;;  %v50_v30 = vld [vmem:[%s6273_s0 + $0xb0] sm:$0xff] }
  0xab   :  { %v504_v53 = vmul.f32 %v249_v43, %v249_v43  ;;  %v1089_v56 = vadd.f32 1.0, %v3702_v46  ;;  %3703 = vtanh.f32 %v894_v51  ;;  %v602_v34 = vmul.f32 0.5, %v249_v43 }
  0xac   :  { %v505_v60 = vmul.f32 %v382_v48, %v382_v48  ;;  %v1186_v61 = vmul.f32 %v1088_v50, %v598_v49  ;;  %3705 = vtanh.f32 %v895_v58  ;;  %v603_v38 = vmul.f32 0.5, %v382_v48 }
  0xad   :  { %v700_v63 = vmul.f32 0.035677407, %v504_v53  ;;  %v1187_v1 = vmul.f32 %v1089_v56, %v599_v55 }
  0xae   :  { %v701_v2 = vmul.f32 0.035677407, %v505_v60  ;;  %v4473_v3 = vpack.c.bf16 %v1186_v61, %v1184_v57 }
  0xaf   :  { %v798_v4 = vadd.f32 0.7978846, %v700_v63  ;;  %v4475_v5 = vpack.c.bf16 %v1187_v1, %v1185_v0  ;;  %v3649_v63 = vld [vmem:[%s6276_s3 + $0x34] sm:$0xf]  ;;  %v3471_v0 = vld [vmem:[%s6276_s3 + $0x38] sm:$0xf0] }
  0xb0   :  { %v799_v7 = vadd.f32 0.7978846, %v701_v2  ;;  %v251_v8 = vpop.f32.mrf.mxu0  ;;  %1538 = vmatmul.bf16.vlgmr.msra.gmra.mxu2 %v4473_v3 }
  0xb1   :  { %v896_v9 = vmul.f32 %v798_v4, %v249_v43  ;;  %v4479_v10 = vadd.f32 %v251_v8, %v4411_v52  ;;  %v384_v11 = vpop.f32.mrf.mxu1  ;;  %1671 = vmatmul.bf16.vlgmr.msra.gmra.mxu3 %v4475_v5  ;;  %v3704_v16 = vpop.eup %3703  ;;  %v51_v43 = vld [vmem:[%s6273_s0 + $0xb8] sm:$0xff]  ;;  %v3474_v4 = vor.u32 %v3649_v63, %v3471_v0 }
  0xb2   :  { %v897_v12 = vmul.f32 %v799_v7, %v382_v48  ;;  %v4483_v13 = vadd.f32 %v384_v11, %v4413_v54  ;;  %v3706_v18 = vpop.eup %3705  ;;  %v1090_v23 = vadd.f32 1.0, %v3704_v16  ;;  %v88_v51 = vpack.c.bf16 %v51_v43, %v50_v30  ;;  %v3535_v7 = vld [vmem:[%s6276_s3 + $0xb8] sm:$0xf0] }
  0xb3   :  { %3707 = vtanh.f32 %v896_v9  ;;  %v506_v14 = vmul.f32 %v4479_v10, %v4479_v10  ;;  %3403 = vmatmul.msk.bf16.gmra.mxu0 %vm156_vm0, %v87_v6  ;;  %v1091_v29 = vadd.f32 1.0, %v3706_v18  ;;  %v604_v18 = vmul.f32 0.5, %v4479_v10 }
  0xb4   :  { %3709 = vtanh.f32 %v897_v12  ;;  %v507_v15 = vmul.f32 %v4483_v13, %v4483_v13  ;;  %3428 = vmatmul.msk.bf16.gmra.mxu1 %vm156_vm0, %v87_v6  ;;  %v1188_v41 = vmul.f32 %v1090_v23, %v600_v25  ;;  %v3665_v6 = vld [vmem:[%s6276_s3 + $0xb4] sm:$0xf]  ;;  %1800 = vmatpush.bf16.msrb.mxu0 %v3474_v4  ;;  %v605_v23 = vmul.f32 0.5, %v4483_v13 }
  0xb5   :  { %v702_v17 = vmul.f32 0.035677407, %v506_v14  ;;  %v1189_v45 = vmul.f32 %v1091_v29, %v601_v32  ;;  %v3538_v11 = vor.u32 %v3665_v6, %v3535_v7 }
  0xb6   :  { %v703_v19 = vmul.f32 0.035677407, %v507_v15 }
  0xb7   :  { %v800_v20 = vadd.f32 0.7978846, %v702_v17  ;;  %1933 = vmatpush.bf16.msrb.mxu1 %v3538_v11 }
  0xb8   :  { %v801_v21 = vadd.f32 0.7978846, %v703_v19  ;;  %v253_v22 = vpop.f32.mrf.mxu0 }
  0xb9   :  { %v3708_v24 = vpop.eup %3707  ;;  %v4493_v26 = vadd.f32 %v253_v22, %v4411_v52  ;;  %v386_v28 = vpop.f32.mrf.mxu1  ;;  %v898_v36 = vmul.f32 %v800_v20, %v4479_v10 }
  0xba   :  { %v3710_v31 = vpop.eup %3709  ;;  %v4497_v33 = vadd.f32 %v386_v28, %v4413_v54  ;;  %v1092_v35 = vadd.f32 1.0, %v3708_v24  ;;  %v899_v39 = vmul.f32 %v801_v21, %v4483_v13 }
  0xbb   :  { %v508_v37 = vmul.f32 %v4493_v26, %v4493_v26  ;;  %v1093_v27 = vadd.f32 1.0, %v3710_v31  ;;  %3711 = vtanh.f32 %v898_v36  ;;  %v606_v25 = vmul.f32 0.5, %v4493_v26 }
  0xbc   :  { %v509_v40 = vmul.f32 %v4497_v33, %v4497_v33  ;;  %v1190_v42 = vmul.f32 %v1092_v35, %v602_v34  ;;  %3713 = vtanh.f32 %v899_v39  ;;  %v607_v10 = vmul.f32 0.5, %v4497_v33  ;;  %v52_v34 = vld [vmem:[%s6273_s0 + $0xc0] sm:$0xff] }
  0xbd   :  { %v704_v44 = vmul.f32 0.035677407, %v508_v37  ;;  %v1191_v46 = vmul.f32 %v1093_v27, %v603_v38  ;;  %v3681_v38 = vld [vmem:[%s6278_s5 + $0x30] sm:$0xff] }
  0xbe   :  { %v705_v47 = vmul.f32 0.035677407, %v509_v40  ;;  %v4511_v48 = vpack.c.bf16 %v1190_v42, %v1188_v41  ;;  %3029 = vmatpush.bf16.msrb.mxu2 %v3681_v38 }
  0xbf   :  { %v802_v49 = vadd.f32 0.7978846, %v704_v44  ;;  %v4513_v50 = vpack.c.bf16 %v1191_v46, %v1189_v45 }
  0xc0   :  { %v803_v53 = vadd.f32 0.7978846, %v705_v47  ;;  %v256_v55 = vpop.f32.mrf.mxu0  ;;  %1543 = vmatmul.bf16.gmra.mxu2 %v4511_v48 }
  0xc1   :  { %v900_v56 = vmul.f32 %v802_v49, %v4493_v26  ;;  %v4518_v58 = vadd.f32 %v256_v55, %v4411_v52  ;;  %v389_v60 = vpop.f32.mrf.mxu1  ;;  %1676 = vmatmul.bf16.gmra.mxu3 %v4513_v50  ;;  %v3712_v1 = vpop.eup %3711  ;;  %v53_v26 = vld [vmem:[%s6273_s0 + $0xc8] sm:$0xff] }
  0xc2   :  { %v901_v57 = vmul.f32 %v803_v53, %v4497_v33  ;;  %v4523_v61 = vadd.f32 %v389_v60, %v4413_v54  ;;  %v3714_v8 = vpop.eup %3713  ;;  %v1094_v16 = vadd.f32 1.0, %v3712_v1  ;;  %v3689_v33 = vld [vmem:[%s6278_s5 + $0x70] sm:$0xff]  ;;  %v89_v44 = vpack.c.bf16 %v53_v26, %v52_v34 }
  0xc3   :  { %3715 = vtanh.f32 %v900_v56  ;;  %v510_v62 = vmul.f32 %v4518_v58, %v4518_v58  ;;  %3404 = vmatmul.msk.bf16.gmra.mxu0 %vm156_vm0, %v88_v51  ;;  %v1095_v21 = vadd.f32 1.0, %v3714_v8  ;;  %3162 = vmatpush.bf16.msrb.mxu3 %v3689_v33  ;;  %v608_v7 = vmul.f32 0.5, %v4518_v58 }
  0xc4   :  { %3717 = vtanh.f32 %v901_v57  ;;  %v511_v59 = vmul.f32 %v4523_v61, %v4523_v61  ;;  %3429 = vmatmul.msk.bf16.gmra.mxu1 %vm156_vm0, %v88_v51  ;;  %v1192_v36 = vmul.f32 %v1094_v16, %v604_v18 }
  0xc5   :  { %v706_v2 = vmul.f32 0.035677407, %v510_v62  ;;  %v1193_v39 = vmul.f32 %v1095_v21, %v605_v23 }
  0xc6   :  { %v707_v9 = vmul.f32 0.035677407, %v511_v59 }
  0xc7   :  { %v804_v12 = vadd.f32 0.7978846, %v706_v2 }
  0xc8   :  { %v805_v14 = vadd.f32 0.7978846, %v707_v9  ;;  %v258_v15 = vpop.f32.mrf.mxu0 }
  0xc9   :  { %v3716_v17 = vpop.eup %3715  ;;  %v4545_v19 = vadd.f32 %v258_v15, %v4411_v52  ;;  %v391_v20 = vpop.f32.mrf.mxu1  ;;  %v902_v29 = vmul.f32 %v804_v12, %v4518_v58 }
  0xca   :  { %v3718_v22 = vpop.eup %3717  ;;  %v392_v24 = vadd.f32 %v391_v20, %v4413_v54  ;;  %v1096_v28 = vadd.f32 1.0, %v3716_v17  ;;  %v903_v35 = vmul.f32 %v805_v14, %v4523_v61  ;;  %v609_v14 = vmul.f32 0.5, %v4523_v61  ;;  %v55_v61 = vld [vmem:[%s6273_s0 + $0xd8] sm:$0xff] }
  0xcb   :  { %v512_v31 = vmul.f32 %v4545_v19, %v4545_v19  ;;  %v1097_v32 = vadd.f32 1.0, %v3718_v22  ;;  %3719 = vtanh.f32 %v902_v29  ;;  %v610_v16 = vmul.f32 0.5, %v4545_v19  ;;  %v54_v29 = vld [vmem:[%s6273_s0 + $0xd0] sm:$0xff] }
  0xcc   :  { %v513_v13 = vmul.f32 %v392_v24, %v392_v24  ;;  %v1194_v37 = vmul.f32 %v1096_v28, %v606_v25  ;;  %3721 = vtanh.f32 %v903_v35  ;;  %v611_v21 = vmul.f32 0.5, %v392_v24 }
  0xcd   :  { %v708_v27 = vmul.f32 0.035677407, %v512_v31  ;;  %v1195_v40 = vmul.f32 %v1097_v32, %v607_v10 }
  0xce   :  { %v709_v41 = vmul.f32 0.035677407, %v513_v13  ;;  %v4567_v42 = vpack.c.bf16 %v1194_v37, %v1192_v36  ;;  %v90_v13 = vpack.c.bf16 %v55_v61, %v54_v29 }
  0xcf   :  { %v806_v30 = vadd.f32 0.7978846, %v708_v27  ;;  %v4569_v43 = vpack.c.bf16 %v1195_v40, %v1193_v39 }
  0xd0   :  { %v807_v45 = vadd.f32 0.7978846, %v709_v41  ;;  %v261_v46 = vpop.f32.mrf.mxu0  ;;  %1548 = vmatmul.bf16.gmra.mxu2 %v4567_v42 }
  0xd1   :  { %v904_v47 = vmul.f32 %v806_v30, %v4545_v19  ;;  %v4574_v49 = vadd.f32 %v261_v46, %v4411_v52  ;;  %v394_v51 = vpop.f32.mrf.mxu1  ;;  %1681 = vmatmul.bf16.gmra.mxu3 %v4569_v43  ;;  %v3720_v57 = vpop.eup %3719 }
  0xd2   :  { %v905_v53 = vmul.f32 %v807_v45, %v392_v24  ;;  %v4578_v55 = vadd.f32 %v394_v51, %v4413_v54  ;;  %v3722_v59 = vpop.eup %3721  ;;  %v1098_v4 = vadd.f32 1.0, %v3720_v57 }
  0xd3   :  { %3723 = vtanh.f32 %v904_v47  ;;  %v514_v56 = vmul.f32 %v4574_v49, %v4574_v49  ;;  %3405 = vmatmul.msk.bf16.gmra.mxu0 %vm156_vm0, %v89_v44  ;;  %v1099_v11 = vadd.f32 1.0, %v3722_v59  ;;  %v612_v57 = vmul.f32 0.5, %v4574_v49 }
  0xd4   :  { %3725 = vtanh.f32 %v905_v53  ;;  %v515_v60 = vmul.f32 %v4578_v55, %v4578_v55  ;;  %3430 = vmatmul.msk.bf16.gmra.mxu1 %vm156_vm0, %v89_v44  ;;  %v1196_v25 = vmul.f32 %v1098_v4, %v608_v7 }
  0xd5   :  { %v710_v62 = vmul.f32 0.035677407, %v514_v56  ;;  %v1197_v31 = vmul.f32 %v1099_v11, %v609_v14 }
  0xd6   :  { %v711_v63 = vmul.f32 0.035677407, %v515_v60 }
  0xd7   :  { %v808_v0 = vadd.f32 0.7978846, %v710_v62 }
  0xd8   :  { %v809_v1 = vadd.f32 0.7978846, %v711_v63  ;;  %v263_v2 = vpop.f32.mrf.mxu0 }
  0xd9   :  { %v3724_v6 = vpop.eup %3723  ;;  %v264_v8 = vadd.f32 %v263_v2, %v4411_v52  ;;  %v396_v9 = vpop.f32.mrf.mxu1  ;;  %v906_v18 = vmul.f32 %v808_v0, %v4574_v49 }
  0xda   :  { %v3726_v12 = vpop.eup %3725  ;;  %v397_v15 = vadd.f32 %v396_v9, %v4413_v54  ;;  %v1100_v17 = vadd.f32 1.0, %v3724_v6  ;;  %v907_v23 = vmul.f32 %v809_v1, %v4578_v55  ;;  %v613_v1 = vmul.f32 0.5, %v4578_v55  ;;  %v56_v55 = vld [vmem:[%s6273_s0 + $0xe0] sm:$0xff] }
  0xdb   :  { %v516_v20 = vmul.f32 %v264_v8, %v264_v8  ;;  %v1101_v22 = vadd.f32 1.0, %v3726_v12  ;;  %3727 = vtanh.f32 %v906_v18  ;;  %v614_v4 = vmul.f32 0.5, %v264_v8 }
  0xdc   :  { %v517_v58 = vmul.f32 %v397_v15, %v397_v15  ;;  %v1198_v28 = vmul.f32 %v1100_v17, %v610_v16  ;;  %3729 = vtanh.f32 %v907_v23  ;;  %v615_v11 = vmul.f32 0.5, %v397_v15 }
  0xdd   :  { %v712_v19 = vmul.f32 0.035677407, %v516_v20  ;;  %v1199_v10 = vmul.f32 %v1101_v22, %v611_v21 }
  0xde   :  { %v713_v32 = vmul.f32 0.035677407, %v517_v58  ;;  %v4599_v34 = vpack.c.bf16 %v1198_v28, %v1196_v25 }
  0xdf   :  { %v810_v24 = vadd.f32 0.7978846, %v712_v19  ;;  %v4601_v35 = vpack.c.bf16 %v1199_v10, %v1197_v31 }
  0xe0   :  { %v811_v36 = vadd.f32 0.7978846, %v713_v32  ;;  %v266_v37 = vpop.f32.mrf.mxu0  ;;  %1553 = vmatmul.bf16.gmra.mxu2 %v4599_v34 }
  0xe1   :  { %v908_v26 = vmul.f32 %v810_v24, %v264_v8  ;;  %v4605_v38 = vadd.f32 %v266_v37, %v4411_v52  ;;  %v399_v33 = vpop.f32.mrf.mxu1  ;;  %1686 = vmatmul.bf16.gmra.mxu3 %v4601_v35  ;;  %v3728_v30 = vpop.eup %3727  ;;  %v57_v8 = vld [vmem:[%s6273_s0 + $0xe8] sm:$0xff] }
  0xe2   :  { %v909_v27 = vmul.f32 %v811_v36, %v397_v15  ;;  %v4609_v39 = vadd.f32 %v399_v33, %v4413_v54  ;;  %v3730_v45 = vpop.eup %3729  ;;  %v1102_v56 = vadd.f32 1.0, %v3728_v30  ;;  %v91_v25 = vpack.c.bf16 %v57_v8, %v56_v55  ;;  %v3647_v36 = vld [vmem:[%s6276_s3 + $0x24] sm:$0xf]  ;;  %v3463_v37 = vld [vmem:[%s6276_s3 + $0x28] sm:$0xf0] }
  0xe3   :  { %3731 = vtanh.f32 %v908_v26  ;;  %v518_v40 = vmul.f32 %v4605_v38, %v4605_v38  ;;  %3406 = vmatmul.msk.bf16.gmra.mxu0 %vm156_vm0, %v90_v13  ;;  %v1103_v63 = vadd.f32 1.0, %v3730_v45  ;;  %v3680_v55 = vld [vmem:[%s6278_s5 + $0x28] sm:$0xff] }
  0xe4   :  { %3733 = vtanh.f32 %v909_v27  ;;  %v519_v41 = vmul.f32 %v4609_v39, %v4609_v39  ;;  %3431 = vmatmul.msk.bf16.gmra.mxu1 %vm156_vm0, %v90_v13  ;;  %v1200_v16 = vmul.f32 %v1102_v56, %v612_v57  ;;  %v3466_v27 = vor.u32 %v3647_v36, %v3463_v37  ;;  %3030 = vmatpush.bf16.msrb.mxu2 %v3680_v55 }
  0xe5   :  { %v714_v44 = vmul.f32 0.035677407, %v518_v40  ;;  %v1201_v20 = vmul.f32 %v1103_v63, %v613_v1  ;;  %v3663_v40 = vld [vmem:[%s6276_s3 + $0xa4] sm:$0xf]  ;;  %v617_v1 = vmul.f32 0.5, %v4609_v39 }
  0xe6   :  { %v715_v46 = vmul.f32 0.035677407, %v519_v41  ;;  %v3527_v41 = vld [vmem:[%s6276_s3 + $0xa8] sm:$0xf0]  ;;  %1801 = vmatpush.bf16.msrb.mxu0 %v3466_v27 }
  0xe7   :  { %v812_v47 = vadd.f32 0.7978846, %v714_v44  ;;  %v3530_v45 = vor.u32 %v3663_v40, %v3527_v41 }
  0xe8   :  { %v813_v51 = vadd.f32 0.7978846, %v715_v46  ;;  %v268_v53 = vpop.f32.mrf.mxu0 }
  0xe9   :  { %v3732_v60 = vpop.eup %3731  ;;  %v4619_v62 = vadd.f32 %v268_v53, %v4411_v52  ;;  %v401_v59 = vpop.f32.mrf.mxu1  ;;  %v910_v7 = vmul.f32 %v812_v47, %v4605_v38  ;;  %1934 = vmatpush.bf16.msrb.mxu1 %v3530_v45 }
  0xea   :  { %v3734_v0 = vpop.eup %3733  ;;  %v4623_v2 = vadd.f32 %v401_v59, %v4413_v54  ;;  %v1104_v6 = vadd.f32 1.0, %v3732_v60  ;;  %v911_v12 = vmul.f32 %v813_v51, %v4609_v39  ;;  %v616_v60 = vmul.f32 0.5, %v4605_v38 }
  0xeb   :  { %v520_v9 = vmul.f32 %v4619_v62, %v4619_v62  ;;  %v1105_v49 = vadd.f32 1.0, %v3734_v0  ;;  %3735 = vtanh.f32 %v910_v7 }
  0xec   :  { %v521_v14 = vmul.f32 %v4623_v2, %v4623_v2  ;;  %v1202_v17 = vmul.f32 %v1104_v6, %v614_v4  ;;  %3737 = vtanh.f32 %v911_v12  ;;  %v618_v6 = vmul.f32 0.5, %v4619_v62  ;;  %v58_v12 = vld [vmem:[%s6273_s0 + $0xf0] sm:$0xff] }
  0xed   :  { %v716_v18 = vmul.f32 0.035677407, %v520_v9  ;;  %v1203_v21 = vmul.f32 %v1105_v49, %v615_v11  ;;  %v619_v38 = vmul.f32 0.5, %v4623_v2 }
  0xee   :  { %v717_v15 = vmul.f32 0.035677407, %v521_v14  ;;  %v4637_v22 = vpack.c.bf16 %v1202_v17, %v1200_v16 }
  0xef   :  { %v814_v23 = vadd.f32 0.7978846, %v716_v18  ;;  %v4639_v58 = vpack.c.bf16 %v1203_v21, %v1201_v20 }
  0xf0   :  { %v815_v28 = vadd.f32 0.7978846, %v717_v15  ;;  %v271_v29 = vpop.f32.mrf.mxu0  ;;  %1558 = vmatmul.bf16.gmra.mxu2 %v4637_v22 }
  0xf1   :  { %v912_v61 = vmul.f32 %v814_v23, %v4619_v62  ;;  %v4644_v19 = vadd.f32 %v271_v29, %v4411_v52  ;;  %v404_v31 = vpop.f32.mrf.mxu1  ;;  %1691 = vmatmul.bf16.gmra.mxu3 %v4639_v58  ;;  %v3736_v26 = vpop.eup %3735  ;;  %v59_v62 = vld [vmem:[%s6273_s0 + $0xf8] sm:$0xff] }
  0xf2   :  { %v913_v10 = vmul.f32 %v815_v28, %v4623_v2  ;;  %v4649_v32 = vadd.f32 %v404_v31, %v4413_v54  ;;  %v3738_v30 = vpop.eup %3737  ;;  %v1106_v53 = vadd.f32 1.0, %v3736_v26  ;;  %v3688_v2 = vld [vmem:[%s6278_s5 + $0x68] sm:$0xff]  ;;  %v92_v28 = vpack.c.bf16 %v59_v62, %v58_v12 }
  0xf3   :  { %3739 = vtanh.f32 %v912_v61  ;;  %v522_v24 = vmul.f32 %v4644_v19, %v4644_v19  ;;  %3407 = vmatmul.msk.bf16.gmra.mxu0 %vm156_vm0, %v91_v25  ;;  %v1107_v63 = vadd.f32 1.0, %v3738_v30  ;;  %3163 = vmatpush.bf16.msrb.mxu3 %v3688_v2 }
  0xf4   :  { %3741 = vtanh.f32 %v913_v10  ;;  %v523_v13 = vmul.f32 %v4649_v32, %v4649_v32  ;;  %3432 = vmatmul.msk.bf16.gmra.mxu1 %vm156_vm0, %v91_v25  ;;  %v1204_v16 = vmul.f32 %v1106_v53, %v616_v60 }
  0xf5   :  { %v718_v33 = vmul.f32 0.035677407, %v522_v24  ;;  %v1205_v18 = vmul.f32 %v1107_v63, %v617_v1  ;;  %v621_v63 = vmul.f32 0.5, %v4649_v32 }
  0xf6   :  { %v719_v44 = vmul.f32 0.035677407, %v523_v13 }
  0xf7   :  { %v816_v46 = vadd.f32 0.7978846, %v718_v33 }
  0xf8   :  { %v817_v47 = vadd.f32 0.7978846, %v719_v44  ;;  %v273_v51 = vpop.f32.mrf.mxu0 }
  0xf9   :  { %v3740_v56 = vpop.eup %3739  ;;  %v4671_v57 = vadd.f32 %v273_v51, %v4411_v52  ;;  %v406_v59 = vpop.f32.mrf.mxu1  ;;  %v914_v9 = vmul.f32 %v816_v46, %v4644_v19  ;;  %v620_v51 = vmul.f32 0.5, %v4644_v19 }
  0xfa   :  { %v3742_v0 = vpop.eup %3741  ;;  %v407_v4 = vadd.f32 %v406_v59, %v4413_v54  ;;  %v1108_v7 = vadd.f32 1.0, %v3740_v56  ;;  %v915_v14 = vmul.f32 %v817_v47, %v4649_v32  ;;  %v61_v32 = vld [vmem:[%s6273_s0 + $0x108] sm:$0xff] }
  0xfb   :  { %v524_v11 = vmul.f32 %v4671_v57, %v4671_v57  ;;  %v1109_v49 = vadd.f32 1.0, %v3742_v0  ;;  %3743 = vtanh.f32 %v914_v9  ;;  %v622_v1 = vmul.f32 0.5, %v4671_v57 }
  0xfc   :  { %v525_v39 = vmul.f32 %v407_v4, %v407_v4  ;;  %v1206_v17 = vmul.f32 %v1108_v7, %v618_v6  ;;  %3745 = vtanh.f32 %v915_v14 }
  0xfd   :  { %v720_v8 = vmul.f32 0.035677407, %v524_v11  ;;  %v1207_v20 = vmul.f32 %v1109_v49, %v619_v38  ;;  %v623_v11 = vmul.f32 0.5, %v407_v4 }
  0xfe   :  { %v721_v21 = vmul.f32 0.035677407, %v525_v39  ;;  %v4693_v15 = vpack.c.bf16 %v1206_v17, %v1204_v16  ;;  %v60_v39 = vld [vmem:[%s6273_s0 + $0x100] sm:$0xff] }
  0xff   :  { %v818_v23 = vadd.f32 0.7978846, %v720_v8  ;;  %v4695_v25 = vpack.c.bf16 %v1207_v20, %v1205_v18  ;;  %v93_v8 = vpack.c.bf16 %v61_v32, %v60_v39 }
 0x100   :  { %v819_v29 = vadd.f32 0.7978846, %v721_v21  ;;  %v276_v61 = vpop.f32.mrf.mxu0  ;;  %1563 = vmatmul.bf16.gmra.mxu2 %v4693_v15 }
 0x101   :  { %v916_v31 = vmul.f32 %v818_v23, %v4671_v57  ;;  %v4700_v10 = vadd.f32 %v276_v61, %v4411_v52  ;;  %v409_v24 = vpop.f32.mrf.mxu1  ;;  %1696 = vmatmul.bf16.gmra.mxu3 %v4695_v25  ;;  %v3744_v33 = vpop.eup %3743 }
 0x102   :  { %v917_v13 = vmul.f32 %v819_v29, %v407_v4  ;;  %v4704_v36 = vadd.f32 %v409_v24, %v4413_v54  ;;  %v3746_v40 = vpop.eup %3745  ;;  %v1110_v46 = vadd.f32 1.0, %v3744_v33 }
 0x103   :  { %3747 = vtanh.f32 %v916_v31  ;;  %v526_v37 = vmul.f32 %v4700_v10, %v4700_v10  ;;  %3408 = vmatmul.msk.bf16.gmra.mxu0 %vm156_vm0, %v92_v28  ;;  %v1111_v60 = vadd.f32 1.0, %v3746_v40 }
 0x104   :  { %3749 = vtanh.f32 %v917_v13  ;;  %v527_v26 = vmul.f32 %v4704_v36, %v4704_v36  ;;  %3433 = vmatmul.msk.bf16.gmra.mxu1 %vm156_vm0, %v92_v28  ;;  %v1208_v12 = vmul.f32 %v1110_v46, %v620_v51 }
 0x105   :  { %v722_v27 = vmul.f32 0.035677407, %v526_v37  ;;  %v1209_v16 = vmul.f32 %v1111_v60, %v621_v63  ;;  %v625_v60 = vmul.f32 0.5, %v4704_v36 }
 0x106   :  { %v723_v41 = vmul.f32 0.035677407, %v527_v26 }
 0x107   :  { %v820_v30 = vadd.f32 0.7978846, %v722_v27 }
 0x108   :  { %v821_v44 = vadd.f32 0.7978846, %v723_v41  ;;  %v278_v45 = vpop.f32.mrf.mxu0 }
 0x109   :  { %v3748_v47 = vpop.eup %3747  ;;  %v279_v53 = vadd.f32 %v278_v45, %v4411_v52  ;;  %v411_v56 = vpop.f32.mrf.mxu1  ;;  %v918_v7 = vmul.f32 %v820_v30, %v4700_v10  ;;  %v624_v45 = vmul.f32 0.5, %v4700_v10 }
 0x10a   :  { %v3750_v59 = vpop.eup %3749  ;;  %v412_v0 = vadd.f32 %v411_v56, %v4413_v54  ;;  %v1112_v6 = vadd.f32 1.0, %v3748_v47  ;;  %v919_v49 = vmul.f32 %v821_v44, %v4704_v36  ;;  %v63_v36 = vld [vmem:[%s6273_s0 + $0x118] sm:$0xff] }
 0x10b   :  { %v528_v9 = vmul.f32 %v279_v53, %v279_v53  ;;  %v1113_v38 = vadd.f32 1.0, %v3750_v59  ;;  %3751 = vtanh.f32 %v918_v7  ;;  %v626_v63 = vmul.f32 0.5, %v279_v53 }
 0x10c   :  { %v529_v19 = vmul.f32 %v412_v0, %v412_v0  ;;  %v1210_v14 = vmul.f32 %v1112_v6, %v622_v1  ;;  %3753 = vtanh.f32 %v919_v49 }
 0x10d   :  { %v724_v57 = vmul.f32 0.035677407, %v528_v9  ;;  %v1211_v17 = vmul.f32 %v1113_v38, %v623_v11  ;;  %v627_v9 = vmul.f32 0.5, %v412_v0 }
 0x10e   :  { %v725_v62 = vmul.f32 0.035677407, %v529_v19  ;;  %v4725_v55 = vpack.c.bf16 %v1210_v14, %v1208_v12  ;;  %v62_v12 = vld [vmem:[%s6273_s0 + $0x110] sm:$0xff] }
 0x10f   :  { %v822_v4 = vadd.f32 0.7978846, %v724_v57  ;;  %v4727_v2 = vpack.c.bf16 %v1211_v17, %v1209_v16  ;;  %v94_v17 = vpack.c.bf16 %v63_v36, %v62_v12 }
 0x110   :  { %v823_v18 = vadd.f32 0.7978846, %v725_v62  ;;  %v281_v20 = vpop.f32.mrf.mxu0  ;;  %1568 = vmatmul.bf16.gmra.mxu2 %v4725_v55 }
 0x111   :  { %v920_v21 = vmul.f32 %v822_v4, %v279_v53  ;;  %v4731_v23 = vadd.f32 %v281_v20, %v4411_v52  ;;  %v414_v28 = vpop.f32.mrf.mxu1  ;;  %1701 = vmatmul.bf16.gmra.mxu3 %v4727_v2  ;;  %v3752_v13 = vpop.eup %3751 }
 0x112   :  { %v921_v29 = vmul.f32 %v823_v18, %v412_v0  ;;  %v4735_v61 = vadd.f32 %v414_v28, %v4413_v54  ;;  %v3754_v26 = vpop.eup %3753  ;;  %v1114_v30 = vadd.f32 1.0, %v3752_v13 }
 0x113   :  { %3755 = vtanh.f32 %v920_v21  ;;  %v530_v31 = vmul.f32 %v4731_v23, %v4731_v23  ;;  %3409 = vmatmul.msk.bf16.gmra.mxu0 %vm156_vm0, %v93_v8  ;;  %v1115_v51 = vadd.f32 1.0, %v3754_v26 }
 0x114   :  { %3757 = vtanh.f32 %v921_v29  ;;  %v531_v24 = vmul.f32 %v4735_v61, %v4735_v61  ;;  %3434 = vmatmul.msk.bf16.gmra.mxu1 %vm156_vm0, %v93_v8  ;;  %v1212_v10 = vmul.f32 %v1114_v30, %v624_v45  ;;  %v629_v45 = vmul.f32 0.5, %v4735_v61 }
 0x115   :  { %v726_v37 = vmul.f32 0.035677407, %v530_v31  ;;  %v1213_v14 = vmul.f32 %v1115_v51, %v625_v60 }
 0x116   :  { %v727_v33 = vmul.f32 0.035677407, %v531_v24 }
 0x117   :  { %v824_v27 = vadd.f32 0.7978846, %v726_v37 }
 0x118   :  { %v825_v40 = vadd.f32 0.7978846, %v727_v33  ;;  %v283_v41 = vpop.f32.mrf.mxu0 }
 0x119   :  { %v3756_v44 = vpop.eup %3755  ;;  %v284_v46 = vadd.f32 %v283_v41, %v4411_v52  ;;  %v416_v47 = vpop.f32.mrf.mxu1  ;;  %v922_v6 = vmul.f32 %v824_v27, %v4731_v23 }
 0x11a   :  { %v3758_v56 = vpop.eup %3757  ;;  %v417_v59 = vadd.f32 %v416_v47, %v4413_v54  ;;  %v1116_v1 = vadd.f32 1.0, %v3756_v44  ;;  %v923_v38 = vmul.f32 %v825_v40, %v4735_v61  ;;  %v628_v44 = vmul.f32 0.5, %v4731_v23 }
 0x11b   :  { %v532_v7 = vmul.f32 %v284_v46, %v284_v46  ;;  %v1117_v11 = vadd.f32 1.0, %v3758_v56  ;;  %3759 = vtanh.f32 %v922_v6  ;;  %v630_v6 = vmul.f32 0.5, %v284_v46 }
 0x11c   :  { %v533_v49 = vmul.f32 %v417_v59, %v417_v59  ;;  %v1214_v19 = vmul.f32 %v1116_v1, %v626_v63  ;;  %3761 = vtanh.f32 %v923_v38 }
 0x11d   :  { %v728_v53 = vmul.f32 0.035677407, %v532_v7  ;;  %v1215_v39 = vmul.f32 %v1117_v11, %v627_v9  ;;  %v631_v11 = vmul.f32 0.5, %v417_v59 }
 0x11e   :  { %v729_v32 = vmul.f32 0.035677407, %v533_v49  ;;  %v4755_v57 = vpack.c.bf16 %v1214_v19, %v1212_v10  ;;  %v64_v19 = vld [vmem:[%s6273_s0 + $0x120] sm:$0xff] }
 0x11f   :  { %v826_v0 = vadd.f32 0.7978846, %v728_v53  ;;  %v4757_v16 = vpack.c.bf16 %v1215_v39, %v1213_v14 }
 0x120   :  { %v827_v62 = vadd.f32 0.7978846, %v729_v32  ;;  %v286_v4 = vpop.f32.mrf.mxu0  ;;  %1573 = vmatmul.bf16.gmra.mxu2 %v4755_v57 }
 0x121   :  { %v924_v8 = vmul.f32 %v826_v0, %v284_v46  ;;  %v4761_v18 = vadd.f32 %v286_v4, %v4411_v52  ;;  %v419_v20 = vpop.f32.mrf.mxu1  ;;  %1706 = vmatmul.bf16.gmra.mxu3 %v4757_v16  ;;  %v3760_v24 = vpop.eup %3759  ;;  %v65_v46 = vld [vmem:[%s6273_s0 + $0x128] sm:$0xff] }
 0x122   :  { %v925_v21 = vmul.f32 %v827_v62, %v417_v59  ;;  %v4765_v28 = vadd.f32 %v419_v20, %v4413_v54  ;;  %v3762_v37 = vpop.eup %3761  ;;  %v1118_v41 = vadd.f32 1.0, %v3760_v24  ;;  %v1364_v59 = vld [vmem:[%s6277_s4] sm:$0x3]  ;;  %v3455_v24 = vld [vmem:[%s6276_s3 + $0x18] sm:$0xf0] }
 0x123   :  { %3763 = vtanh.f32 %v924_v8  ;;  %v534_v29 = vmul.f32 %v4761_v18, %v4761_v18  ;;  %3410 = vmatmul.msk.bf16.gmra.mxu0 %vm156_vm0, %v94_v17  ;;  %v1119_v56 = vadd.f32 1.0, %v3762_v37  ;;  %v4801_v8 = vperm.slane %v1364_v59, 0 }
 0x124   :  { %3765 = vtanh.f32 %v925_v21  ;;  %v535_v31 = vmul.f32 %v4765_v28, %v4765_v28  ;;  %3435 = vmatmul.msk.bf16.gmra.mxu1 %vm156_vm0, %v94_v17  ;;  %v1216_v49 = vmul.f32 %v1118_v41, %v628_v44  ;;  %v95_v17 = vpack.c.bf16 %v65_v46, %v64_v19  ;;  %v3687_v19 = vld [vmem:[%s6278_s5 + $0x60] sm:$0xff] }
 0x125   :  { %v730_v13 = vmul.f32 0.035677407, %v534_v29  ;;  %v1217_v36 = vmul.f32 %v1119_v56, %v629_v45  ;;  %3164 = vmatpush.bf16.msrb.mxu3 %v3687_v19 }
 0x126   :  { %v731_v26 = vmul.f32 0.035677407, %v535_v31  ;;  %v3645_v31 = vld [vmem:[%s6276_s3 + $0x14] sm:$0xf] }
 0x127   :  { %v828_v33 = vadd.f32 0.7978846, %v730_v13 }
 0x128   :  { %v829_v27 = vadd.f32 0.7978846, %v731_v26  ;;  %v288_v40 = vpop.f32.mrf.mxu0  ;;  %v3458_v26 = vor.u32 %v3645_v31, %v3455_v24 }
 0x129   :  { %v3764_v30 = vpop.eup %3763  ;;  %v4776_v47 = vadd.f32 %v288_v40, %v4411_v52  ;;  %v421_v51 = vpop.f32.mrf.mxu1  ;;  %v926_v63 = vmul.f32 %v828_v33, %v4761_v18  ;;  %v3661_v33 = vld [vmem:[%s6276_s3 + $0x94] sm:$0xf] }
 0x12a   :  { %v3766_v60 = vpop.eup %3765  ;;  %v4780_v1 = vadd.f32 %v421_v51, %v4413_v54  ;;  %v1120_v7 = vadd.f32 1.0, %v3764_v30  ;;  %v927_v9 = vmul.f32 %v829_v27, %v4765_v28  ;;  %v3519_v27 = vld [vmem:[%s6276_s3 + $0x98] sm:$0xf0]  ;;  %1802 = vmatpush.bf16.msrb.mxu0 %v3458_v26 }
 0x12b   :  { %v536_v23 = vmul.f32 %v4776_v47, %v4776_v47  ;;  %v1121_v61 = vadd.f32 1.0, %v3766_v60  ;;  %3767 = vtanh.f32 %v926_v63  ;;  %v3522_v63 = vor.u32 %v3661_v33, %v3519_v27  ;;  %v67_v26 = vld [vmem:[%s6273_s0 + $0x138] sm:$0xff] }
 0x12c   :  { %v537_v38 = vmul.f32 %v4780_v1, %v4780_v1  ;;  %v1218_v10 = vmul.f32 %v1120_v7, %v630_v6  ;;  %3769 = vtanh.f32 %v927_v9  ;;  %v635_v31 = vmul.f32 0.5, %v4780_v1 }
 0x12d   :  { %v732_v12 = vmul.f32 0.035677407, %v536_v23  ;;  %v1219_v53 = vmul.f32 %v1121_v61, %v631_v11  ;;  %1935 = vmatpush.bf16.msrb.mxu1 %v3522_v63 }
 0x12e   :  { %v733_v14 = vmul.f32 0.035677407, %v537_v38  ;;  %v4796_v39 = vpack.c.bf16 %v1218_v10, %v1216_v49  ;;  %v3679_v10 = vld [vmem:[%s6278_s5 + $0x20] sm:$0xff] }
 0x12f   :  { %v830_v32 = vadd.f32 0.7978846, %v732_v12  ;;  %v4798_v0 = vpack.c.bf16 %v1219_v53, %v1217_v36  ;;  %v632_v12 = vmul.f32 0.5, %v4761_v18  ;;  %v633_v36 = vmul.f32 0.5, %v4765_v28  ;;  %3031 = vmatpush.bf16.msrb.mxu2 %v3679_v10 }
 0x130   :  { %v831_v62 = vadd.f32 0.7978846, %v733_v14  ;;  %v291_v4 = vpop.f32.mrf.mxu0  ;;  %1578 = vmatmul.bf16.gmra.mxu2 %v4796_v39 }
 0x131   :  { %v928_v20 = vmul.f32 %v830_v32, %v4776_v47  ;;  %v4805_v21 = vadd.f32 %v291_v4, %v4411_v52  ;;  %v424_v29 = vpop.f32.mrf.mxu1  ;;  %1711 = vmatmul.bf16.gmra.mxu3 %v4798_v0  ;;  %v3768_v30 = vpop.eup %3767  ;;  %v634_v4 = vmul.f32 0.5, %v4776_v47 }
 0x132   :  { %v929_v13 = vmul.f32 %v831_v62, %v4780_v1  ;;  %v4816_v37 = vadd.f32 %v424_v29, %v4413_v54  ;;  %v3770_v56 = vpop.eup %3769  ;;  %v1122_v38 = vadd.f32 1.0, %v3768_v30 }
 0x133   :  { %3771 = vtanh.f32 %v928_v20  ;;  %v538_v40 = vmul.f32 %v4805_v21, %v4805_v21  ;;  %3411 = vmatmul.msk.bf16.gmra.mxu0 %vm156_vm0, %v95_v17  ;;  %v1539_v41 = vpop.f32.mrf.mxu2  ;;  %v1123_v49 = vadd.f32 1.0, %v3770_v56 }
 0x134   :  { %3773 = vtanh.f32 %v929_v13  ;;  %v539_v44 = vmul.f32 %v4816_v37, %v4816_v37  ;;  %3436 = vmatmul.msk.bf16.gmra.mxu1 %vm156_vm0, %v95_v17  ;;  %v1540_v45 = vadd.f32 %v1539_v41, %v4801_v8  ;;  %v1672_v51 = vpop.f32.mrf.mxu3  ;;  %v66_v13 = vld [vmem:[%s6273_s0 + $0x130] sm:$0xff] }
 0x135   :  { %v734_v60 = vmul.f32 0.035677407, %v538_v40  ;;  %v1220_v40 = vmul.f32 %v1122_v38, %v632_v12  ;;  %v1221_v41 = vmul.f32 %v1123_v49, %v633_v36  ;;  %v96_v56 = vpack.c.bf16 %v67_v26, %v66_v13  ;;  %v69_v13 = vld [vmem:[%s6273_s0 + $0x148] sm:$0xff] }
 0x136   :  { %v735_v6 = vmul.f32 0.035677407, %v539_v44  ;;  %v4831_v7 = vadd.f32 %v1672_v51, %v1540_v45 }
 0x137   :  { %v832_v9 = vadd.f32 0.7978846, %v734_v60 }
 0x138   :  { %v833_v23 = vadd.f32 0.7978846, %v735_v6  ;;  %v2062_v11 = vmul.f32 %v4831_v7, %v4831_v7  ;;  %v293_v61 = vpop.f32.mrf.mxu0 }
 0x139   :  { %v3772_v46 = vpop.eup %3771  ;;  %v930_v53 = vmul.f32 %v832_v9, %v4805_v21  ;;  %v4845_v59 = vadd.f32 %v293_v61, %v4411_v52  ;;  %v426_v14 = vpop.f32.mrf.mxu1 }
 0x13a   :  { %v3774_v32 = vpop.eup %3773  ;;  %v931_v17 = vmul.f32 %v833_v23, %v4816_v37  ;;  %v4849_v62 = vadd.f32 %v426_v14, %v4413_v54  ;;  %v1124_v20 = vadd.f32 1.0, %v3772_v46  ;;  %v2258_v18 = vmul.f32 0.035677407, %v2062_v11 }
 0x13b   :  { %v540_v28 = vmul.f32 %v4845_v59, %v4845_v59  ;;  %v1541_v29 = vpop.f32.mrf.mxu2  ;;  %v1125_v24 = vadd.f32 1.0, %v3774_v32  ;;  %3775 = vtanh.f32 %v930_v53 }
 0x13c   :  { %v541_v47 = vmul.f32 %v4849_v62, %v4849_v62  ;;  %v1542_v33 = vadd.f32 %v1541_v29, %v4801_v8  ;;  %v1674_v27 = vpop.f32.mrf.mxu3  ;;  %v1222_v1 = vmul.f32 %v1124_v20, %v634_v4  ;;  %3777 = vtanh.f32 %v931_v17 }
 0x13d   :  { %v736_v30 = vmul.f32 0.035677407, %v540_v28  ;;  %v1223_v44 = vmul.f32 %v1125_v24, %v635_v31  ;;  %v2356_v60 = vadd.f32 0.7978846, %v2258_v18  ;;  %v68_v24 = vld [vmem:[%s6273_s0 + $0x140] sm:$0xff] }
 0x13e   :  { %v737_v45 = vmul.f32 0.035677407, %v541_v47  ;;  %v4864_v51 = vadd.f32 %v1674_v27, %v1542_v33  ;;  %v4866_v6 = vpack.c.bf16 %v1222_v1, %v1220_v40  ;;  %v636_v27 = vmul.f32 0.5, %v4805_v21 }
 0x13f   :  { %v834_v63 = vadd.f32 0.7978846, %v736_v30  ;;  %v4868_v9 = vpack.c.bf16 %v1223_v44, %v1221_v41  ;;  %v2454_v53 = vmul.f32 %v2356_v60, %v4831_v7  ;;  %v637_v40 = vmul.f32 0.5, %v4816_v37 }
 0x140   :  { %v835_v23 = vadd.f32 0.7978846, %v737_v45  ;;  %v2064_v11 = vmul.f32 %v4864_v51, %v4864_v51  ;;  %v296_v61 = vpop.f32.mrf.mxu0  ;;  %1583 = vmatmul.bf16.gmra.mxu2 %v4866_v6  ;;  %v2160_v44 = vmul.f32 0.5, %v4831_v7  ;;  %v638_v37 = vmul.f32 0.5, %v4845_v59 }
 0x141   :  { %v932_v38 = vmul.f32 %v834_v63, %v4845_v59  ;;  %v4874_v49 = vadd.f32 %v296_v61, %v4411_v52  ;;  %v429_v10 = vpop.f32.mrf.mxu1  ;;  %1716 = vmatmul.bf16.gmra.mxu3 %v4868_v9  ;;  %v3776_v36 = vpop.eup %3775  ;;  %v97_v63 = vpack.c.bf16 %v69_v13, %v68_v24  ;;  %v639_v7 = vmul.f32 0.5, %v4849_v62 }
 0x142   :  { %v933_v19 = vmul.f32 %v835_v23, %v4849_v62  ;;  %v2260_v46 = vmul.f32 0.035677407, %v2064_v11  ;;  %v4880_v12 = vadd.f32 %v429_v10, %v4413_v54  ;;  %v3778_v17 = vpop.eup %3777  ;;  %v1126_v33 = vadd.f32 1.0, %v3776_v36 }
 0x143   :  { %3779 = vtanh.f32 %v932_v38  ;;  %v542_v14 = vmul.f32 %v4874_v49, %v4874_v49  ;;  %3412 = vmatmul.msk.bf16.gmra.mxu0 %vm156_vm0, %v96_v56  ;;  %v1544_v32 = vpop.f32.mrf.mxu2  ;;  %v1127_v30 = vadd.f32 1.0, %v3778_v17  ;;  %v2162_v62 = vmul.f32 0.5, %v4864_v51 }
 0x144   :  { %3781 = vtanh.f32 %v933_v19  ;;  %v2358_v4 = vadd.f32 0.7978846, %v2260_v46  ;;  %v543_v20 = vmul.f32 %v4880_v12, %v4880_v12  ;;  %3437 = vmatmul.msk.bf16.gmra.mxu1 %vm156_vm0, %v96_v56  ;;  %v1677_v18 = vpop.f32.mrf.mxu3  ;;  %v1545_v29 = vadd.f32 %v1544_v32, %v4801_v8 }
 0x145   :  { %v738_v28 = vmul.f32 0.035677407, %v542_v14  ;;  %3783 = vtanh.f32 %v2454_v53  ;;  %v1224_v19 = vmul.f32 %v1126_v33, %v636_v27  ;;  %v1225_v17 = vmul.f32 %v1127_v30, %v637_v40 }
 0x146   :  { %v2456_v31 = vmul.f32 %v2358_v4, %v4864_v51  ;;  %v739_v26 = vmul.f32 0.035677407, %v543_v20  ;;  %v4897_v47 = vadd.f32 %v1677_v18, %v1545_v29 }
 0x147   :  { %v836_v45 = vadd.f32 0.7978846, %v738_v28 }
 0x148   :  { %3785 = vtanh.f32 %v2456_v31  ;;  %v298_v41 = vpop.f32.mrf.mxu0  ;;  %v2066_v56 = vmul.f32 %v4897_v47, %v4897_v47  ;;  %v837_v38 = vadd.f32 0.7978846, %v739_v26 }
 0x149   :  { %v3780_v1 = vpop.eup %3779  ;;  %v431_v60 = vpop.f32.mrf.mxu1  ;;  %v4905_v11 = vadd.f32 %v298_v41, %v4411_v52  ;;  %v934_v59 = vmul.f32 %v836_v45, %v4874_v49 }
 0x14a   :  { %v3782_v23 = vpop.eup %3781  ;;  %v4908_v21 = vadd.f32 %v431_v60, %v4413_v54  ;;  %v1128_v61 = vadd.f32 1.0, %v3780_v1  ;;  %v2262_v20 = vmul.f32 0.035677407, %v2066_v56  ;;  %v935_v33 = vmul.f32 %v837_v38, %v4880_v12 }
 0x14b   :  { %v1546_v10 = vpop.f32.mrf.mxu2  ;;  %v1129_v46 = vadd.f32 1.0, %v3782_v23  ;;  %v544_v36 = vmul.f32 %v4905_v11, %v4905_v11  ;;  %v3784_v4 = vpop.eup %3783  ;;  %3787 = vtanh.f32 %v934_v59 }
 0x14c   :  { %v545_v53 = vmul.f32 %v4908_v21, %v4908_v21  ;;  %v1547_v14 = vadd.f32 %v1546_v10, %v4801_v8  ;;  %v1679_v32 = vpop.f32.mrf.mxu3  ;;  %v1226_v18 = vmul.f32 %v1128_v61, %v638_v37  ;;  %v2650_v40 = vadd.f32 1.0, %v3784_v4 }
 0x14d   :  { %v1227_v28 = vmul.f32 %v1129_v46, %v639_v7  ;;  %v740_v31 = vmul.f32 0.035677407, %v544_v36  ;;  %v2360_v51 = vadd.f32 0.7978846, %v2262_v20  ;;  %3789 = vtanh.f32 %v935_v33 }
 0x14e   :  { %v3786_v29 = vpop.eup %3785  ;;  %v741_v24 = vmul.f32 0.035677407, %v545_v53  ;;  %v4919_v13 = vadd.f32 %v1679_v32, %v1547_v14  ;;  %v4922_v27 = vpack.c.bf16 %v1226_v18, %v1224_v19  ;;  %v4943_v36 = vmul.f32 %v2650_v40, %v2160_v44 }
 0x14f   :  { %v2652_v26 = vadd.f32 1.0, %v3786_v29  ;;  %v4924_v41 = vpack.c.bf16 %v1227_v28, %v1225_v17  ;;  %v838_v30 = vadd.f32 0.7978846, %v740_v31  ;;  %v2458_v59 = vmul.f32 %v2360_v51, %v4897_v47 }
 0x150   :  { %6314 = vst [vmem:[#allocation5_spill] sm:$0xff] %v4922_v27  ;;  %v839_v1 = vadd.f32 0.7978846, %v741_v24  ;;  %v2068_v45 = vmul.f32 %v4919_v13, %v4919_v13  ;;  %v301_v56 = vpop.f32.mrf.mxu0  ;;  %1588 = vmatmul.bf16.gmra.mxu2 %v4922_v27  ;;  %v640_v31 = vmul.f32 0.5, %v4874_v49  ;;  %v641_v33 = vmul.f32 0.5, %v4880_v12 }
 0x151   :  { %6315 = vst [vmem:[#allocation6_spill] sm:$0xff] %v4924_v41  ;;  %v4928_v60 = vmul.f32 %v2652_v26, %v2162_v62  ;;  %v4931_v23 = vadd.f32 %v301_v56, %v4411_v52  ;;  %v434_v37 = vpop.f32.mrf.mxu1  ;;  %1721 = vmatmul.bf16.gmra.mxu3 %v4924_v41  ;;  %v936_v61 = vmul.f32 %v838_v30, %v4905_v11  ;;  %v3788_v44 = vpop.eup %3787  ;;  %v71_v62 = vld [vmem:[%s6273_s0 + $0x158] sm:$0xff] }
 0x152   :  { %v937_v38 = vmul.f32 %v839_v1, %v4908_v21  ;;  %v2264_v10 = vmul.f32 0.035677407, %v2068_v45  ;;  %v4938_v19 = vadd.f32 %v434_v37, %v4413_v54  ;;  %6316 = vst [vmem:[#allocation7_spill] sm:$0xff] %v4943_v36 }
 0x153   :  { %v546_v7 = vmul.f32 %v4931_v23, %v4931_v23  ;;  %3413 = vmatmul.msk.bf16.gmra.mxu0 %vm156_vm0, %v97_v63  ;;  %v1549_v46 = vpop.f32.mrf.mxu2  ;;  %3791 = vtanh.f32 %v936_v61  ;;  %v3790_v26 = vpop.eup %3789 }
 0x154   :  { %v547_v53 = vmul.f32 %v4938_v19, %v4938_v19  ;;  %3438 = vmatmul.msk.bf16.gmra.mxu1 %vm156_vm0, %v97_v63  ;;  %v1682_v14 = vpop.f32.mrf.mxu3  ;;  %3793 = vtanh.f32 %v937_v38  ;;  %v2362_v32 = vadd.f32 0.7978846, %v2264_v10  ;;  %v1550_v4 = vadd.f32 %v1549_v46, %v4801_v8  ;;  %v70_v63 = vld [vmem:[%s6273_s0 + $0x150] sm:$0xff] }
 0x155   :  { %v742_v17 = vmul.f32 0.035677407, %v546_v7  ;;  %3795 = vtanh.f32 %v2458_v59  ;;  %v98_v49 = vpack.c.bf16 %v71_v62, %v70_v63  ;;  %v642_v7 = vmul.f32 0.5, %v4905_v11 }
 0x156   :  { %v743_v20 = vmul.f32 0.035677407, %v547_v53  ;;  %v4952_v29 = vadd.f32 %v1682_v14, %v1550_v4  ;;  %v2460_v40 = vmul.f32 %v2362_v32, %v4919_v13  ;;  %v1130_v46 = vadd.f32 1.0, %v3788_v44 }
 0x157   :  { %v840_v28 = vadd.f32 0.7978846, %v742_v17  ;;  %v643_v4 = vmul.f32 0.5, %v4908_v21  ;;  %v1131_v11 = vadd.f32 1.0, %v3790_v26 }
 0x158   :  { %v303_v24 = vpop.f32.mrf.mxu0  ;;  %v2070_v30 = vmul.f32 %v4952_v29, %v4952_v29  ;;  %v841_v51 = vadd.f32 0.7978846, %v743_v20  ;;  %3797 = vtanh.f32 %v2460_v40 }
 0x159   :  { %v4966_v1 = vadd.f32 %v303_v24, %v4411_v52  ;;  %v436_v45 = vpop.f32.mrf.mxu1  ;;  %v3792_v56 = vpop.eup %3791  ;;  %v938_v38 = vmul.f32 %v840_v28, %v4931_v23 }
 0x15a   :  { %v4969_v37 = vadd.f32 %v436_v45, %v4413_v54  ;;  %v3794_v61 = vpop.eup %3793  ;;  %v2266_v53 = vmul.f32 0.035677407, %v2070_v30  ;;  %v1132_v20 = vadd.f32 1.0, %v3792_v56  ;;  %v939_v63 = vmul.f32 %v841_v51, %v4938_v19 }
 0x15b   :  { %v548_v12 = vmul.f32 %v4966_v1, %v4966_v1  ;;  %v1551_v10 = vpop.f32.mrf.mxu2  ;;  %v1133_v28 = vadd.f32 1.0, %v3794_v61  ;;  %3799 = vtanh.f32 %v938_v38  ;;  %v1228_v30 = vmul.f32 %v1130_v46, %v640_v31  ;;  %v3796_v18 = vpop.eup %3795 }
 0x15c   :  { %v549_v14 = vmul.f32 %v4969_v37, %v4969_v37  ;;  %v1552_v32 = vadd.f32 %v1551_v10, %v4801_v8  ;;  %v1684_v17 = vpop.f32.mrf.mxu3  ;;  %v1230_v45 = vmul.f32 %v1132_v20, %v642_v7  ;;  %v2164_v10 = vmul.f32 0.5, %v4897_v47 }
 0x15d   :  { %v744_v59 = vmul.f32 0.035677407, %v548_v12  ;;  %v2364_v41 = vadd.f32 0.7978846, %v2266_v53  ;;  %v1231_v38 = vmul.f32 %v1133_v28, %v643_v4  ;;  %3801 = vtanh.f32 %v939_v63 }
 0x15e   :  { %v745_v62 = vmul.f32 0.035677407, %v549_v14  ;;  %v4980_v24 = vadd.f32 %v1684_v17, %v1552_v32  ;;  %v4989_v26 = vpack.c.bf16 %v1230_v45, %v1228_v30  ;;  %v3798_v7 = vpop.eup %3797  ;;  %v2654_v46 = vadd.f32 1.0, %v3796_v18  ;;  %v3447_v17 = vld [vmem:[%s6276_s3 + $0x8] sm:$0xf0] }
 0x15f   :  { %v842_v44 = vadd.f32 0.7978846, %v744_v59  ;;  %v1229_v14 = vmul.f32 %v1131_v11, %v641_v33  ;;  %v2462_v18 = vmul.f32 %v2364_v41, %v4952_v29  ;;  %v2166_v28 = vmul.f32 0.5, %v4919_v13 }
 0x160   :  { %v843_v27 = vadd.f32 0.7978846, %v745_v62  ;;  %v2072_v21 = vmul.f32 %v4980_v24, %v4980_v24  ;;  %v306_v40 = vpop.f32.mrf.mxu0  ;;  %6317 = vst [vmem:[#allocation8_spill] sm:$0xff] %v4989_v26  ;;  %1593 = vmatmul.bf16.gmra.mxu2 %v4989_v26  ;;  %v2656_v45 = vadd.f32 1.0, %v3798_v7 }
 0x161   :  { %v940_v56 = vmul.f32 %v842_v44, %v4966_v1  ;;  %v4987_v51 = vadd.f32 %v306_v40, %v4411_v52  ;;  %v439_v61 = vpop.f32.mrf.mxu1  ;;  %v3800_v20 = vpop.eup %3799  ;;  %v5010_v62 = vpack.c.bf16 %v1231_v38, %v1229_v14  ;;  %v5016_v40 = vmul.f32 0.5, %v4938_v19 }
 0x162   :  { %v941_v31 = vmul.f32 %v843_v27, %v4969_v37  ;;  %v2268_v12 = vmul.f32 0.035677407, %v2072_v21  ;;  %v4993_v47 = vadd.f32 %v439_v61, %v4413_v54  ;;  %v3643_v27 = vld [vmem:[%s6276_s3 + $0x4] sm:$0xf]  ;;  %v644_v21 = vmul.f32 0.5, %v4931_v23  ;;  %v3678_v23 = vld [vmem:[%s6278_s5 + $0x18] sm:$0xff] }
 0x163   :  { %3803 = vtanh.f32 %v940_v56  ;;  %v550_v53 = vmul.f32 %v4987_v51, %v4987_v51  ;;  %3414 = vmatmul.msk.bf16.gmra.mxu0 %vm156_vm0, %v98_v49  ;;  %v1554_v32 = vpop.f32.mrf.mxu2  ;;  %6318 = vst [vmem:[#allocation9_spill] sm:$0xff] %v5010_v62  ;;  %v3450_v41 = vor.u32 %v3643_v27, %v3447_v17  ;;  %1726 = vmatmul.bf16.gmra.mxu3 %v5010_v62  ;;  %v3802_v13 = vpop.eup %3801  ;;  %v1134_v61 = vadd.f32 1.0, %v3800_v20  ;;  %v3511_v27 = vld [vmem:[%s6276_s3 + $0x88] sm:$0xf0]  ;;  %v3686_v17 = vld [vmem:[%s6278_s5 + $0x58] sm:$0xff] }
 0x164   :  { %3805 = vtanh.f32 %v941_v31  ;;  %v2366_v4 = vadd.f32 0.7978846, %v2268_v12  ;;  %v551_v59 = vmul.f32 %v4993_v47, %v4993_v47  ;;  %3439 = vmatmul.msk.bf16.gmra.mxu1 %vm156_vm0, %v98_v49  ;;  %v1687_v33 = vpop.f32.mrf.mxu3  ;;  %v1555_v11 = vadd.f32 %v1554_v32, %v4801_v8  ;;  %v3659_v12 = vld [vmem:[%s6276_s3 + $0x84] sm:$0xf]  ;;  %3032 = vmatpush.bf16.msrb.mxu2 %v3678_v23 }
 0x165   :  { %v746_v63 = vmul.f32 0.035677407, %v550_v53  ;;  %3807 = vtanh.f32 %v2462_v18  ;;  %v646_v38 = vmul.f32 0.5, %v4966_v1  ;;  %1803 = vmatpush.bf16.msrb.mxu0 %v3450_v41  ;;  %v5028_v19 = vmul.f32 %v2654_v46, %v2164_v10  ;;  %v73_v41 = vld [vmem:[%s6273_s0 + $0x168] sm:$0xff]  ;;  %3165 = vmatpush.bf16.msrb.mxu3 %v3686_v17 }
 0x166   :  { %v2464_v44 = vmul.f32 %v2366_v4, %v4980_v24  ;;  %v747_v30 = vmul.f32 0.035677407, %v551_v59  ;;  %v5019_v56 = vadd.f32 %v1687_v33, %v1555_v11  ;;  %v3514_v4 = vor.u32 %v3659_v12, %v3511_v27 }
 0x167   :  { %v844_v49 = vadd.f32 0.7978846, %v746_v63  ;;  %6319 = vst [vmem:[#allocation10_spill] sm:$0xff] %v5028_v19  ;;  %v5044_v59 = vmul.f32 %v2656_v45, %v2166_v28  ;;  %v1135_v33 = vadd.f32 1.0, %v3802_v13  ;;  %v647_v20 = vmul.f32 0.5, %v4969_v37 }
 0x168   :  { %v308_v31 = vpop.f32.mrf.mxu0  ;;  %3809 = vtanh.f32 %v2464_v44  ;;  %v845_v53 = vadd.f32 0.7978846, %v747_v30  ;;  %v2074_v14 = vmul.f32 %v5019_v56, %v5019_v56  ;;  %v72_v30 = vld [vmem:[%s6273_s0 + $0x160] sm:$0xff]  ;;  %v1232_v13 = vmul.f32 %v1134_v61, %v644_v21  ;;  %1936 = vmatpush.bf16.msrb.mxu1 %v3514_v4 }
 0x169   :  { %v3804_v7 = vpop.eup %3803  ;;  %v5033_v1 = vadd.f32 %v308_v31, %v4411_v52  ;;  %v441_v32 = vpop.f32.mrf.mxu1  ;;  %v942_v63 = vmul.f32 %v844_v49, %v4987_v51  ;;  %v99_v26 = vpack.c.bf16 %v73_v41, %v72_v30  ;;  %v2170_v61 = vmul.f32 0.5, %v4980_v24 }
 0x16a   :  { %v3806_v10 = vpop.eup %3805  ;;  %v5042_v46 = vadd.f32 %v441_v32, %v4413_v54  ;;  %v1136_v18 = vadd.f32 1.0, %v3804_v7  ;;  %v2270_v28 = vmul.f32 0.035677407, %v2074_v14  ;;  %v943_v31 = vmul.f32 %v845_v53, %v4993_v47 }
 0x16b   :  { %v552_v11 = vmul.f32 %v5033_v1, %v5033_v1  ;;  %v1556_v44 = vpop.f32.mrf.mxu2  ;;  %v1137_v7 = vadd.f32 1.0, %v3806_v10  ;;  %v3808_v32 = vpop.eup %3807  ;;  %3811 = vtanh.f32 %v942_v63  ;;  %v1233_v63 = vmul.f32 %v1135_v33, %v5016_v40 }
 0x16c   :  { %v553_v45 = vmul.f32 %v5042_v46, %v5042_v46  ;;  %v1557_v37 = vadd.f32 %v1556_v44, %v4801_v8  ;;  %v1689_v49 = vpop.f32.mrf.mxu3  ;;  %v1234_v23 = vmul.f32 %v1136_v18, %v646_v38  ;;  %v2368_v53 = vadd.f32 0.7978846, %v2270_v28 }
 0x16d   :  { %v748_v12 = vmul.f32 0.035677407, %v552_v11  ;;  %v1235_v21 = vmul.f32 %v1137_v7, %v647_v20  ;;  %3813 = vtanh.f32 %v943_v31 }
 0x16e   :  { %v749_v27 = vmul.f32 0.035677407, %v553_v45  ;;  %v5060_v62 = vadd.f32 %v1689_v49, %v1557_v37  ;;  %v3810_v17 = vpop.eup %3809  ;;  %v5064_v44 = vpack.c.bf16 %v1234_v23, %v1232_v13  ;;  %v2658_v45 = vadd.f32 1.0, %v3808_v32 }
 0x16f   :  { %v846_v36 = vadd.f32 0.7978846, %v748_v12  ;;  %v2660_v28 = vadd.f32 1.0, %v3810_v17  ;;  %v2466_v40 = vmul.f32 %v2368_v53, %v5019_v56  ;;  %v2168_v32 = vmul.f32 0.5, %v4952_v29 }
 0x170   :  { %6320 = vst [vmem:[#allocation11_spill] sm:$0xff] %v5064_v44  ;;  %v847_v4 = vadd.f32 0.7978846, %v749_v27  ;;  %v2076_v38 = vmul.f32 %v5060_v62, %v5060_v62  ;;  %v311_v10 = vpop.f32.mrf.mxu0  ;;  %1598 = vmatmul.bf16.gmra.mxu2 %v5064_v44 }
 0x171   :  { %v944_v18 = vmul.f32 %v846_v36, %v5033_v1  ;;  %v5071_v11 = vadd.f32 %v311_v10, %v4411_v52  ;;  %v444_v30 = vpop.f32.mrf.mxu1  ;;  %v5081_v36 = vpack.c.bf16 %v1235_v21, %v1233_v63  ;;  %v3812_v12 = vpop.eup %3811  ;;  %v5091_v21 = vmul.f32 %v2660_v28, %v2170_v61 }
 0x172   :  { %v945_v41 = vmul.f32 %v847_v4, %v5042_v46  ;;  %v2272_v20 = vmul.f32 0.035677407, %v2076_v38  ;;  %v5076_v24 = vadd.f32 %v444_v30, %v4413_v54  ;;  %v648_v4 = vmul.f32 0.5, %v4987_v51 }
 0x173   :  { %3815 = vtanh.f32 %v944_v18  ;;  %v554_v37 = vmul.f32 %v5071_v11, %v5071_v11  ;;  %6321 = vst [vmem:[#allocation12_spill] sm:$0xff] %v5081_v36  ;;  %3415 = vmatmul.msk.bf16.gmra.mxu0 %vm156_vm0, %v99_v26  ;;  %v1559_v49 = vpop.f32.mrf.mxu2  ;;  %v3814_v53 = vpop.eup %3813  ;;  %1731 = vmatmul.bf16.gmra.mxu3 %v5081_v36  ;;  %v649_v18 = vmul.f32 0.5, %v4993_v47  ;;  %v5098_v63 = vmul.f32 %v2658_v45, %v2168_v32 }
 0x174   :  { %3817 = vtanh.f32 %v945_v41  ;;  %v2370_v33 = vadd.f32 0.7978846, %v2272_v20  ;;  %v555_v13 = vmul.f32 %v5076_v24, %v5076_v24  ;;  %3440 = vmatmul.msk.bf16.gmra.mxu1 %vm156_vm0, %v99_v26  ;;  %v1692_v31 = vpop.f32.mrf.mxu3  ;;  %v1560_v7 = vadd.f32 %v1559_v49, %v4801_v8  ;;  %6322 = vst [vmem:[#allocation13_spill] sm:$0xff] %v5091_v21 }
 0x175   :  { %v750_v23 = vmul.f32 0.035677407, %v554_v37  ;;  %v1138_v26 = vadd.f32 1.0, %v3812_v12  ;;  %3819 = vtanh.f32 %v2466_v40  ;;  %6323 = vst [vmem:[#allocation14_spill] sm:$0xff] %v5098_v63  ;;  %v650_v37 = vmul.f32 0.5, %v5033_v1  ;;  %v74_v1 = vld [vmem:[%s6273_s0 + $0x170] sm:$0xff] }
 0x176   :  { %v2468_v27 = vmul.f32 %v2370_v33, %v5060_v62  ;;  %v751_v17 = vmul.f32 0.035677407, %v555_v13  ;;  %v5095_v10 = vadd.f32 %v1692_v31, %v1560_v7  ;;  %v1139_v40 = vadd.f32 1.0, %v3814_v53 }
 0x177   :  { %v848_v38 = vadd.f32 0.7978846, %v750_v23  ;;  %v651_v33 = vmul.f32 0.5, %v5042_v46  ;;  %v75_v23 = vld [vmem:[%s6273_s0 + $0x178] sm:$0xff]  ;;  %v2172_v45 = vmul.f32 0.5, %v5019_v56 }
 0x178   :  { %v313_v30 = vpop.f32.mrf.mxu0  ;;  %3821 = vtanh.f32 %v2468_v27  ;;  %v849_v41 = vadd.f32 0.7978846, %v751_v17  ;;  %v2078_v61 = vmul.f32 %v5095_v10, %v5095_v10  ;;  %v1236_v17 = vmul.f32 %v1138_v26, %v648_v4 }
 0x179   :  { %v3816_v29 = vpop.eup %3815  ;;  %v5103_v51 = vadd.f32 %v313_v30, %v4411_v52  ;;  %v446_v20 = vpop.f32.mrf.mxu1  ;;  %v946_v13 = vmul.f32 %v848_v38, %v5071_v11  ;;  %v100_v44 = vpack.c.bf16 %v75_v23, %v74_v1  ;;  %v2174_v23 = vmul.f32 0.5, %v5060_v62 }
 0x17a   :  { %v3818_v28 = vpop.eup %3817  ;;  %v5107_v49 = vadd.f32 %v446_v20, %v4413_v54  ;;  %v1140_v47 = vadd.f32 1.0, %v3816_v29  ;;  %v2274_v7 = vmul.f32 0.035677407, %v2078_v61  ;;  %v947_v53 = vmul.f32 %v849_v41, %v5076_v24 }
 0x17b   :  { %v556_v31 = vmul.f32 %v5103_v51, %v5103_v51  ;;  %v1561_v12 = vpop.f32.mrf.mxu2  ;;  %v1141_v29 = vadd.f32 1.0, %v3818_v28  ;;  %v3820_v20 = vpop.eup %3819  ;;  %3823 = vtanh.f32 %v946_v13  ;;  %v1237_v28 = vmul.f32 %v1139_v40, %v649_v18 }
 0x17c   :  { %v557_v32 = vmul.f32 %v5107_v49, %v5107_v49  ;;  %v1562_v46 = vadd.f32 %v1561_v12, %v4801_v8  ;;  %v1694_v27 = vpop.f32.mrf.mxu3  ;;  %v1238_v30 = vmul.f32 %v1140_v47, %v650_v37  ;;  %v2372_v19 = vadd.f32 0.7978846, %v2274_v7 }
 0x17d   :  { %v752_v38 = vmul.f32 0.035677407, %v556_v31  ;;  %v1239_v12 = vmul.f32 %v1141_v29, %v651_v33  ;;  %v2662_v37 = vadd.f32 1.0, %v3820_v20  ;;  %3825 = vtanh.f32 %v947_v53 }
 0x17e   :  { %v753_v14 = vmul.f32 0.035677407, %v557_v32  ;;  %v5126_v36 = vadd.f32 %v1694_v27, %v1562_v46  ;;  %v3822_v61 = vpop.eup %3821  ;;  %v5128_v21 = vpack.c.bf16 %v1238_v30, %v1236_v17  ;;  %v2470_v7 = vmul.f32 %v2372_v19, %v5095_v10 }
 0x17f   :  { %v850_v63 = vadd.f32 0.7978846, %v752_v38  ;;  %v5153_v29 = vmul.f32 %v2662_v37, %v2172_v45 }
 0x180   :  { %6324 = vst [vmem:[#allocation15_spill] sm:$0xff] %v5128_v21  ;;  %v851_v4 = vadd.f32 0.7978846, %v753_v14  ;;  %v2080_v26 = vmul.f32 %v5126_v36, %v5126_v36  ;;  %v316_v41 = vpop.f32.mrf.mxu0  ;;  %v2664_v14 = vadd.f32 1.0, %v3822_v61  ;;  %1603 = vmatmul.bf16.gmra.mxu2 %v5128_v21 }
 0x181   :  { %v948_v56 = vmul.f32 %v850_v63, %v5103_v51  ;;  %v5134_v47 = vadd.f32 %v316_v41, %v4411_v52  ;;  %v449_v31 = vpop.f32.mrf.mxu1  ;;  %v5144_v63 = vpack.c.bf16 %v1239_v12, %v1237_v28  ;;  %v3824_v27 = vpop.eup %3823  ;;  %6326 = vst [vmem:[#allocation17_spill] sm:$0xff] %v5153_v29 }
 0x182   :  { %v949_v13 = vmul.f32 %v851_v4, %v5107_v49  ;;  %v2276_v1 = vmul.f32 0.035677407, %v2080_v26  ;;  %v5138_v33 = vadd.f32 %v449_v31, %v4413_v54  ;;  %v5155_v20 = vmul.f32 %v2664_v14, %v2174_v23 }
 0x183   :  { %3827 = vtanh.f32 %v948_v56  ;;  %v558_v18 = vmul.f32 %v5134_v47, %v5134_v47  ;;  %6325 = vst [vmem:[#allocation16_spill] sm:$0xff] %v5144_v63  ;;  %3416 = vmatmul.msk.bf16.gmra.mxu0 %vm156_vm0, %v100_v44  ;;  %v1564_v40 = vpop.f32.mrf.mxu2  ;;  %v3826_v19 = vpop.eup %3825  ;;  %1736 = vmatmul.bf16.gmra.mxu3 %v5144_v63  ;;  %v1142_v4 = vadd.f32 1.0, %v3824_v27 }
 0x184   :  { %3829 = vtanh.f32 %v949_v13  ;;  %v2374_v32 = vadd.f32 0.7978846, %v2276_v1  ;;  %v559_v46 = vmul.f32 %v5138_v33, %v5138_v33  ;;  %3441 = vmatmul.msk.bf16.gmra.mxu1 %vm156_vm0, %v100_v44  ;;  %v1697_v62 = vpop.f32.mrf.mxu3  ;;  %v1565_v53 = vadd.f32 %v1564_v40, %v4801_v8 }
 0x185   :  { %v754_v17 = vmul.f32 0.035677407, %v558_v18  ;;  %v652_v44 = vmul.f32 0.5, %v5071_v11  ;;  %3831 = vtanh.f32 %v2470_v7  ;;  %v653_v1 = vmul.f32 0.5, %v5076_v24 }
 0x186   :  { %v2472_v38 = vmul.f32 %v2374_v32, %v5126_v36  ;;  %v755_v30 = vmul.f32 0.035677407, %v559_v46  ;;  %v5158_v12 = vadd.f32 %v1697_v62, %v1565_v53  ;;  %v654_v11 = vmul.f32 0.5, %v5103_v51  ;;  %v76_v62 = vld [vmem:[%s6273_s0 + $0x180] sm:$0xff] }
 0x187   :  { %v852_v61 = vadd.f32 0.7978846, %v754_v17  ;;  %v1143_v18 = vadd.f32 1.0, %v3826_v19  ;;  %v655_v40 = vmul.f32 0.5, %v5107_v49  ;;  %v1240_v53 = vmul.f32 %v1142_v4, %v652_v44 }
 0x188   :  { %v318_v26 = vpop.f32.mrf.mxu0  ;;  %3833 = vtanh.f32 %v2472_v38  ;;  %v853_v45 = vadd.f32 0.7978846, %v755_v30  ;;  %v2082_v37 = vmul.f32 %v5158_v12, %v5158_v12  ;;  %v101_v41 = vpack.c.bf16 %v76_v62, %v76_v62 }
 0x189   :  { %v3828_v28 = vpop.eup %3827  ;;  %v5166_v56 = vadd.f32 %v318_v26, %v4411_v52  ;;  %v451_v31 = vpop.f32.mrf.mxu1  ;;  %v950_v7 = vmul.f32 %v852_v61, %v5134_v47  ;;  %v2176_v26 = vmul.f32 0.5, %v5095_v10 }
 0x18a   :  { %v3830_v13 = vpop.eup %3829  ;;  %v5171_v14 = vadd.f32 %v451_v31, %v4413_v54  ;;  %v1144_v23 = vadd.f32 1.0, %v3828_v28  ;;  %v2278_v24 = vmul.f32 0.035677407, %v2082_v37  ;;  %v951_v49 = vmul.f32 %v853_v45, %v5138_v33 }
 0x18b   :  { %v560_v32 = vmul.f32 %v5166_v56, %v5166_v56  ;;  %v1566_v46 = vpop.f32.mrf.mxu2  ;;  %v1145_v19 = vadd.f32 1.0, %v3830_v13  ;;  %v3832_v61 = vpop.eup %3831  ;;  %3835 = vtanh.f32 %v950_v7  ;;  %v1241_v13 = vmul.f32 %v1143_v18, %v653_v1 }
 0x18c   :  { %v561_v51 = vmul.f32 %v5171_v14, %v5171_v14  ;;  %v1567_v27 = vadd.f32 %v1566_v46, %v4801_v8  ;;  %v1699_v17 = vpop.f32.mrf.mxu3  ;;  %v1242_v30 = vmul.f32 %v1144_v23, %v654_v11  ;;  %v2376_v29 = vadd.f32 0.7978846, %v2278_v24 }
 0x18d   :  { %v756_v38 = vmul.f32 0.035677407, %v560_v32  ;;  %v1243_v46 = vmul.f32 %v1145_v19, %v655_v40  ;;  %v2666_v11 = vadd.f32 1.0, %v3832_v61  ;;  %3837 = vtanh.f32 %v951_v49 }
 0x18e   :  { %v757_v28 = vmul.f32 0.035677407, %v561_v51  ;;  %v5185_v31 = vadd.f32 %v1699_v17, %v1567_v27  ;;  %v3834_v37 = vpop.eup %3833  ;;  %v5187_v21 = vpack.c.bf16 %v1242_v30, %v1240_v53  ;;  %v2178_v51 = vmul.f32 0.5, %v5126_v36 }
 0x18f   :  { %v854_v63 = vadd.f32 0.7978846, %v756_v38  ;;  %v2668_v24 = vadd.f32 1.0, %v3834_v37  ;;  %v2474_v27 = vmul.f32 %v2376_v29, %v5158_v12 }
 0x190   :  { %6327 = vst [vmem:[#allocation18_spill] sm:$0xff] %v5187_v21  ;;  %v855_v44 = vadd.f32 0.7978846, %v757_v28  ;;  %v2084_v4 = vmul.f32 %v5185_v31, %v5185_v31  ;;  %v321_v45 = vpop.f32.mrf.mxu0  ;;  %1608 = vmatmul.bf16.gmra.mxu2 %v5187_v21  ;;  %v5212_v28 = vmul.f32 %v2666_v11, %v2176_v26  ;;  %v3685_v26 = vld [vmem:[%s6278_s5 + $0x50] sm:$0xff] }
 0x191   :  { %v952_v10 = vmul.f32 %v854_v63, %v5166_v56  ;;  %v5193_v23 = vadd.f32 %v321_v45, %v4411_v52  ;;  %v454_v32 = vpop.f32.mrf.mxu1  ;;  %v5203_v63 = vpack.c.bf16 %v1243_v46, %v1241_v13  ;;  %v3836_v49 = vpop.eup %3835  ;;  %v5214_v37 = vmul.f32 %v2668_v24, %v2178_v51  ;;  %v3677_v45 = vld [vmem:[%s6278_s5 + $0x10] sm:$0xff]  ;;  %3166 = vmatpush.bf16.msrb.mxu3 %v3685_v26 }
 0x192   :  { %v953_v7 = vmul.f32 %v855_v44, %v5171_v14  ;;  %v2280_v62 = vmul.f32 0.035677407, %v2084_v4  ;;  %v5197_v40 = vadd.f32 %v454_v32, %v4413_v54  ;;  %v1146_v4 = vadd.f32 1.0, %v3836_v49  ;;  %3033 = vmatpush.bf16.msrb.mxu2 %v3677_v45 }
 0x193   :  { %3839 = vtanh.f32 %v952_v10  ;;  %v562_v1 = vmul.f32 %v5193_v23, %v5193_v23  ;;  %6328 = vst [vmem:[#allocation19_spill] sm:$0xff] %v5203_v63  ;;  %3417 = vmatmul.msk.bf16.gmra.mxu0 %vm156_vm0, %v101_v41  ;;  %v1569_v18 = vpop.f32.mrf.mxu2  ;;  %v3838_v29 = vpop.eup %3837  ;;  %1741 = vmatmul.bf16.gmra.mxu3 %v5203_v63  ;;  %v656_v51 = vmul.f32 0.5, %v5134_v47 }
 0x194   :  { %3841 = vtanh.f32 %v953_v7  ;;  %v2378_v17 = vadd.f32 0.7978846, %v2280_v62  ;;  %v563_v53 = vmul.f32 %v5197_v40, %v5197_v40  ;;  %3442 = vmatmul.msk.bf16.gmra.mxu1 %vm156_vm0, %v101_v41  ;;  %v1702_v36 = vpop.f32.mrf.mxu3  ;;  %v1570_v30 = vadd.f32 %v1569_v18, %v4801_v8 }
 0x195   :  { %v758_v38 = vmul.f32 0.035677407, %v562_v1  ;;  %3843 = vtanh.f32 %v2474_v27  ;;  %v658_v1 = vmul.f32 0.5, %v5166_v56 }
 0x196   :  { %v2476_v19 = vmul.f32 %v2378_v17, %v5185_v31  ;;  %v759_v61 = vmul.f32 0.035677407, %v563_v53  ;;  %v5217_v44 = vadd.f32 %v1702_v36, %v1570_v30  ;;  %v1147_v17 = vadd.f32 1.0, %v3838_v29 }
 0x197   :  { %v856_v46 = vadd.f32 0.7978846, %v758_v38  ;;  %v659_v53 = vmul.f32 0.5, %v5171_v14 }
 0x198   :  { %v323_v41 = vpop.f32.mrf.mxu0  ;;  %3845 = vtanh.f32 %v2476_v19  ;;  %v857_v10 = vadd.f32 0.7978846, %v759_v61  ;;  %v2086_v32 = vmul.f32 %v5217_v44, %v5217_v44  ;;  %v1244_v61 = vmul.f32 %v1146_v4, %v656_v51 }
 0x199   :  { %v3840_v11 = vpop.eup %3839  ;;  %v5230_v7 = vadd.f32 %v323_v41, %v4411_v52  ;;  %v456_v62 = vpop.f32.mrf.mxu1  ;;  %v954_v36 = vmul.f32 %v856_v46, %v5193_v23  ;;  %v657_v46 = vmul.f32 0.5, %v5138_v33 }
 0x19a   :  { %v3842_v24 = vpop.eup %3841  ;;  %v5235_v18 = vadd.f32 %v456_v62, %v4413_v54  ;;  %v1148_v27 = vadd.f32 1.0, %v3840_v11  ;;  %v2282_v30 = vmul.f32 0.035677407, %v2086_v32  ;;  %v955_v41 = vmul.f32 %v857_v10, %v5197_v40 }
 0x19b   :  { %v564_v49 = vmul.f32 %v5230_v7, %v5230_v7  ;;  %v1571_v38 = vpop.f32.mrf.mxu2  ;;  %v1149_v26 = vadd.f32 1.0, %v3842_v24  ;;  %v3844_v14 = vpop.eup %3843  ;;  %v2180_v11 = vmul.f32 0.5, %v5158_v12  ;;  %3847 = vtanh.f32 %v954_v36 }
 0x19c   :  { %v565_v47 = vmul.f32 %v5235_v18, %v5235_v18  ;;  %v1572_v56 = vadd.f32 %v1571_v38, %v4801_v8  ;;  %v1704_v19 = vpop.f32.mrf.mxu3  ;;  %v1246_v29 = vmul.f32 %v1148_v27, %v658_v1  ;;  %v2380_v4 = vadd.f32 0.7978846, %v2282_v30 }
 0x19d   :  { %v760_v45 = vmul.f32 0.035677407, %v564_v49  ;;  %v1247_v38 = vmul.f32 %v1149_v26, %v659_v53  ;;  %v1245_v1 = vmul.f32 %v1147_v17, %v657_v46  ;;  %v2670_v27 = vadd.f32 1.0, %v3844_v14 }
 0x19e   :  { %v761_v62 = vmul.f32 0.035677407, %v565_v47  ;;  %v5247_v13 = vadd.f32 %v1704_v19, %v1572_v56  ;;  %v3846_v32 = vpop.eup %3845  ;;  %v5249_v21 = vpack.c.bf16 %v1246_v29, %v1244_v61  ;;  %3849 = vtanh.f32 %v955_v41 }
 0x19f   :  { %v858_v63 = vadd.f32 0.7978846, %v760_v45  ;;  %v2672_v30 = vadd.f32 1.0, %v3846_v32  ;;  %v2182_v56 = vmul.f32 0.5, %v5185_v31  ;;  %v2478_v61 = vmul.f32 %v2380_v4, %v5217_v44 }
 0x1a0   :  { %6329 = vst [vmem:[#allocation20_spill] sm:$0xff] %v5249_v21  ;;  %v859_v51 = vadd.f32 0.7978846, %v761_v62  ;;  %v2088_v10 = vmul.f32 %v5247_v13, %v5247_v13  ;;  %v326_v24 = vpop.f32.mrf.mxu0  ;;  %1613 = vmatmul.bf16.gmra.mxu2 %v5249_v21  ;;  %v5274_v32 = vmul.f32 %v2670_v27, %v2180_v11 }
 0x1a1   :  { %v956_v33 = vmul.f32 %v858_v63, %v5230_v7  ;;  %v5255_v12 = vadd.f32 %v326_v24, %v4411_v52  ;;  %v459_v49 = vpop.f32.mrf.mxu1  ;;  %v5265_v63 = vpack.c.bf16 %v1247_v38, %v1245_v1  ;;  %v3848_v31 = vpop.eup %3847 }
 0x1a2   :  { %v957_v36 = vmul.f32 %v859_v51, %v5235_v18  ;;  %v2284_v47 = vmul.f32 0.035677407, %v2088_v10  ;;  %v5259_v53 = vadd.f32 %v459_v49, %v4413_v54  ;;  %v1150_v10 = vadd.f32 1.0, %v3848_v31 }
 0x1a3   :  { %3851 = vtanh.f32 %v956_v33  ;;  %v566_v17 = vmul.f32 %v5255_v12, %v5255_v12  ;;  %6330 = vst [vmem:[#allocation21_spill] sm:$0xff] %v5265_v63  ;;  %v1574_v19 = vpop.f32.mrf.mxu2  ;;  %1804 = vmatmul.bf16.vlgmr.msrb.gmra.mxu0 %v4473_v3  ;;  %v5276_v3 = vmul.f32 %v2672_v30, %v2182_v56  ;;  %1746 = vmatmul.bf16.gmra.mxu3 %v5265_v63  ;;  %v662_v30 = vmul.f32 0.5, %v5230_v7 }
 0x1a4   :  { %3853 = vtanh.f32 %v957_v36  ;;  %v2382_v41 = vadd.f32 0.7978846, %v2284_v47  ;;  %v567_v45 = vmul.f32 %v5259_v53, %v5259_v53  ;;  %v1707_v29 = vpop.f32.mrf.mxu3  ;;  %1937 = vmatmul.bf16.vlgmr.msrb.gmra.mxu1 %v4475_v5  ;;  %v1575_v14 = vadd.f32 %v1574_v19, %v4801_v8  ;;  %v3850_v38 = vpop.eup %3849 }
 0x1a5   :  { %v762_v26 = vmul.f32 0.035677407, %v566_v17  ;;  %3855 = vtanh.f32 %v2478_v61  ;;  %v660_v47 = vmul.f32 0.5, %v5193_v23  ;;  %v1151_v19 = vadd.f32 1.0, %v3850_v38 }
 0x1a6   :  { %v2480_v46 = vmul.f32 %v2382_v41, %v5247_v13  ;;  %v763_v62 = vmul.f32 0.035677407, %v567_v45  ;;  %v5279_v51 = vadd.f32 %v1707_v29, %v1575_v14  ;;  %v663_v61 = vmul.f32 0.5, %v5235_v18 }
 0x1a7   :  { %v860_v4 = vadd.f32 0.7978846, %v762_v26  ;;  %v1248_v14 = vmul.f32 %v1150_v10, %v660_v47 }
 0x1a8   :  { %v328_v5 = vpop.f32.mrf.mxu0  ;;  %3857 = vtanh.f32 %v2480_v46  ;;  %v861_v33 = vadd.f32 0.7978846, %v763_v62  ;;  %v2090_v11 = vmul.f32 %v5279_v51, %v5279_v51 }
 0x1a9   :  { %v3852_v1 = vpop.eup %3851  ;;  %v5286_v27 = vadd.f32 %v328_v5, %v4411_v52  ;;  %v461_v49 = vpop.f32.mrf.mxu1  ;;  %v958_v41 = vmul.f32 %v860_v4, %v5255_v12  ;;  %v661_v4 = vmul.f32 0.5, %v5197_v40 }
 0x1aa   :  { %v3854_v36 = vpop.eup %3853  ;;  %v5291_v56 = vadd.f32 %v461_v49, %v4413_v54  ;;  %v1152_v17 = vadd.f32 1.0, %v3852_v1  ;;  %v2286_v31 = vmul.f32 0.035677407, %v2090_v11  ;;  %v959_v46 = vmul.f32 %v861_v33, %v5259_v53 }
 0x1ab   :  { %v568_v45 = vmul.f32 %v5286_v27, %v5286_v27  ;;  %v1576_v29 = vpop.f32.mrf.mxu2  ;;  %v1153_v5 = vadd.f32 1.0, %v3854_v36  ;;  %v3856_v18 = vpop.eup %3855  ;;  %v2184_v1 = vmul.f32 0.5, %v5217_v44  ;;  %3859 = vtanh.f32 %v958_v41 }
 0x1ac   :  { %v569_v26 = vmul.f32 %v5291_v56, %v5291_v56  ;;  %v1577_v23 = vadd.f32 %v1576_v29, %v4801_v8  ;;  %v1709_v7 = vpop.f32.mrf.mxu3  ;;  %v1250_v38 = vmul.f32 %v1152_v17, %v662_v30  ;;  %v2384_v10 = vadd.f32 0.7978846, %v2286_v31 }
 0x1ad   :  { %v764_v62 = vmul.f32 0.035677407, %v568_v45  ;;  %v1251_v29 = vmul.f32 %v1153_v5, %v663_v61  ;;  %v1249_v30 = vmul.f32 %v1151_v19, %v661_v4  ;;  %v2674_v17 = vadd.f32 1.0, %v3856_v18 }
 0x1ae   :  { %v765_v49 = vmul.f32 0.035677407, %v569_v26  ;;  %v5303_v24 = vadd.f32 %v1709_v7, %v1577_v23  ;;  %v3858_v11 = vpop.eup %3857  ;;  %v5305_v21 = vpack.c.bf16 %v1250_v38, %v1248_v14  ;;  %3861 = vtanh.f32 %v959_v46 }
 0x1af   :  { %v862_v63 = vadd.f32 0.7978846, %v764_v62  ;;  %v2676_v31 = vadd.f32 1.0, %v3858_v11  ;;  %v2186_v23 = vmul.f32 0.5, %v5247_v13  ;;  %v2482_v14 = vmul.f32 %v2384_v10, %v5279_v51 }
 0x1b0   :  { %6331 = vst [vmem:[#allocation22_spill] sm:$0xff] %v5305_v21  ;;  %v863_v47 = vadd.f32 0.7978846, %v765_v49  ;;  %v2092_v33 = vmul.f32 %v5303_v24, %v5303_v24  ;;  %v331_v36 = vpop.f32.mrf.mxu0  ;;  %1618 = vmatmul.bf16.gmra.mxu2 %v5305_v21  ;;  %v5330_v11 = vmul.f32 %v2674_v17, %v2184_v1 }
 0x1b1   :  { %v960_v40 = vmul.f32 %v862_v63, %v5286_v27  ;;  %v5311_v44 = vadd.f32 %v331_v36, %v4411_v52  ;;  %v464_v45 = vpop.f32.mrf.mxu1  ;;  %v5321_v63 = vpack.c.bf16 %v1251_v29, %v1249_v30  ;;  %v3860_v13 = vpop.eup %3859 }
 0x1b2   :  { %v961_v41 = vmul.f32 %v863_v47, %v5291_v56  ;;  %v2288_v26 = vmul.f32 0.035677407, %v2092_v33  ;;  %v5315_v61 = vadd.f32 %v464_v45, %v4413_v54  ;;  %v1154_v33 = vadd.f32 1.0, %v3860_v13 }
 0x1b3   :  { %3863 = vtanh.f32 %v960_v40  ;;  %v570_v19 = vmul.f32 %v5311_v44, %v5311_v44  ;;  %6332 = vst [vmem:[#allocation23_spill] sm:$0xff] %v5321_v63  ;;  %v1579_v7 = vpop.f32.mrf.mxu2  ;;  %1809 = vmatmul.bf16.gmra.mxu0 %v4511_v48  ;;  %v5332_v48 = vmul.f32 %v2676_v31, %v2186_v23  ;;  %1751 = vmatmul.bf16.gmra.mxu3 %v5321_v63  ;;  %v666_v31 = vmul.f32 0.5, %v5286_v27 }
 0x1b4   :  { %3865 = vtanh.f32 %v961_v41  ;;  %v2386_v46 = vadd.f32 0.7978846, %v2288_v26  ;;  %v571_v62 = vmul.f32 %v5315_v61, %v5315_v61  ;;  %v1712_v38 = vpop.f32.mrf.mxu3  ;;  %1942 = vmatmul.bf16.gmra.mxu1 %v4513_v50  ;;  %v1580_v18 = vadd.f32 %v1579_v7, %v4801_v8  ;;  %v3862_v29 = vpop.eup %3861 }
 0x1b5   :  { %v766_v5 = vmul.f32 0.035677407, %v570_v19  ;;  %3867 = vtanh.f32 %v2482_v14  ;;  %v664_v26 = vmul.f32 0.5, %v5255_v12  ;;  %v1155_v7 = vadd.f32 1.0, %v3862_v29 }
 0x1b6   :  { %v2484_v4 = vmul.f32 %v2386_v46, %v5303_v24  ;;  %v767_v49 = vmul.f32 0.035677407, %v571_v62  ;;  %v5335_v47 = vadd.f32 %v1712_v38, %v1580_v18  ;;  %v667_v14 = vmul.f32 0.5, %v5291_v56 }
 0x1b7   :  { %v864_v10 = vadd.f32 0.7978846, %v766_v5  ;;  %v1252_v18 = vmul.f32 %v1154_v33, %v664_v26 }
 0x1b8   :  { %v333_v50 = vpop.f32.mrf.mxu0  ;;  %3869 = vtanh.f32 %v2484_v4  ;;  %v865_v40 = vadd.f32 0.7978846, %v767_v49  ;;  %v2094_v1 = vmul.f32 %v5335_v47, %v5335_v47 }
 0x1b9   :  { %v3864_v30 = vpop.eup %3863  ;;  %v5342_v17 = vadd.f32 %v333_v50, %v4411_v52  ;;  %v466_v45 = vpop.f32.mrf.mxu1  ;;  %v962_v46 = vmul.f32 %v864_v10, %v5311_v44  ;;  %v665_v10 = vmul.f32 0.5, %v5259_v53 }
 0x1ba   :  { %v3866_v41 = vpop.eup %3865  ;;  %v5347_v23 = vadd.f32 %v466_v45, %v4413_v54  ;;  %v1156_v19 = vadd.f32 1.0, %v3864_v30  ;;  %v2290_v13 = vmul.f32 0.035677407, %v2094_v1  ;;  %v963_v4 = vmul.f32 %v865_v40, %v5315_v61 }
 0x1bb   :  { %v572_v62 = vmul.f32 %v5342_v17, %v5342_v17  ;;  %v1581_v38 = vpop.f32.mrf.mxu2  ;;  %v1157_v50 = vadd.f32 1.0, %v3866_v41  ;;  %v3868_v56 = vpop.eup %3867  ;;  %v2188_v30 = vmul.f32 0.5, %v5279_v51  ;;  %3871 = vtanh.f32 %v962_v46 }
 0x1bc   :  { %v573_v5 = vmul.f32 %v5347_v23, %v5347_v23  ;;  %v1582_v12 = vadd.f32 %v1581_v38, %v4801_v8  ;;  %v1714_v27 = vpop.f32.mrf.mxu3  ;;  %v1254_v29 = vmul.f32 %v1156_v19, %v666_v31  ;;  %v2388_v33 = vadd.f32 0.7978846, %v2290_v13 }
 0x1bd   :  { %v768_v49 = vmul.f32 0.035677407, %v572_v62  ;;  %v1255_v38 = vmul.f32 %v1157_v50, %v667_v14  ;;  %v1253_v31 = vmul.f32 %v1155_v7, %v665_v10  ;;  %v2678_v19 = vadd.f32 1.0, %v3868_v56 }
 0x1be   :  { %v769_v45 = vmul.f32 0.035677407, %v573_v5  ;;  %v5359_v36 = vadd.f32 %v1714_v27, %v1582_v12  ;;  %v3870_v1 = vpop.eup %3869  ;;  %v5361_v21 = vpack.c.bf16 %v1254_v29, %v1252_v18  ;;  %3873 = vtanh.f32 %v963_v4 }
 0x1bf   :  { %v866_v63 = vadd.f32 0.7978846, %v768_v49  ;;  %v2680_v13 = vadd.f32 1.0, %v3870_v1  ;;  %v2190_v12 = vmul.f32 0.5, %v5303_v24  ;;  %v2486_v27 = vmul.f32 %v2388_v33, %v5335_v47 }
 0x1c0   :  { %6333 = vst [vmem:[#allocation24_spill] sm:$0xff] %v5361_v21  ;;  %v867_v26 = vadd.f32 0.7978846, %v769_v45  ;;  %v2096_v40 = vmul.f32 %v5359_v36, %v5359_v36  ;;  %v336_v41 = vpop.f32.mrf.mxu0  ;;  %1623 = vmatmul.bf16.gmra.mxu2 %v5361_v21  ;;  %v5386_v1 = vmul.f32 %v2678_v19, %v2188_v30 }
 0x1c1   :  { %v964_v53 = vmul.f32 %v866_v63, %v5342_v17  ;;  %v5367_v51 = vadd.f32 %v336_v41, %v4411_v52  ;;  %v469_v62 = vpop.f32.mrf.mxu1  ;;  %v5377_v63 = vpack.c.bf16 %v1255_v38, %v1253_v31  ;;  %v3872_v24 = vpop.eup %3871 }
 0x1c2   :  { %v965_v46 = vmul.f32 %v867_v26, %v5347_v23  ;;  %v2292_v5 = vmul.f32 0.035677407, %v2096_v40  ;;  %v5371_v14 = vadd.f32 %v469_v62, %v4413_v54  ;;  %v668_v40 = vmul.f32 0.5, %v5311_v44  ;;  %v3676_v44 = vld [vmem:[%s6278_s5 + $0x8] sm:$0xff] }
 0x1c3   :  { %3875 = vtanh.f32 %v964_v53  ;;  %v574_v7 = vmul.f32 %v5367_v51, %v5367_v51  ;;  %6334 = vst [vmem:[#allocation25_spill] sm:$0xff] %v5377_v63  ;;  %1814 = vmatmul.bf16.gmra.mxu0 %v4567_v42  ;;  %v1584_v49 = vpop.f32.mrf.mxu2  ;;  %v5388_v42 = vmul.f32 %v2680_v13, %v2190_v12  ;;  %1756 = vmatmul.bf16.gmra.mxu3 %v5377_v63  ;;  %v670_v12 = vmul.f32 0.5, %v5342_v17 }
 0x1c4   :  { %3877 = vtanh.f32 %v965_v46  ;;  %v2390_v18 = vadd.f32 0.7978846, %v2292_v5  ;;  %v575_v4 = vmul.f32 %v5371_v14, %v5371_v14  ;;  %v1717_v29 = vpop.f32.mrf.mxu3  ;;  %1947 = vmatmul.bf16.gmra.mxu1 %v4569_v43  ;;  %v1585_v56 = vadd.f32 %v1584_v49, %v4801_v8  ;;  %v3874_v38 = vpop.eup %3873  ;;  %v3684_v5 = vld [vmem:[%s6278_s5 + $0x48] sm:$0xff]  ;;  %3034 = vmatpush.bf16.msrb.mxu2 %v3676_v44 }
 0x1c5   :  { %v770_v50 = vmul.f32 0.035677407, %v574_v7  ;;  %v1158_v43 = vadd.f32 1.0, %v3872_v24  ;;  %3879 = vtanh.f32 %v2486_v27  ;;  %3167 = vmatpush.bf16.msrb.mxu3 %v3684_v5  ;;  %v1159_v24 = vadd.f32 1.0, %v3874_v38 }
 0x1c6   :  { %v2488_v10 = vmul.f32 %v2390_v18, %v5359_v36  ;;  %v771_v45 = vmul.f32 0.035677407, %v575_v4  ;;  %v5391_v26 = vadd.f32 %v1717_v29, %v1585_v56  ;;  %v671_v4 = vmul.f32 0.5, %v5347_v23 }
 0x1c7   :  { %v868_v33 = vadd.f32 0.7978846, %v770_v50 }
 0x1c8   :  { %v338_v41 = vpop.f32.mrf.mxu0  ;;  %3881 = vtanh.f32 %v2488_v10  ;;  %v869_v30 = vadd.f32 0.7978846, %v771_v45  ;;  %v2098_v19 = vmul.f32 %v5391_v26, %v5391_v26  ;;  %v1256_v10 = vmul.f32 %v1158_v43, %v668_v40 }
 0x1c9   :  { %v3876_v53 = vpop.eup %3875  ;;  %v5399_v62 = vadd.f32 %v338_v41, %v4411_v52  ;;  %v471_v46 = vpop.f32.mrf.mxu1  ;;  %v966_v7 = vmul.f32 %v868_v33, %v5367_v51  ;;  %v2192_v43 = vmul.f32 0.5, %v5335_v47 }
 0x1ca   :  { %v3878_v13 = vpop.eup %3877  ;;  %v5410_v27 = vadd.f32 %v471_v46, %v4413_v54  ;;  %v1160_v18 = vadd.f32 1.0, %v3876_v53  ;;  %v2294_v49 = vmul.f32 0.035677407, %v2098_v19  ;;  %v967_v33 = vmul.f32 %v869_v30, %v5371_v14 }
 0x1cb   :  { %v576_v29 = vmul.f32 %v5399_v62, %v5399_v62  ;;  %v1586_v56 = vpop.f32.mrf.mxu2  ;;  %v1161_v23 = vadd.f32 1.0, %v3878_v13  ;;  %v3880_v19 = vpop.eup %3879  ;;  %v669_v46 = vmul.f32 0.5, %v5315_v61  ;;  %3883 = vtanh.f32 %v966_v7 }
 0x1cc   :  { %v577_v50 = vmul.f32 %v5410_v27, %v5410_v27  ;;  %v1719_v17 = vpop.f32.mrf.mxu3  ;;  %v1258_v45 = vmul.f32 %v1160_v18, %v670_v12  ;;  %v1587_v53 = vadd.f32 %v1586_v56, %v4801_v8  ;;  %v2392_v44 = vadd.f32 0.7978846, %v2294_v49 }
 0x1cd   :  { %v772_v41 = vmul.f32 0.035677407, %v576_v29  ;;  %v1259_v40 = vmul.f32 %v1161_v23, %v671_v4  ;;  %v1257_v18 = vmul.f32 %v1159_v24, %v669_v46  ;;  %v2682_v29 = vadd.f32 1.0, %v3880_v19 }
 0x1ce   :  { %v773_v5 = vmul.f32 0.035677407, %v577_v50  ;;  %v3882_v38 = vpop.eup %3881  ;;  %v5420_v63 = vadd.f32 %v1719_v17, %v1587_v53  ;;  %v5422_v21 = vpack.c.bf16 %v1258_v45, %v1256_v10  ;;  %3885 = vtanh.f32 %v967_v33 }
 0x1cf   :  { %v870_v31 = vadd.f32 0.7978846, %v772_v41  ;;  %v2684_v47 = vadd.f32 1.0, %v3882_v38  ;;  %v2490_v56 = vmul.f32 %v2392_v44, %v5391_v26  ;;  %v2194_v10 = vmul.f32 0.5, %v5359_v36 }
 0x1d0   :  { %6335 = vst [vmem:[#allocation26_spill] sm:$0xff] %v5422_v21  ;;  %v871_v30 = vadd.f32 0.7978846, %v773_v5  ;;  %v341_v12 = vpop.f32.mrf.mxu0  ;;  %v2100_v61 = vmul.f32 %v5420_v63, %v5420_v63  ;;  %1628 = vmatmul.bf16.gmra.mxu2 %v5422_v21  ;;  %v672_v38 = vmul.f32 0.5, %v5367_v51 }
 0x1d1   :  { %v968_v13 = vmul.f32 %v870_v31, %v5399_v62  ;;  %v474_v7 = vpop.f32.mrf.mxu1  ;;  %v5430_v50 = vadd.f32 %v341_v12, %v4411_v52  ;;  %v5437_v31 = vpack.c.bf16 %v1259_v40, %v1257_v18  ;;  %v3884_v17 = vpop.eup %3883  ;;  %v5449_v5 = vmul.f32 %v2684_v47, %v2194_v10 }
 0x1d2   :  { %v969_v49 = vmul.f32 %v871_v30, %v5410_v27  ;;  %v5433_v4 = vadd.f32 %v474_v7, %v4413_v54  ;;  %v2296_v24 = vmul.f32 0.035677407, %v2100_v61  ;;  %v673_v12 = vmul.f32 0.5, %v5371_v14 }
 0x1d3   :  { %3887 = vtanh.f32 %v968_v13  ;;  %6336 = vst [vmem:[#allocation27_spill] sm:$0xff] %v5437_v31  ;;  %1819 = vmatmul.bf16.gmra.mxu0 %v4599_v34  ;;  %v578_v45 = vmul.f32 %v5430_v50, %v5430_v50  ;;  %v1589_v41 = vpop.f32.mrf.mxu2  ;;  %v5447_v34 = vmul.f32 %v2682_v29, %v2192_v43  ;;  %1761 = vmatmul.bf16.gmra.mxu3 %v5437_v31  ;;  %v675_v10 = vmul.f32 0.5, %v5410_v27 }
 0x1d4   :  { %3889 = vtanh.f32 %v969_v49  ;;  %v579_v33 = vmul.f32 %v5433_v4, %v5433_v4  ;;  %v1722_v53 = vpop.f32.mrf.mxu3  ;;  %1952 = vmatmul.bf16.gmra.mxu1 %v4601_v35  ;;  %v2394_v23 = vadd.f32 0.7978846, %v2296_v24  ;;  %v1590_v19 = vadd.f32 %v1589_v41, %v4801_v8  ;;  %v3886_v36 = vpop.eup %3885 }
 0x1d5   :  { %v774_v46 = vmul.f32 0.035677407, %v578_v45  ;;  %3891 = vtanh.f32 %v2490_v56  ;;  %v1162_v35 = vadd.f32 1.0, %v3884_v17  ;;  %v1163_v56 = vadd.f32 1.0, %v3886_v36 }
 0x1d6   :  { %v775_v44 = vmul.f32 0.035677407, %v579_v33  ;;  %v2492_v40 = vmul.f32 %v2394_v23, %v5420_v63  ;;  %v5454_v30 = vadd.f32 %v1722_v53, %v1590_v19  ;;  %v674_v24 = vmul.f32 0.5, %v5399_v62 }
 0x1d7   :  { %v872_v18 = vadd.f32 0.7978846, %v774_v46  ;;  %v1260_v46 = vmul.f32 %v1162_v35, %v672_v38 }
 0x1d8   :  { %v343_v13 = vpop.f32.mrf.mxu0  ;;  %3893 = vtanh.f32 %v2492_v40  ;;  %v873_v61 = vadd.f32 0.7978846, %v775_v44  ;;  %v2102_v51 = vmul.f32 %v5454_v30, %v5454_v30 }
 0x1d9   :  { %v3888_v29 = vpop.eup %3887  ;;  %v5462_v7 = vadd.f32 %v343_v13, %v4411_v52  ;;  %v476_v49 = vpop.f32.mrf.mxu1  ;;  %v970_v53 = vmul.f32 %v872_v18, %v5430_v50  ;;  %v1261_v18 = vmul.f32 %v1163_v56, %v673_v12 }
 0x1da   :  { %v3890_v47 = vpop.eup %3889  ;;  %v5466_v14 = vadd.f32 %v476_v49, %v4413_v54  ;;  %v1164_v17 = vadd.f32 1.0, %v3888_v29  ;;  %v2298_v45 = vmul.f32 0.035677407, %v2102_v51  ;;  %v971_v36 = vmul.f32 %v873_v61, %v5433_v4 }
 0x1db   :  { %v580_v33 = vmul.f32 %v5462_v7, %v5462_v7  ;;  %v1165_v41 = vadd.f32 1.0, %v3890_v47  ;;  %v1591_v19 = vpop.f32.mrf.mxu2  ;;  %v3892_v62 = vpop.eup %3891  ;;  %v2196_v29 = vmul.f32 0.5, %v5391_v26  ;;  %v2198_v51 = vmul.f32 0.5, %v5420_v63 }
 0x1dc   :  { %v581_v23 = vmul.f32 %v5466_v14, %v5466_v14  ;;  %v1262_v44 = vmul.f32 %v1164_v17, %v674_v24  ;;  %v2396_v40 = vadd.f32 0.7978846, %v2298_v45  ;;  %v1592_v27 = vadd.f32 %v1591_v19, %v4801_v8  ;;  %v1724_v47 = vpop.f32.mrf.mxu3 }
 0x1dd   :  { %v776_v13 = vmul.f32 0.035677407, %v580_v33  ;;  %v1263_v35 = vmul.f32 %v1165_v41, %v675_v10  ;;  %v2686_v24 = vadd.f32 1.0, %v3892_v62  ;;  %3895 = vtanh.f32 %v970_v53 }
 0x1de   :  { %v777_v49 = vmul.f32 0.035677407, %v581_v23  ;;  %v3894_v43 = vpop.eup %3893  ;;  %v5478_v21 = vadd.f32 %v1724_v47, %v1592_v27  ;;  %v5480_v38 = vpack.c.bf16 %v1262_v44, %v1260_v46  ;;  %3897 = vtanh.f32 %v971_v36 }
 0x1df   :  { %v874_v31 = vadd.f32 0.7978846, %v776_v13  ;;  %v2688_v45 = vadd.f32 1.0, %v3894_v43  ;;  %v2494_v26 = vmul.f32 %v2396_v40, %v5454_v30  ;;  %v5496_v53 = vpack.c.bf16 %v1263_v35, %v1261_v18 }
 0x1e0   :  { %6337 = vst [vmem:[#allocation28_spill] sm:$0xff] %v5480_v38  ;;  %v875_v61 = vadd.f32 0.7978846, %v777_v49  ;;  %v346_v17 = vpop.f32.mrf.mxu0  ;;  %v2104_v12 = vmul.f32 %v5478_v21, %v5478_v21  ;;  %1633 = vmatmul.bf16.gmra.mxu2 %v5480_v38  ;;  %v5502_v19 = vmul.f32 %v2686_v24, %v2196_v29 }
 0x1e1   :  { %v972_v63 = vmul.f32 %v874_v31, %v5462_v7  ;;  %v479_v56 = vpop.f32.mrf.mxu1  ;;  %v5488_v23 = vadd.f32 %v346_v17, %v4411_v52  ;;  %v5493_v41 = vmul.f32 %v2688_v45, %v2198_v51  ;;  %6338 = vst [vmem:[#allocation29_spill] sm:$0xff] %v5496_v53  ;;  %v678_v17 = vmul.f32 0.5, %v5462_v7 }
 0x1e2   :  { %v973_v33 = vmul.f32 %v875_v61, %v5466_v14  ;;  %v5491_v10 = vadd.f32 %v479_v56, %v4413_v54  ;;  %v2300_v43 = vmul.f32 0.035677407, %v2104_v12  ;;  %v676_v56 = vmul.f32 0.5, %v5430_v50 }
 0x1e3   :  { %3899 = vtanh.f32 %v972_v63  ;;  %1824 = vmatmul.bf16.gmra.mxu0 %v4637_v22  ;;  %v582_v31 = vmul.f32 %v5488_v23, %v5488_v23  ;;  %v3896_v62 = vpop.eup %3895  ;;  %v1594_v40 = vpop.f32.mrf.mxu2  ;;  %1766 = vmatmul.bf16.gmra.mxu3 %v5496_v53 }
 0x1e4   :  { %1957 = vmatmul.bf16.gmra.mxu1 %v4639_v58  ;;  %3901 = vtanh.f32 %v973_v33  ;;  %v2398_v46 = vadd.f32 0.7978846, %v2300_v43  ;;  %v583_v44 = vmul.f32 %v5491_v10, %v5491_v10  ;;  %v3898_v22 = vpop.eup %3897  ;;  %v1595_v58 = vadd.f32 %v1594_v40, %v4801_v8 }
 0x1e5   :  { %3903 = vtanh.f32 %v2494_v26  ;;  %v778_v36 = vmul.f32 0.035677407, %v582_v31  ;;  %v1166_v47 = vadd.f32 1.0, %v3896_v62  ;;  %v1167_v61 = vadd.f32 1.0, %v3898_v22 }
 0x1e6   :  { %v2496_v27 = vmul.f32 %v2398_v46, %v5478_v21  ;;  %v779_v29 = vmul.f32 0.035677407, %v583_v44  ;;  %v1727_v45 = vpop.f32.mrf.mxu3  ;;  %v677_v33 = vmul.f32 0.5, %v5433_v4  ;;  %v679_v44 = vmul.f32 0.5, %v5466_v14 }
 0x1e7   :  { %v876_v18 = vadd.f32 0.7978846, %v778_v36  ;;  %v5520_v43 = vadd.f32 %v1727_v45, %v1595_v58  ;;  %v1264_v4 = vmul.f32 %v1166_v47, %v676_v56  ;;  %v2200_v56 = vmul.f32 0.5, %v5454_v30 }
 0x1e8   :  { %v348_v51 = vpop.f32.mrf.mxu0  ;;  %3905 = vtanh.f32 %v2496_v27  ;;  %v877_v62 = vadd.f32 0.7978846, %v779_v29  ;;  %v2202_v27 = vmul.f32 0.5, %v5478_v21 }
 0x1e9   :  { %v3900_v49 = vpop.eup %3899  ;;  %v5512_v35 = vadd.f32 %v348_v51, %v4411_v52  ;;  %v481_v24 = vpop.f32.mrf.mxu1  ;;  %v974_v40 = vmul.f32 %v876_v18, %v5488_v23  ;;  %v2106_v50 = vmul.f32 %v5520_v43, %v5520_v43 }
 0x1ea   :  { %v5516_v26 = vadd.f32 %v481_v24, %v4413_v54  ;;  %v1168_v63 = vadd.f32 1.0, %v3900_v49  ;;  %v3902_v12 = vpop.eup %3901  ;;  %v1265_v24 = vmul.f32 %v1167_v61, %v677_v33  ;;  %v975_v18 = vmul.f32 %v877_v62, %v5491_v10 }
 0x1eb   :  { %v584_v31 = vmul.f32 %v5512_v35, %v5512_v35  ;;  %v3904_v46 = vpop.eup %3903  ;;  %v1596_v51 = vpop.f32.mrf.mxu2  ;;  %v1169_v49 = vadd.f32 1.0, %v3902_v12  ;;  %3907 = vtanh.f32 %v974_v40  ;;  %v2302_v47 = vmul.f32 0.035677407, %v2106_v50 }
 0x1ec   :  { %v585_v7 = vmul.f32 %v5516_v26, %v5516_v26  ;;  %v1266_v36 = vmul.f32 %v1168_v63, %v678_v17  ;;  %v2690_v14 = vadd.f32 1.0, %v3904_v46  ;;  %v1597_v13 = vadd.f32 %v1596_v51, %v4801_v8 }
 0x1ed   :  { %v780_v22 = vmul.f32 0.035677407, %v584_v31  ;;  %v1267_v38 = vmul.f32 %v1169_v49, %v679_v44  ;;  %v2400_v50 = vadd.f32 0.7978846, %v2302_v47 }
 0x1ee   :  { %v781_v58 = vmul.f32 0.035677407, %v585_v7  ;;  %v3906_v45 = vpop.eup %3905  ;;  %v5532_v53 = vpack.c.bf16 %v1266_v36, %v1264_v4  ;;  %v1729_v46 = vpop.f32.mrf.mxu3  ;;  %v5555_v40 = vmul.f32 %v2690_v14, %v2200_v56 }
 0x1ef   :  { %v878_v29 = vadd.f32 0.7978846, %v780_v22  ;;  %v2692_v31 = vadd.f32 1.0, %v3906_v45  ;;  %v5544_v62 = vadd.f32 %v1729_v46, %v1597_v13  ;;  %v5547_v44 = vpack.c.bf16 %v1267_v38, %v1265_v24 }
 0x1f0   :  { %6339 = vst [vmem:[#allocation30_spill] sm:$0xff] %v5532_v53  ;;  %v879_v17 = vadd.f32 0.7978846, %v781_v58  ;;  %v351_v63 = vpop.f32.mrf.mxu0  ;;  %1638 = vmatmul.bf16.gmra.mxu2 %v5532_v53  ;;  %v2498_v14 = vmul.f32 %v2400_v50, %v5520_v43  ;;  %v680_v46 = vmul.f32 0.5, %v5488_v23 }
 0x1f1   :  { %v976_v21 = vmul.f32 %v878_v29, %v5512_v35  ;;  %v5537_v12 = vadd.f32 %v351_v63, %v4411_v52  ;;  %v484_v61 = vpop.f32.mrf.mxu1  ;;  %6340 = vst [vmem:[#allocation31_spill] sm:$0xff] %v5547_v44  ;;  %v5550_v36 = vmul.f32 %v2692_v31, %v2202_v27  ;;  %v2108_v13 = vmul.f32 %v5544_v62, %v5544_v62  ;;  %v3908_v4 = vpop.eup %3907 }
 0x1f2   :  { %v977_v33 = vmul.f32 %v879_v17, %v5516_v26  ;;  %v5542_v7 = vadd.f32 %v484_v61, %v4413_v54  ;;  %6341 = vst [vmem:[#allocation32_spill] sm:$0xff] %v5555_v40  ;;  %v1170_v31 = vadd.f32 1.0, %v3908_v4 }
 0x1f3   :  { %3909 = vtanh.f32 %v976_v21  ;;  %1829 = vmatmul.bf16.gmra.mxu0 %v4693_v15  ;;  %v586_v30 = vmul.f32 %v5537_v12, %v5537_v12  ;;  %v1599_v15 = vpop.f32.mrf.mxu2  ;;  %v2304_v27 = vmul.f32 0.035677407, %v2108_v13  ;;  %1771 = vmatmul.bf16.gmra.mxu3 %v5547_v44 }
 0x1f4   :  { %1962 = vmatmul.bf16.gmra.mxu1 %v4695_v25  ;;  %3911 = vtanh.f32 %v975_v18  ;;  %v587_v38 = vmul.f32 %v5542_v7, %v5542_v7  ;;  %v1600_v25 = vadd.f32 %v1599_v15, %v4801_v8 }
 0x1f5   :  { %3913 = vtanh.f32 %v977_v33  ;;  %v782_v22 = vmul.f32 0.035677407, %v586_v30  ;;  %v2402_v29 = vadd.f32 0.7978846, %v2304_v27 }
 0x1f6   :  { %v783_v58 = vmul.f32 0.035677407, %v587_v38  ;;  %v1732_v21 = vpop.f32.mrf.mxu3  ;;  %v682_v38 = vmul.f32 0.5, %v5512_v35  ;;  %3915 = vtanh.f32 %v2498_v14  ;;  %v3675_v35 = vld [vmem:[%s6278_s5] sm:$0xff] }
 0x1f7   :  { %v880_v49 = vadd.f32 0.7978846, %v782_v22  ;;  %v5574_v30 = vadd.f32 %v1732_v21, %v1600_v25  ;;  %v683_v22 = vmul.f32 0.5, %v5516_v26  ;;  %v2500_v15 = vmul.f32 %v2402_v29, %v5544_v62  ;;  %v3683_v26 = vld [vmem:[%s6278_s5 + $0x40] sm:$0xff]  ;;  %3035 = vmatpush.bf16.msrb.mxu2 %v3675_v35 }
 0x1f8   :  { %v353_v24 = vpop.f32.mrf.mxu0  ;;  %v881_v18 = vadd.f32 0.7978846, %v783_v58  ;;  %3168 = vmatpush.bf16.msrb.mxu3 %v3683_v26 }
 0x1f9   :  { %v3910_v45 = vpop.eup %3909  ;;  %v5567_v17 = vadd.f32 %v353_v24, %v4411_v52  ;;  %v486_v63 = vpop.f32.mrf.mxu1  ;;  %v978_v47 = vmul.f32 %v880_v49, %v5537_v12  ;;  %v2110_v23 = vmul.f32 %v5574_v30, %v5574_v30  ;;  %v1268_v24 = vmul.f32 %v1170_v31, %v680_v46 }
 0x1fa   :  { %v5571_v61 = vadd.f32 %v486_v63, %v4413_v54  ;;  %v1172_v56 = vadd.f32 1.0, %v3910_v45  ;;  %v3912_v33 = vpop.eup %3911  ;;  %v979_v27 = vmul.f32 %v881_v18, %v5542_v7  ;;  %v681_v31 = vmul.f32 0.5, %v5491_v10 }
 0x1fb   :  { %v588_v50 = vmul.f32 %v5567_v17, %v5567_v17  ;;  %v3914_v13 = vpop.eup %3913  ;;  %3917 = vtanh.f32 %v978_v47  ;;  %v1601_v49 = vpop.f32.mrf.mxu2  ;;  %v2306_v14 = vmul.f32 0.035677407, %v2110_v23  ;;  %v1171_v21 = vadd.f32 1.0, %v3912_v33 }
 0x1fc   :  { %v589_v4 = vmul.f32 %v5571_v61, %v5571_v61  ;;  %v1270_v45 = vmul.f32 %v1172_v56, %v682_v38  ;;  %v1602_v18 = vadd.f32 %v1601_v49, %v4801_v8  ;;  %v1173_v63 = vadd.f32 1.0, %v3914_v13 }
 0x1fd   :  { %v784_v58 = vmul.f32 0.035677407, %v588_v50  ;;  %3919 = vtanh.f32 %v2500_v15  ;;  %v2404_v23 = vadd.f32 0.7978846, %v2306_v14 }
 0x1fe   :  { %v785_v25 = vmul.f32 0.035677407, %v589_v4  ;;  %v5593_v4 = vpack.c.bf16 %v1270_v45, %v1268_v24  ;;  %3921 = vtanh.f32 %v979_v27  ;;  %v1734_v33 = vpop.f32.mrf.mxu3  ;;  %v1269_v45 = vmul.f32 %v1171_v21, %v681_v31 }
 0x1ff   :  { %v882_v29 = vadd.f32 0.7978846, %v784_v58  ;;  %v1271_v58 = vmul.f32 %v1173_v63, %v683_v22  ;;  %v5604_v49 = vadd.f32 %v1734_v33, %v1602_v18  ;;  %v2204_v22 = vmul.f32 0.5, %v5520_v43 }
 0x200   :  { %v883_v47 = vadd.f32 0.7978846, %v785_v25  ;;  %v356_v50 = vpop.f32.mrf.mxu0  ;;  %6342 = vst [vmem:[#allocation33_spill] sm:$0xff] %v5593_v4  ;;  %v3916_v25 = vpop.eup %3915  ;;  %1643 = vmatmul.bf16.gmra.mxu2 %v5593_v4  ;;  %v2502_v14 = vmul.f32 %v2404_v23, %v5574_v30  ;;  %v684_v21 = vmul.f32 0.5, %v5537_v12 }
 0x201   :  { %v980_v56 = vmul.f32 %v882_v29, %v5567_v17  ;;  %v5598_v46 = vadd.f32 %v356_v50, %v4411_v52  ;;  %v489_v38 = vpop.f32.mrf.mxu1  ;;  %v3918_v10 = vpop.eup %3917  ;;  %v2112_v35 = vmul.f32 %v5604_v49, %v5604_v49  ;;  %v5617_v18 = vpack.c.bf16 %v1271_v58, %v1269_v45 }
 0x202   :  { %v981_v13 = vmul.f32 %v883_v47, %v5571_v61  ;;  %v5602_v15 = vadd.f32 %v489_v38, %v4413_v54  ;;  %v2206_v50 = vmul.f32 0.5, %v5544_v62  ;;  %v2694_v31 = vadd.f32 1.0, %v3916_v25 }
 0x203   :  { %3923 = vtanh.f32 %v980_v56  ;;  %1834 = vmatmul.bf16.gmra.mxu0 %v4725_v55  ;;  %v590_v27 = vmul.f32 %v5598_v46, %v5598_v46  ;;  %v3920_v26 = vpop.eup %3919  ;;  %6343 = vst [vmem:[#allocation34_spill] sm:$0xff] %v5617_v18  ;;  %v1604_v63 = vpop.f32.mrf.mxu2  ;;  %v685_v56 = vmul.f32 0.5, %v5542_v7  ;;  %v686_v38 = vmul.f32 0.5, %v5567_v17  ;;  %1776 = vmatmul.bf16.gmra.mxu3 %v5617_v18 }
 0x204   :  { %v591_v24 = vmul.f32 %v5602_v15, %v5602_v15  ;;  %1967 = vmatmul.bf16.gmra.mxu1 %v4727_v2  ;;  %3925 = vtanh.f32 %v981_v13  ;;  %v3922_v47 = vpop.eup %3921  ;;  %v2308_v2 = vmul.f32 0.035677407, %v2112_v35  ;;  %v1605_v43 = vadd.f32 %v1604_v63, %v4801_v8 }
 0x205   :  { %v786_v55 = vmul.f32 0.035677407, %v590_v27  ;;  %v1174_v58 = vadd.f32 1.0, %v3918_v10  ;;  %3927 = vtanh.f32 %v2502_v14  ;;  %v687_v45 = vmul.f32 0.5, %v5571_v61 }
 0x206   :  { %v787_v29 = vmul.f32 0.035677407, %v591_v24  ;;  %v2406_v27 = vadd.f32 0.7978846, %v2308_v2  ;;  %v1737_v25 = vpop.f32.mrf.mxu3  ;;  %v1175_v2 = vadd.f32 1.0, %v3922_v47  ;;  %v5640_v14 = vmul.f32 %v2694_v31, %v2204_v22 }
 0x207   :  { %v884_v13 = vadd.f32 0.7978846, %v786_v55  ;;  %v5633_v63 = vadd.f32 %v1737_v25, %v1605_v43  ;;  %v1272_v43 = vmul.f32 %v1174_v58, %v684_v21 }
 0x208   :  { %v358_v23 = vpop.f32.mrf.mxu0  ;;  %v885_v24 = vadd.f32 0.7978846, %v787_v29  ;;  %v2504_v55 = vmul.f32 %v2406_v27, %v5604_v49  ;;  %v2696_v29 = vadd.f32 1.0, %v3920_v26 }
 0x209   :  { %v3924_v33 = vpop.eup %3923  ;;  %v5626_v62 = vadd.f32 %v358_v23, %v4411_v52  ;;  %v491_v12 = vpop.f32.mrf.mxu1  ;;  %v982_v23 = vmul.f32 %v884_v13, %v5598_v46 }
 0x20a   :  { %v5630_v7 = vadd.f32 %v491_v12, %v4413_v54  ;;  %v1176_v17 = vadd.f32 1.0, %v3924_v33  ;;  %v3926_v35 = vpop.eup %3925  ;;  %v983_v12 = vmul.f32 %v885_v24, %v5602_v15  ;;  %v2114_v33 = vmul.f32 %v5633_v63, %v5633_v63 }
 0x20b   :  { %v592_v10 = vmul.f32 %v5626_v62, %v5626_v62  ;;  %3929 = vtanh.f32 %v2504_v55  ;;  %v1606_v51 = vpop.f32.mrf.mxu2  ;;  %v1177_v26 = vadd.f32 1.0, %v3926_v35  ;;  %v5646_v44 = vmul.f32 %v2696_v29, %v2206_v50  ;;  %v3928_v22 = vpop.eup %3927 }
 0x20c   :  { %v593_v61 = vmul.f32 %v5630_v7, %v5630_v7  ;;  %v1274_v18 = vmul.f32 %v1176_v17, %v686_v38  ;;  %v2310_v47 = vmul.f32 0.035677407, %v2114_v33  ;;  %v1607_v13 = vadd.f32 %v1606_v51, %v4801_v8 }
 0x20d   :  { %v788_v27 = vmul.f32 0.035677407, %v592_v10  ;;  %3931 = vtanh.f32 %v982_v23  ;;  %v1275_v40 = vmul.f32 %v1177_v26, %v687_v45  ;;  %v1273_v55 = vmul.f32 %v1175_v2, %v685_v56 }
 0x20e   :  { %v789_v25 = vmul.f32 0.035677407, %v593_v61  ;;  %v5648_v53 = vpack.c.bf16 %v1274_v18, %v1272_v43  ;;  %v2408_v10 = vadd.f32 0.7978846, %v2310_v47  ;;  %v1739_v50 = vpop.f32.mrf.mxu3  ;;  %v2698_v18 = vadd.f32 1.0, %v3928_v22 }
 0x20f   :  { %v886_v4 = vadd.f32 0.7978846, %v788_v27  ;;  %v5660_v45 = vadd.f32 %v1739_v50, %v1607_v13  ;;  %v5668_v23 = vpack.c.bf16 %v1275_v40, %v1273_v55  ;;  %v2210_v43 = vmul.f32 0.5, %v5604_v49 }
 0x210   :  { %v887_v31 = vadd.f32 0.7978846, %v789_v25  ;;  %v361_v24 = vpop.f32.mrf.mxu0  ;;  %1648 = vmatmul.bf16.gmra.mxu2 %v5648_v53  ;;  %v688_v49 = vmul.f32 0.5, %v5598_v46 }
 0x211   :  { %v984_v21 = vmul.f32 %v886_v4, %v5626_v62  ;;  %v5652_v58 = vadd.f32 %v361_v24, %v4411_v52  ;;  %v494_v38 = vpop.f32.mrf.mxu1  ;;  %v3930_v52 = vpop.eup %3929  ;;  %v2116_v56 = vmul.f32 %v5660_v45, %v5660_v45 }
 0x212   :  { %v985_v51 = vmul.f32 %v887_v31, %v5630_v7  ;;  %v5658_v35 = vadd.f32 %v494_v38, %v4413_v54  ;;  %v2506_v54 = vmul.f32 %v2408_v10, %v5633_v63  ;;  %v2700_v26 = vadd.f32 1.0, %v3930_v52 }
 0x213   :  { %3933 = vtanh.f32 %v984_v21  ;;  %1839 = vmatmul.bf16.gmra.mxu0 %v4755_v57  ;;  %v594_v4 = vmul.f32 %v5652_v58, %v5652_v58  ;;  %v3932_v2 = vpop.eup %3931  ;;  %v2208_v57 = vmul.f32 0.5, %v5574_v30  ;;  %v1609_v27 = vpop.f32.mrf.mxu2  ;;  %v2312_v25 = vmul.f32 0.035677407, %v2116_v56  ;;  %1781 = vmatmul.bf16.gmra.mxu3 %v5668_v23 }
 0x214   :  { %3935 = vtanh.f32 %v985_v51  ;;  %v595_v29 = vmul.f32 %v5658_v35, %v5658_v35  ;;  %1972 = vmatmul.bf16.gmra.mxu1 %v4757_v16  ;;  %v1610_v40 = vadd.f32 %v1609_v27, %v4801_v8  ;;  %v1178_v22 = vadd.f32 1.0, %v3932_v2  ;;  %v4087_v2 = vld [vmem:[%s6277_s4] sm:$0x3] }
 0x215   :  { %3937 = vtanh.f32 %v983_v12  ;;  %v790_v61 = vmul.f32 0.035677407, %v594_v4  ;;  %v5678_v12 = vmul.f32 %v2698_v18, %v2208_v57  ;;  %v2410_v31 = vadd.f32 0.7978846, %v2312_v25 }
 0x216   :  { %v791_v33 = vmul.f32 0.035677407, %v595_v29  ;;  %3939 = vtanh.f32 %v2506_v54  ;;  %v5680_v24 = vmul.f32 %v2700_v26, %v2210_v43  ;;  %v690_v21 = vmul.f32 0.5, %v5626_v62  ;;  %v1742_v51 = vpop.f32.mrf.mxu3 }
 0x217   :  { %v888_v47 = vadd.f32 0.7978846, %v790_v61  ;;  %v2508_v52 = vmul.f32 %v2410_v31, %v5660_v45  ;;  %v5686_v4 = vadd.f32 %v1742_v51, %v1610_v40  ;;  %v1276_v62 = vmul.f32 %v1178_v22, %v688_v49 }
 0x218   :  { %v363_v16 = vpop.f32.mrf.mxu0  ;;  %v889_v38 = vadd.f32 0.7978846, %v791_v33  ;;  %v5695_v57 = vperm.slane %v4087_v2, 1  ;;  %v691_v33 = vmul.f32 0.5, %v5630_v7 }
 0x219   :  { %v3934_v13 = vpop.eup %3933  ;;  %v496_v30 = vpop.f32.mrf.mxu1  ;;  %v986_v18 = vmul.f32 %v888_v47, %v5652_v58  ;;  %3941 = vtanh.f32 %v2508_v52  ;;  %v2118_v46 = vmul.f32 %v5686_v4, %v5686_v4  ;;  %v689_v16 = vmul.f32 0.5, %v5602_v15 }
 0x21a   :  { %v3936_v10 = vpop.eup %3935  ;;  %v1180_v50 = vadd.f32 1.0, %v3934_v13  ;;  %v987_v27 = vmul.f32 %v889_v38, %v5658_v35  ;;  %v2212_v15 = vmul.f32 0.5, %v5633_v63 }
 0x21b   :  { %v3938_v55 = vpop.eup %3937  ;;  %v1181_v56 = vadd.f32 1.0, %v3936_v10  ;;  %v1611_v43 = vpop.f32.mrf.mxu2  ;;  %3943 = vtanh.f32 %v986_v18  ;;  %v2314_v40 = vmul.f32 0.035677407, %v2118_v46 }
 0x21c   :  { %v1278_v54 = vmul.f32 %v1180_v50, %v690_v21  ;;  %v1179_v61 = vadd.f32 1.0, %v3938_v55  ;;  %v3940_v25 = vpop.eup %3939  ;;  %v1612_v26 = vadd.f32 %v1611_v43, %v4801_v8  ;;  %3945 = vtanh.f32 %v987_v27 }
 0x21d   :  { %v1279_v13 = vmul.f32 %v1181_v56, %v691_v33  ;;  %v2412_v31 = vadd.f32 0.7978846, %v2314_v40  ;;  %v2702_v49 = vadd.f32 1.0, %v3940_v25  ;;  %v2214_v55 = vmul.f32 0.5, %v5660_v45 }
 0x21e   :  { %v5700_v47 = vpack.c.bf16 %v1278_v54, %v1276_v62  ;;  %v1744_v7 = vpop.f32.mrf.mxu3  ;;  %v1277_v21 = vmul.f32 %v1179_v61, %v689_v16 }
 0x21f   :  { %v3942_v38 = vpop.eup %3941  ;;  %v1745_v51 = vadd.f32 %v1744_v7, %v1612_v26  ;;  %v2510_v56 = vmul.f32 %v2412_v31, %v5686_v4  ;;  %v5716_v61 = vmul.f32 %v2702_v49, %v2212_v15 }
 0x220   :  { %v1805_v22 = vpop.f32.mrf.mxu0  ;;  %1653 = vmatmul.bf16.gmra.mxu2 %v5700_v47  ;;  %v5710_v52 = vpack.c.bf16 %v1279_v13, %v1277_v21  ;;  %v2704_v18 = vadd.f32 1.0, %v3942_v38  ;;  %v692_v13 = vmul.f32 0.5, %v5652_v58 }
 0x221   :  { %v1806_v30 = vadd.f32 %v1805_v22, %v5695_v57  ;;  %v1938_v10 = vpop.f32.mrf.mxu1  ;;  %v3944_v54 = vpop.eup %3943  ;;  %v2120_v46 = vmul.f32 %v1745_v51, %v1745_v51  ;;  %3947 = vtanh.f32 %v2510_v56 }
 0x222   :  { %v3946_v43 = vpop.eup %3945 }
 0x223   :  { %v5705_v50 = vadd.f32 %v1938_v10, %v1806_v30  ;;  %1844 = vmatmul.bf16.gmra.mxu0 %v4796_v39  ;;  %v1614_v2 = vpop.f32.mrf.mxu2  ;;  %v5718_v39 = vmul.f32 %v2704_v18, %v2214_v55  ;;  %v2316_v63 = vmul.f32 0.035677407, %v2120_v46  ;;  %1786 = vmatmul.bf16.gmra.mxu3 %v5710_v52  ;;  %v1183_v7 = vadd.f32 1.0, %v3946_v43 }
 0x224   :  { %1977 = vmatmul.bf16.gmra.mxu1 %v4798_v0  ;;  %v1615_v45 = vadd.f32 %v1614_v2, %v4801_v8  ;;  %v1182_v0 = vadd.f32 1.0, %v3944_v54  ;;  %v693_v55 = vmul.f32 0.5, %v5658_v35 }
 0x225   :  { %v2063_v62 = vmul.f32 %v5705_v50, %v5705_v50  ;;  %v2414_v25 = vadd.f32 0.7978846, %v2316_v63 }
 0x226   :  { %v1747_v22 = vpop.f32.mrf.mxu3  ;;  %v1280_v49 = vmul.f32 %v1182_v0, %v692_v13  ;;  %v1281_v2 = vmul.f32 %v1183_v7, %v693_v55 }
 0x227   :  { %v2259_v40 = vmul.f32 0.035677407, %v2063_v62  ;;  %v2512_v31 = vmul.f32 %v2414_v25, %v1745_v51  ;;  %v5726_v30 = vadd.f32 %v1747_v22, %v1615_v45  ;;  %v3948_v54 = vpop.eup %3947 }
 0x228   :  { %v1807_v33 = vpop.f32.mrf.mxu0  ;;  %v5732_v62 = vpack.c.bf16 %v1280_v49, %v1280_v49  ;;  %v2218_v49 = vmul.f32 0.5, %v1745_v51 }
 0x229   :  { %v1808_v26 = vadd.f32 %v1807_v33, %v5695_v57  ;;  %v1940_v16 = vpop.f32.mrf.mxu1  ;;  %3949 = vtanh.f32 %v2512_v31  ;;  %v2357_v21 = vadd.f32 0.7978846, %v2259_v40  ;;  %v2122_v38 = vmul.f32 %v5726_v30, %v5726_v30 }
 0x22a   :  { %v2706_v40 = vadd.f32 1.0, %v3948_v54  ;;  %v2216_v31 = vmul.f32 0.5, %v5686_v4 }
 0x22b   :  { %v1941_v10 = vadd.f32 %v1940_v16, %v1808_v26  ;;  %v1616_v18 = vpop.f32.mrf.mxu2  ;;  %v2318_v56 = vmul.f32 0.035677407, %v2122_v38  ;;  %v2455_v45 = vmul.f32 %v2357_v21, %v5705_v50 }
 0x22c   :  { %v1617_v58 = vadd.f32 %v1616_v18, %v4801_v8  ;;  %v5747_v54 = vmul.f32 %v2706_v40, %v2216_v31 }
 0x22d   :  { %v2065_v15 = vmul.f32 %v1941_v10, %v1941_v10  ;;  %v2416_v33 = vadd.f32 0.7978846, %v2318_v56  ;;  %3951 = vtanh.f32 %v2455_v45 }
 0x22e   :  { %v1749_v26 = vpop.f32.mrf.mxu3 }
 0x22f   :  { %v2261_v46 = vmul.f32 0.035677407, %v2065_v15  ;;  %v3950_v35 = vpop.eup %3949  ;;  %v1750_v13 = vadd.f32 %v1749_v26, %v1617_v58  ;;  %v2514_v21 = vmul.f32 %v2416_v33, %v5726_v30  ;;  %v5743_v15 = vpack.c.bf16 %v1281_v2, %v1281_v2 }
 0x230   :  { %v1810_v63 = vpop.f32.mrf.mxu0  ;;  %1658 = vmatmul.bf16.gmra.mxu2 %v5732_v62  ;;  %v2708_v7 = vadd.f32 1.0, %v3950_v35 }
 0x231   :  { %v2359_v0 = vadd.f32 0.7978846, %v2261_v46  ;;  %v1811_v43 = vadd.f32 %v1810_v63, %v5695_v57  ;;  %v1943_v25 = vpop.f32.mrf.mxu1  ;;  %v2124_v38 = vmul.f32 %v1750_v13, %v1750_v13 }
 0x232   :  { %v5749_v4 = vmul.f32 %v2708_v7, %v2218_v49  ;;  %v2163_v49 = vmul.f32 0.5, %v1941_v10 }
 0x233   :  { %v2457_v16 = vmul.f32 %v2359_v0, %v1941_v10  ;;  %v5737_v22 = vadd.f32 %v1943_v25, %v1811_v43  ;;  %1849 = vmatmul.bf16.gmra.mxu0 %v4866_v6  ;;  %v1619_v18 = vpop.f32.mrf.mxu2  ;;  %v2320_v51 = vmul.f32 0.035677407, %v2124_v38  ;;  %1791 = vmatmul.bf16.gmra.mxu3 %v5743_v15  ;;  %v3952_v33 = vpop.eup %3951 }
 0x234   :  { %1982 = vmatmul.bf16.gmra.mxu1 %v4868_v9  ;;  %v1620_v6 = vadd.f32 %v1619_v18, %v4801_v8  ;;  %v2651_v31 = vadd.f32 1.0, %v3952_v33 }
 0x235   :  { %3953 = vtanh.f32 %v2457_v16  ;;  %v2067_v55 = vmul.f32 %v5737_v22, %v5737_v22  ;;  %v2418_v46 = vadd.f32 0.7978846, %v2320_v51  ;;  %v2161_v51 = vmul.f32 0.5, %v5705_v50  ;;  %v6344_v50 = vld [vmem:[#allocation7_spill] sm:$0xff] }
 0x236   :  { %3955 = vtanh.f32 %v2514_v21  ;;  %v1752_v45 = vpop.f32.mrf.mxu3 }
 0x237   :  { %v2263_v58 = vmul.f32 0.035677407, %v2067_v55  ;;  %v2516_v0 = vmul.f32 %v2418_v46, %v1750_v13  ;;  %v5756_v43 = vadd.f32 %v1752_v45, %v1620_v6  ;;  %v2749_v10 = vmul.f32 %v2651_v31, %v2161_v51  ;;  %v6347_v31 = vld [vmem:[#allocation6_spill] sm:$0xff] }
 0x238   :  { %v1812_v9 = vpop.f32.mrf.mxu0 }
 0x239   :  { %v1813_v2 = vadd.f32 %v1812_v9, %v5695_v57  ;;  %v1945_v63 = vpop.f32.mrf.mxu1  ;;  %3957 = vtanh.f32 %v2516_v0  ;;  %v2361_v35 = vadd.f32 0.7978846, %v2263_v58  ;;  %v2126_v16 = vmul.f32 %v5756_v43, %v5756_v43 }
 0x23b   :  { %v5758_v25 = vadd.f32 %v1945_v63, %v1813_v2  ;;  %v3954_v40 = vpop.eup %3953  ;;  %v1621_v21 = vpop.f32.mrf.mxu2  ;;  %v2322_v55 = vmul.f32 0.035677407, %v2126_v16  ;;  %v2459_v58 = vmul.f32 %v2361_v35, %v5737_v22  ;;  %v2220_v16 = vmul.f32 0.5, %v5726_v30 }
 0x23c   :  { %v2653_v26 = vadd.f32 1.0, %v3954_v40  ;;  %v3956_v38 = vpop.eup %3955  ;;  %v1622_v18 = vadd.f32 %v1621_v21, %v4801_v8 }
 0x23d   :  { %v2069_v7 = vmul.f32 %v5758_v25, %v5758_v25  ;;  %v2420_v2 = vadd.f32 0.7978846, %v2322_v55  ;;  %v2710_v33 = vadd.f32 1.0, %v3956_v38  ;;  %v6346_v55 = vld [vmem:[#allocation5_spill] sm:$0xff]  ;;  %3959 = vtanh.f32 %v2459_v58 }
 0x23e   :  { %v2751_v6 = vmul.f32 %v2653_v26, %v2163_v49  ;;  %v1754_v40 = vpop.f32.mrf.mxu3  ;;  %v6345_v26 = vpack.c.bf16 %v4928_v60, %v6344_v50  ;;  %v2222_v49 = vmul.f32 0.5, %v1750_v13 }
 0x23f   :  { %v2265_v9 = vmul.f32 0.035677407, %v2069_v7  ;;  %v3958_v56 = vpop.eup %3957  ;;  %v1755_v27 = vadd.f32 %v1754_v40, %v1622_v18  ;;  %v2518_v51 = vmul.f32 %v2420_v2, %v5756_v43  ;;  %v5780_v60 = vmul.f32 %v2710_v33, %v2220_v16 }
 0x240   :  { %v1815_v46 = vpop.f32.mrf.mxu0  ;;  %3036 = vmatmul.bf16.vlgmr.msrb.gmra.mxu2 %v6345_v26  ;;  %v2847_v7 = vpack.c.bf16 %v2751_v6, %v2749_v10  ;;  %v2712_v38 = vadd.f32 1.0, %v3958_v56 }
 0x241   :  { %v1816_v63 = vadd.f32 %v1815_v46, %v5695_v57  ;;  %v1948_v45 = vpop.f32.mrf.mxu1  ;;  %v2363_v0 = vadd.f32 0.7978846, %v2265_v9  ;;  %v2128_v30 = vmul.f32 %v1755_v27, %v1755_v27 }
 0x242   :  { %v5782_v13 = vmul.f32 %v2712_v38, %v2222_v49 }
 0x243   :  { %v5769_v21 = vadd.f32 %v1948_v45, %v1816_v63  ;;  %v2461_v35 = vmul.f32 %v2363_v0, %v5758_v25  ;;  %1854 = vmatmul.bf16.gmra.mxu0 %v6346_v55  ;;  %v1624_v9 = vpop.f32.mrf.mxu2  ;;  %v2324_v46 = vmul.f32 0.035677407, %v2128_v30  ;;  %3169 = vmatmul.bf16.vlgmr.msrb.gmra.mxu3 %v2847_v7  ;;  %v3960_v40 = vpop.eup %3959 }
 0x244   :  { %1987 = vmatmul.bf16.gmra.mxu1 %v6347_v31  ;;  %v1625_v6 = vadd.f32 %v1624_v9, %v4801_v8  ;;  %v2655_v55 = vadd.f32 1.0, %v3960_v40  ;;  %v2167_v31 = vmul.f32 0.5, %v5758_v25 }
 0x245   :  { %3961 = vtanh.f32 %v2461_v35  ;;  %v2071_v18 = vmul.f32 %v5769_v21, %v5769_v21  ;;  %v2422_v58 = vadd.f32 0.7978846, %v2324_v46 }
 0x246   :  { %3963 = vtanh.f32 %v2518_v51  ;;  %v1757_v0 = vpop.f32.mrf.mxu3 }
 0x247   :  { %v2267_v2 = vmul.f32 0.035677407, %v2071_v18  ;;  %v2520_v33 = vmul.f32 %v2422_v58, %v1755_v27  ;;  %v5788_v16 = vadd.f32 %v1757_v0, %v1625_v6  ;;  %v2165_v6 = vmul.f32 0.5, %v5737_v22  ;;  %v6348_v22 = vld [vmem:[#allocation10_spill] sm:$0xff] }
 0x248   :  { %v1817_v63 = vpop.f32.mrf.mxu0 }
 0x249   :  { %v1818_v45 = vadd.f32 %v1817_v63, %v5695_v57  ;;  %v1950_v10 = vpop.f32.mrf.mxu1  ;;  %3965 = vtanh.f32 %v2520_v33  ;;  %v2365_v49 = vadd.f32 0.7978846, %v2267_v2  ;;  %v2130_v35 = vmul.f32 %v5788_v16, %v5788_v16 }
 0x24a   :  { %v2753_v56 = vmul.f32 %v2655_v55, %v2165_v6 }
 0x24b   :  { %v5790_v50 = vadd.f32 %v1950_v10, %v1818_v45  ;;  %v3962_v26 = vpop.eup %3961  ;;  %v1626_v38 = vpop.f32.mrf.mxu2  ;;  %v2326_v18 = vmul.f32 0.035677407, %v2130_v35  ;;  %v2463_v2 = vmul.f32 %v2365_v49, %v5769_v21  ;;  %v2224_v49 = vmul.f32 0.5, %v5756_v43 }
 0x24c   :  { %v2657_v51 = vadd.f32 1.0, %v3962_v26  ;;  %v3964_v30 = vpop.eup %3963  ;;  %v1627_v46 = vadd.f32 %v1626_v38, %v4801_v8  ;;  %v6349_v38 = vpack.c.bf16 %v5044_v59, %v6348_v22 }
 0x24d   :  { %v2073_v7 = vmul.f32 %v5790_v50, %v5790_v50  ;;  %v2424_v45 = vadd.f32 0.7978846, %v2326_v18  ;;  %v2714_v33 = vadd.f32 1.0, %v3964_v30  ;;  %v6350_v18 = vld [vmem:[#allocation8_spill] sm:$0xff]  ;;  %3967 = vtanh.f32 %v2463_v2 }
 0x24e   :  { %v2755_v58 = vmul.f32 %v2657_v51, %v2167_v31  ;;  %v1759_v25 = vpop.f32.mrf.mxu3  ;;  %v2226_v31 = vmul.f32 0.5, %v1755_v27 }
 0x24f   :  { %v2269_v9 = vmul.f32 0.035677407, %v2073_v7  ;;  %v3966_v26 = vpop.eup %3965  ;;  %v1760_v7 = vadd.f32 %v1759_v25, %v1627_v46  ;;  %v2522_v55 = vmul.f32 %v2424_v45, %v5788_v16  ;;  %v5813_v59 = vmul.f32 %v2714_v33, %v2224_v49 }
 0x250   :  { %v1820_v63 = vpop.f32.mrf.mxu0  ;;  %3041 = vmatmul.bf16.gmra.mxu2 %v6349_v38  ;;  %v2849_v51 = vpack.c.bf16 %v2755_v58, %v2753_v56  ;;  %v2716_v30 = vadd.f32 1.0, %v3966_v26 }
 0x251   :  { %v2367_v10 = vadd.f32 0.7978846, %v2269_v9  ;;  %v1821_v0 = vadd.f32 %v1820_v63, %v5695_v57  ;;  %v1953_v40 = vpop.f32.mrf.mxu1  ;;  %v6351_v9 = vld [vmem:[#allocation9_spill] sm:$0xff]  ;;  %v2132_v6 = vmul.f32 %v1760_v7, %v1760_v7  ;;  %6352 = vst [vmem:[#allocation7_spill] sm:$0xff] %v5813_v59 }
 0x253   :  { %v2465_v35 = vmul.f32 %v2367_v10, %v5790_v50  ;;  %v5802_v29 = vadd.f32 %v1953_v40, %v1821_v0  ;;  %1859 = vmatmul.bf16.gmra.mxu0 %v6350_v18  ;;  %v1629_v63 = vpop.f32.mrf.mxu2  ;;  %v5815_v10 = vmul.f32 %v2716_v30, %v2226_v31  ;;  %v2328_v27 = vmul.f32 0.035677407, %v2132_v6  ;;  %3174 = vmatmul.bf16.gmra.mxu3 %v2849_v51  ;;  %v3968_v26 = vpop.eup %3967 }
 0x254   :  { %1992 = vmatmul.bf16.gmra.mxu1 %v6351_v9  ;;  %v1630_v43 = vadd.f32 %v1629_v63, %v4801_v8  ;;  %v2659_v18 = vadd.f32 1.0, %v3968_v26  ;;  %v2171_v9 = vmul.f32 0.5, %v5790_v50 }
 0x255   :  { %3969 = vtanh.f32 %v2465_v35  ;;  %v2075_v46 = vmul.f32 %v5802_v29, %v5802_v29  ;;  %v2426_v2 = vadd.f32 0.7978846, %v2328_v27 }
 0x256   :  { %3971 = vtanh.f32 %v2522_v55  ;;  %v1762_v25 = vpop.f32.mrf.mxu3 }
 0x257   :  { %v2271_v45 = vmul.f32 0.035677407, %v2075_v46  ;;  %v2524_v33 = vmul.f32 %v2426_v2, %v1760_v7  ;;  %v5821_v35 = vadd.f32 %v1762_v25, %v1630_v43  ;;  %v2169_v43 = vmul.f32 0.5, %v5769_v21  ;;  %v6354_v21 = vld [vmem:[#allocation14_spill] sm:$0xff] }
 0x258   :  { %v1822_v56 = vpop.f32.mrf.mxu0 }
 0x259   :  { %v1823_v0 = vadd.f32 %v1822_v56, %v5695_v57  ;;  %v1955_v40 = vpop.f32.mrf.mxu1  ;;  %3973 = vtanh.f32 %v2524_v33  ;;  %v2369_v49 = vadd.f32 0.7978846, %v2271_v45  ;;  %v2134_v31 = vmul.f32 %v5821_v35, %v5821_v35 }
 0x25a   :  { %v2757_v58 = vmul.f32 %v2659_v18, %v2169_v43 }
 0x25b   :  { %v5823_v22 = vadd.f32 %v1955_v40, %v1823_v0  ;;  %v3970_v38 = vpop.eup %3969  ;;  %v1631_v30 = vpop.f32.mrf.mxu2  ;;  %v2330_v46 = vmul.f32 0.035677407, %v2134_v31  ;;  %v2467_v45 = vmul.f32 %v2369_v49, %v5802_v29  ;;  %v2228_v49 = vmul.f32 0.5, %v5788_v16 }
 0x25c   :  { %v2661_v55 = vadd.f32 1.0, %v3970_v38  ;;  %v3972_v6 = vpop.eup %3971  ;;  %v1632_v27 = vadd.f32 %v1631_v30, %v4801_v8  ;;  %v6353_v30 = vld [vmem:[#allocation13_spill] sm:$0xff] }
 0x25d   :  { %v2077_v51 = vmul.f32 %v5823_v22, %v5823_v22  ;;  %v2428_v0 = vadd.f32 0.7978846, %v2330_v46  ;;  %v2718_v33 = vadd.f32 1.0, %v3972_v6  ;;  %v6355_v59 = vpack.c.bf16 %v6353_v30, %v6354_v21  ;;  %v6356_v46 = vld [vmem:[#allocation11_spill] sm:$0xff] }
 0x25e   :  { %v2759_v2 = vmul.f32 %v2661_v55, %v2171_v9  ;;  %v1764_v50 = vpop.f32.mrf.mxu3  ;;  %v2230_v9 = vmul.f32 0.5, %v1760_v7  ;;  %3975 = vtanh.f32 %v2467_v45 }
 0x25f   :  { %v2273_v63 = vmul.f32 0.035677407, %v2077_v51  ;;  %v3974_v38 = vpop.eup %3973  ;;  %v1765_v51 = vadd.f32 %v1764_v50, %v1632_v27  ;;  %v2526_v18 = vmul.f32 %v2428_v0, %v5821_v35 }
 0x260   :  { %v1825_v56 = vpop.f32.mrf.mxu0  ;;  %3046 = vmatmul.bf16.gmra.mxu2 %v6355_v59  ;;  %v2851_v55 = vpack.c.bf16 %v2759_v2, %v2757_v58  ;;  %v2720_v6 = vadd.f32 1.0, %v3974_v38 }
 0x261   :  { %v2371_v40 = vadd.f32 0.7978846, %v2273_v63  ;;  %v1826_v25 = vadd.f32 %v1825_v56, %v5695_v57  ;;  %v1958_v26 = vpop.f32.mrf.mxu1  ;;  %v6357_v63 = vld [vmem:[#allocation12_spill] sm:$0xff]  ;;  %v2136_v43 = vmul.f32 %v1765_v51, %v1765_v51 }
 0x262   :  { %v5848_v59 = vmul.f32 %v2720_v6, %v2230_v9 }
 0x263   :  { %v2469_v31 = vmul.f32 %v2371_v40, %v5823_v22  ;;  %v5835_v17 = vadd.f32 %v1958_v26, %v1826_v25  ;;  %1864 = vmatmul.bf16.gmra.mxu0 %v6356_v46  ;;  %v1634_v56 = vpop.f32.mrf.mxu2  ;;  %v5846_v40 = vmul.f32 %v2718_v33, %v2228_v49  ;;  %v2332_v16 = vmul.f32 0.035677407, %v2136_v43  ;;  %3179 = vmatmul.bf16.gmra.mxu3 %v2851_v55 }
 0x264   :  { %1997 = vmatmul.bf16.gmra.mxu1 %v6357_v63  ;;  %v1635_v7 = vadd.f32 %v1634_v56, %v4801_v8  ;;  %v3976_v38 = vpop.eup %3975  ;;  %v2175_v63 = vmul.f32 0.5, %v5823_v22 }
 0x265   :  { %3977 = vtanh.f32 %v2469_v31  ;;  %v2079_v27 = vmul.f32 %v5835_v17, %v5835_v17  ;;  %6358 = vst [vmem:[#allocation5_spill] sm:$0xff] %v5846_v40  ;;  %v2430_v45 = vadd.f32 0.7978846, %v2332_v16  ;;  %v2663_v46 = vadd.f32 1.0, %v3976_v38 }
 0x266   :  { %3979 = vtanh.f32 %v2526_v18  ;;  %v1767_v50 = vpop.f32.mrf.mxu3 }
 0x267   :  { %v2275_v0 = vmul.f32 0.035677407, %v2079_v27  ;;  %v2528_v33 = vmul.f32 %v2430_v45, %v1765_v51  ;;  %v5854_v31 = vadd.f32 %v1767_v50, %v1635_v7  ;;  %v2173_v7 = vmul.f32 0.5, %v5802_v29  ;;  %v6359_v29 = vld [vmem:[#allocation17_spill] sm:$0xff] }
 0x268   :  { %v1827_v58 = vpop.f32.mrf.mxu0 }
 0x269   :  { %v1828_v25 = vadd.f32 %v1827_v58, %v5695_v57  ;;  %v1960_v26 = vpop.f32.mrf.mxu1  ;;  %3981 = vtanh.f32 %v2528_v33  ;;  %v2373_v49 = vadd.f32 0.7978846, %v2275_v0  ;;  %v2138_v9 = vmul.f32 %v5854_v31, %v5854_v31 }
 0x26a   :  { %v2761_v2 = vmul.f32 %v2663_v46, %v2173_v7 }
 0x26b   :  { %v5856_v30 = vadd.f32 %v1960_v26, %v1828_v25  ;;  %v3978_v21 = vpop.eup %3977  ;;  %v1636_v6 = vpop.f32.mrf.mxu2  ;;  %v2334_v27 = vmul.f32 0.035677407, %v2138_v9  ;;  %v2471_v0 = vmul.f32 %v2373_v49, %v5835_v17  ;;  %v2232_v49 = vmul.f32 0.5, %v5821_v35 }
 0x26c   :  { %v2665_v18 = vadd.f32 1.0, %v3978_v21  ;;  %v3980_v43 = vpop.eup %3979  ;;  %v1637_v16 = vadd.f32 %v1636_v6, %v4801_v8  ;;  %v6360_v6 = vpack.c.bf16 %v5155_v20, %v6359_v29 }
 0x26d   :  { %v2081_v55 = vmul.f32 %v5856_v30, %v5856_v30  ;;  %v2432_v25 = vadd.f32 0.7978846, %v2334_v27  ;;  %v2722_v33 = vadd.f32 1.0, %v3980_v43  ;;  %v6361_v27 = vld [vmem:[#allocation15_spill] sm:$0xff]  ;;  %3983 = vtanh.f32 %v2471_v0 }
 0x26e   :  { %v2763_v45 = vmul.f32 %v2665_v18, %v2175_v63  ;;  %v1769_v22 = vpop.f32.mrf.mxu3  ;;  %v2234_v63 = vmul.f32 0.5, %v1765_v51 }
 0x26f   :  { %v2277_v56 = vmul.f32 0.035677407, %v2081_v55  ;;  %v3982_v21 = vpop.eup %3981  ;;  %v1770_v55 = vadd.f32 %v1769_v22, %v1637_v16  ;;  %v2530_v46 = vmul.f32 %v2432_v25, %v5854_v31  ;;  %v5879_v20 = vmul.f32 %v2722_v33, %v2232_v49 }
 0x270   :  { %v1830_v58 = vpop.f32.mrf.mxu0  ;;  %3051 = vmatmul.bf16.gmra.mxu2 %v6360_v6  ;;  %v2853_v18 = vpack.c.bf16 %v2763_v45, %v2761_v2  ;;  %v2724_v43 = vadd.f32 1.0, %v3982_v21 }
 0x271   :  { %v2375_v26 = vadd.f32 0.7978846, %v2277_v56  ;;  %v1831_v50 = vadd.f32 %v1830_v58, %v5695_v57  ;;  %v1963_v38 = vpop.f32.mrf.mxu1  ;;  %v6362_v56 = vld [vmem:[#allocation16_spill] sm:$0xff]  ;;  %v2140_v7 = vmul.f32 %v1770_v55, %v1770_v55  ;;  %6363 = vst [vmem:[#allocation6_spill] sm:$0xff] %v5879_v20 }
 0x273   :  { %v2473_v9 = vmul.f32 %v2375_v26, %v5856_v30  ;;  %v5868_v40 = vadd.f32 %v1963_v38, %v1831_v50  ;;  %1869 = vmatmul.bf16.gmra.mxu0 %v6361_v27  ;;  %v1639_v58 = vpop.f32.mrf.mxu2  ;;  %v5881_v26 = vmul.f32 %v2724_v43, %v2234_v63  ;;  %v2336_v35 = vmul.f32 0.035677407, %v2140_v7  ;;  %3184 = vmatmul.bf16.gmra.mxu3 %v2853_v18  ;;  %v3984_v21 = vpop.eup %3983 }
 0x274   :  { %2002 = vmatmul.bf16.gmra.mxu1 %v6362_v56  ;;  %v1640_v51 = vadd.f32 %v1639_v58, %v4801_v8  ;;  %v2667_v27 = vadd.f32 1.0, %v3984_v21  ;;  %v2179_v56 = vmul.f32 0.5, %v5856_v30 }
 0x275   :  { %3985 = vtanh.f32 %v2473_v9  ;;  %v2083_v16 = vmul.f32 %v5868_v40, %v5868_v40  ;;  %v2434_v0 = vadd.f32 0.7978846, %v2336_v35 }
 0x276   :  { %3987 = vtanh.f32 %v2530_v46  ;;  %v1772_v22 = vpop.f32.mrf.mxu3 }
 0x277   :  { %v2279_v25 = vmul.f32 0.035677407, %v2083_v16  ;;  %v2532_v33 = vmul.f32 %v2434_v0, %v1770_v55  ;;  %v5887_v9 = vadd.f32 %v1772_v22, %v1640_v51  ;;  %v2177_v51 = vmul.f32 0.5, %v5835_v17 }
 0x278   :  { %v1832_v2 = vpop.f32.mrf.mxu0  ;;  %v6364_v17 = vpack.c.bf16 %v5214_v37, %v5212_v28 }
 0x279   :  { %v1833_v50 = vadd.f32 %v1832_v2, %v5695_v57  ;;  %v1965_v38 = vpop.f32.mrf.mxu1  ;;  %3989 = vtanh.f32 %v2532_v33  ;;  %v2377_v49 = vadd.f32 0.7978846, %v2279_v25  ;;  %v2142_v63 = vmul.f32 %v5887_v9, %v5887_v9 }
 0x27a   :  { %v2765_v45 = vmul.f32 %v2667_v27, %v2177_v51 }
 0x27b   :  { %v5889_v29 = vadd.f32 %v1965_v38, %v1833_v50  ;;  %v3986_v6 = vpop.eup %3985  ;;  %v1641_v43 = vpop.f32.mrf.mxu2  ;;  %v2338_v16 = vmul.f32 0.035677407, %v2142_v63  ;;  %v2475_v25 = vmul.f32 %v2377_v49, %v5868_v40  ;;  %v2236_v49 = vmul.f32 0.5, %v5854_v31 }
 0x27c   :  { %v2669_v46 = vadd.f32 1.0, %v3986_v6  ;;  %v3988_v7 = vpop.eup %3987  ;;  %v1642_v35 = vadd.f32 %v1641_v43, %v4801_v8 }
 0x27d   :  { %v2085_v18 = vmul.f32 %v5889_v29, %v5889_v29  ;;  %v2436_v50 = vadd.f32 0.7978846, %v2338_v16  ;;  %v2726_v33 = vadd.f32 1.0, %v3988_v7  ;;  %v6366_v16 = vld [vmem:[#allocation19_spill] sm:$0xff]  ;;  %3991 = vtanh.f32 %v2475_v25 }
 0x27e   :  { %v2767_v0 = vmul.f32 %v2669_v46, %v2179_v56  ;;  %v1774_v30 = vpop.f32.mrf.mxu3  ;;  %v2238_v56 = vmul.f32 0.5, %v1770_v55  ;;  %v6365_v46 = vld [vmem:[#allocation18_spill] sm:$0xff] }
 0x27f   :  { %v2281_v58 = vmul.f32 0.035677407, %v2085_v18  ;;  %v3990_v6 = vpop.eup %3989  ;;  %v1775_v18 = vadd.f32 %v1774_v30, %v1642_v35  ;;  %v2534_v27 = vmul.f32 %v2436_v50, %v5887_v9  ;;  %v5912_v28 = vmul.f32 %v2726_v33, %v2236_v49 }
 0x280   :  { %v1835_v2 = vpop.f32.mrf.mxu0  ;;  %3056 = vmatmul.bf16.gmra.mxu2 %v6364_v17  ;;  %v2855_v43 = vpack.c.bf16 %v2767_v0, %v2765_v45  ;;  %v2728_v7 = vadd.f32 1.0, %v3990_v6 }
 0x281   :  { %v2379_v38 = vadd.f32 0.7978846, %v2281_v58  ;;  %v1836_v22 = vadd.f32 %v1835_v2, %v5695_v57  ;;  %v1968_v21 = vpop.f32.mrf.mxu1  ;;  %v2144_v58 = vmul.f32 %v1775_v18, %v1775_v18  ;;  %v2242_v0 = vmul.f32 0.5, %v1775_v18 }
 0x282   :  { %v5914_v37 = vmul.f32 %v2728_v7, %v2238_v56 }
 0x283   :  { %v2477_v63 = vmul.f32 %v2379_v38, %v5889_v29  ;;  %v5901_v20 = vadd.f32 %v1968_v21, %v1836_v22  ;;  %1874 = vmatmul.bf16.gmra.mxu0 %v6365_v46  ;;  %v1644_v51 = vpop.f32.mrf.mxu2  ;;  %v2340_v31 = vmul.f32 0.035677407, %v2144_v58  ;;  %3189 = vmatmul.bf16.gmra.mxu3 %v2855_v43  ;;  %v3992_v22 = vpop.eup %3991  ;;  %v2183_v46 = vmul.f32 0.5, %v5889_v29 }
 0x284   :  { %2007 = vmatmul.bf16.gmra.mxu1 %v6366_v16  ;;  %v1645_v45 = vadd.f32 %v1644_v51, %v4801_v8  ;;  %v2671_v43 = vadd.f32 1.0, %v3992_v22  ;;  %v2181_v58 = vmul.f32 0.5, %v5868_v40 }
 0x285   :  { %3993 = vtanh.f32 %v2477_v63  ;;  %v2087_v35 = vmul.f32 %v5901_v20, %v5901_v20  ;;  %v2438_v25 = vadd.f32 0.7978846, %v2340_v31 }
 0x286   :  { %3995 = vtanh.f32 %v2534_v27  ;;  %v1777_v33 = vpop.f32.mrf.mxu3 }
 0x287   :  { %v2283_v55 = vmul.f32 0.035677407, %v2087_v35  ;;  %v2536_v21 = vmul.f32 %v2438_v25, %v1775_v18  ;;  %v5922_v17 = vadd.f32 %v1777_v33, %v1645_v45 }
 0x288   :  { %v1837_v2 = vpop.f32.mrf.mxu0 }
 0x289   :  { %v1838_v50 = vadd.f32 %v1837_v2, %v5695_v57  ;;  %v1970_v38 = vpop.f32.mrf.mxu1  ;;  %v2381_v63 = vadd.f32 0.7978846, %v2283_v55  ;;  %3997 = vtanh.f32 %v2536_v21  ;;  %v2146_v16 = vmul.f32 %v5922_v17, %v5922_v17 }
 0x28a   :  { %v2769_v21 = vmul.f32 %v2671_v43, %v2181_v58 }
 0x28b   :  { %v5920_v30 = vadd.f32 %v1970_v38, %v1838_v50  ;;  %v3994_v6 = vpop.eup %3993  ;;  %v1646_v7 = vpop.f32.mrf.mxu2  ;;  %v2479_v51 = vmul.f32 %v2381_v63, %v5901_v20  ;;  %v2342_v31 = vmul.f32 0.035677407, %v2146_v16  ;;  %v6367_v16 = vpack.c.bf16 %v5276_v3, %v5274_v32 }
 0x28c   :  { %v2673_v56 = vadd.f32 1.0, %v3994_v6  ;;  %v3996_v27 = vpop.eup %3995  ;;  %v1647_v55 = vadd.f32 %v1646_v7, %v4801_v8  ;;  %v2240_v6 = vmul.f32 0.5, %v5887_v9  ;;  %v6368_v7 = vld [vmem:[#allocation20_spill] sm:$0xff] }
 0x28d   :  { %v2089_v49 = vmul.f32 %v5920_v30, %v5920_v30  ;;  %v2730_v29 = vadd.f32 1.0, %v3996_v27  ;;  %v2440_v22 = vadd.f32 0.7978846, %v2342_v31  ;;  %3999 = vtanh.f32 %v2479_v51  ;;  %v6369_v27 = vld [vmem:[#allocation21_spill] sm:$0xff] }
 0x28e   :  { %v2771_v2 = vmul.f32 %v2673_v56, %v2183_v46 }
 0x28f   :  { %v2285_v35 = vmul.f32 0.035677407, %v2089_v49  ;;  %v3998_v33 = vpop.eup %3997  ;;  %v1779_v49 = vpop.f32.mrf.mxu3  ;;  %v2538_v18 = vmul.f32 %v2440_v22, %v5922_v17  ;;  %v5945_v31 = vmul.f32 %v2730_v29, %v2240_v6 }
 0x290   :  { %v1840_v45 = vpop.f32.mrf.mxu0  ;;  %3061 = vmatmul.bf16.gmra.mxu2 %v6367_v16  ;;  %v1780_v56 = vadd.f32 %v1779_v49, %v1647_v55  ;;  %v2857_v46 = vpack.c.bf16 %v2771_v2, %v2769_v21  ;;  %v2732_v43 = vadd.f32 1.0, %v3998_v33 }
 0x291   :  { %v2383_v25 = vadd.f32 0.7978846, %v2285_v35  ;;  %v1841_v50 = vadd.f32 %v1840_v45, %v5695_v57  ;;  %v1973_v38 = vpop.f32.mrf.mxu1 }
 0x292   :  { %v2148_v58 = vmul.f32 %v1780_v56, %v1780_v56  ;;  %v5947_v32 = vmul.f32 %v2732_v43, %v2242_v0 }
 0x293   :  { %v2481_v40 = vmul.f32 %v2383_v25, %v5920_v30  ;;  %v5935_v63 = vadd.f32 %v1973_v38, %v1841_v50  ;;  %1879 = vmatmul.bf16.gmra.mxu0 %v6368_v7  ;;  %v1649_v35 = vpop.f32.mrf.mxu2  ;;  %3194 = vmatmul.bf16.gmra.mxu3 %v2857_v46  ;;  %v4000_v38 = vpop.eup %3999  ;;  %v2187_v7 = vmul.f32 0.5, %v5920_v30 }
 0x294   :  { %2012 = vmatmul.bf16.gmra.mxu1 %v6369_v27  ;;  %v2344_v3 = vmul.f32 0.035677407, %v2148_v58  ;;  %v1650_v55 = vadd.f32 %v1649_v35, %v4801_v8  ;;  %v2886_v2 = vpack.c.bf16 %v5947_v32, %v5945_v31  ;;  %v2675_v46 = vadd.f32 1.0, %v4000_v38 }
 0x295   :  { %4001 = vtanh.f32 %v2481_v40  ;;  %v2091_v9 = vmul.f32 %v5935_v63, %v5935_v63 }
 0x296   :  { %4003 = vtanh.f32 %v2538_v18  ;;  %v2442_v22 = vadd.f32 0.7978846, %v2344_v3 }
 0x297   :  { %v2287_v51 = vmul.f32 0.035677407, %v2091_v9  ;;  %v1782_v29 = vpop.f32.mrf.mxu3  ;;  %v2185_v9 = vmul.f32 0.5, %v5901_v20 }
 0x298   :  { %v1842_v45 = vpop.f32.mrf.mxu0  ;;  %v2540_v0 = vmul.f32 %v2442_v22, %v1780_v56  ;;  %v5955_v40 = vadd.f32 %v1782_v29, %v1650_v55 }
 0x299   :  { %v1843_v25 = vadd.f32 %v1842_v45, %v5695_v57  ;;  %v1975_v50 = vpop.f32.mrf.mxu1  ;;  %v2385_v6 = vadd.f32 0.7978846, %v2287_v51  ;;  %v2773_v22 = vmul.f32 %v2675_v46, %v2185_v9  ;;  %v2246_v46 = vmul.f32 0.5, %v1780_v56 }
 0x29a   :  { %4005 = vtanh.f32 %v2540_v0  ;;  %v2150_v27 = vmul.f32 %v5955_v40, %v5955_v40 }
 0x29b   :  { %v4002_v21 = vpop.eup %4001  ;;  %v5953_v33 = vadd.f32 %v1975_v50, %v1843_v25  ;;  %v1651_v43 = vpop.f32.mrf.mxu2  ;;  %v2483_v35 = vmul.f32 %v2385_v6, %v5935_v63  ;;  %v6370_v6 = vpack.c.bf16 %v5332_v48, %v5330_v11 }
 0x29c   :  { %v2677_v49 = vadd.f32 1.0, %v4002_v21  ;;  %v4004_v58 = vpop.eup %4003  ;;  %v2346_v3 = vmul.f32 0.035677407, %v2150_v27  ;;  %v1652_v51 = vadd.f32 %v1651_v43, %v4801_v8  ;;  %v2244_v27 = vmul.f32 0.5, %v5922_v17  ;;  %v6371_v43 = vld [vmem:[#allocation22_spill] sm:$0xff] }
 0x29d   :  { %v2093_v16 = vmul.f32 %v5953_v33, %v5953_v33  ;;  %v2734_v21 = vadd.f32 1.0, %v4004_v58  ;;  %4007 = vtanh.f32 %v2483_v35 }
 0x29e   :  { %v2775_v45 = vmul.f32 %v2677_v49, %v2187_v7  ;;  %v2444_v38 = vadd.f32 0.7978846, %v2346_v3 }
 0x29f   :  { %v2289_v18 = vmul.f32 0.035677407, %v2093_v16  ;;  %v1784_v0 = vpop.f32.mrf.mxu3 }
 0x2a0   :  { %v1845_v55 = vpop.f32.mrf.mxu0  ;;  %3066 = vmatmul.bf16.gmra.mxu2 %v6370_v6  ;;  %v4006_v16 = vpop.eup %4005  ;;  %v1785_v49 = vadd.f32 %v1784_v0, %v1652_v51  ;;  %v2859_v7 = vpack.c.bf16 %v2775_v45, %v2773_v22  ;;  %v2542_v3 = vmul.f32 %v2444_v38, %v5955_v40 }
 0x2a1   :  { %v2387_v25 = vadd.f32 0.7978846, %v2289_v18  ;;  %v1846_v50 = vadd.f32 %v1845_v55, %v5695_v57  ;;  %v1978_v30 = vpop.f32.mrf.mxu1  ;;  %v6372_v18 = vld [vmem:[#allocation23_spill] sm:$0xff]  ;;  %v2736_v58 = vadd.f32 1.0, %v4006_v16  ;;  %v5978_v55 = vmul.f32 %v2734_v21, %v2244_v27 }
 0x2a2   :  { %v2152_v11 = vmul.f32 %v1785_v49, %v1785_v49 }
 0x2a3   :  { %v2485_v29 = vmul.f32 %v2387_v25, %v5953_v33  ;;  %v5967_v20 = vadd.f32 %v1978_v30, %v1846_v50  ;;  %1884 = vmatmul.bf16.gmra.mxu0 %v6371_v43  ;;  %v1654_v48 = vpop.f32.mrf.mxu2  ;;  %v5980_v17 = vmul.f32 %v2736_v58, %v2246_v46  ;;  %3199 = vmatmul.bf16.gmra.mxu3 %v2859_v7  ;;  %v4008_v22 = vpop.eup %4007  ;;  %v2191_v46 = vmul.f32 0.5, %v5953_v33 }
 0x2a4   :  { %2017 = vmatmul.bf16.gmra.mxu1 %v6372_v18  ;;  %v2348_v35 = vmul.f32 0.035677407, %v2152_v11  ;;  %v1655_v45 = vadd.f32 %v1654_v48, %v4801_v8  ;;  %v2679_v18 = vadd.f32 1.0, %v4008_v22 }
 0x2a5   :  { %4009 = vtanh.f32 %v2485_v29  ;;  %v2095_v9 = vmul.f32 %v5967_v20, %v5967_v20 }
 0x2a6   :  { %4011 = vtanh.f32 %v2542_v3  ;;  %v2446_v38 = vadd.f32 0.7978846, %v2348_v35  ;;  %v2189_v3 = vmul.f32 0.5, %v5935_v63  ;;  %v6373_v63 = vpack.c.bf16 %v5388_v42, %v5386_v1 }
 0x2a7   :  { %v2291_v51 = vmul.f32 0.035677407, %v2095_v9  ;;  %v1787_v21 = vpop.f32.mrf.mxu3 }
 0x2a8   :  { %v1847_v25 = vpop.f32.mrf.mxu0  ;;  %v2544_v6 = vmul.f32 %v2446_v38, %v1785_v49  ;;  %v5988_v27 = vadd.f32 %v1787_v21, %v1655_v45 }
 0x2a9   :  { %v1848_v56 = vadd.f32 %v1847_v25, %v5695_v57  ;;  %v1980_v50 = vpop.f32.mrf.mxu1  ;;  %v2389_v16 = vadd.f32 0.7978846, %v2291_v51 }
 0x2aa   :  { %4013 = vtanh.f32 %v2544_v6  ;;  %v2154_v9 = vmul.f32 %v5988_v27, %v5988_v27 }
 0x2ab   :  { %v4010_v29 = vpop.eup %4009  ;;  %v5986_v0 = vadd.f32 %v1980_v50, %v1848_v56  ;;  %v1656_v58 = vpop.f32.mrf.mxu2  ;;  %v2487_v35 = vmul.f32 %v2389_v16, %v5967_v20 }
 0x2ac   :  { %v2681_v7 = vadd.f32 1.0, %v4010_v29  ;;  %v4012_v48 = vpop.eup %4011  ;;  %v2350_v51 = vmul.f32 0.035677407, %v2154_v9  ;;  %v1657_v45 = vadd.f32 %v1656_v58, %v4801_v8  ;;  %v2777_v29 = vmul.f32 %v2679_v18, %v2189_v3  ;;  %v6375_v58 = vld [vmem:[#allocation25_spill] sm:$0xff] }
 0x2ad   :  { %v2097_v43 = vmul.f32 %v5986_v0, %v5986_v0  ;;  %v2738_v21 = vadd.f32 1.0, %v4012_v48  ;;  %4015 = vtanh.f32 %v2487_v35  ;;  %v2248_v18 = vmul.f32 0.5, %v5955_v40 }
 0x2ae   :  { %v2779_v25 = vmul.f32 %v2681_v7, %v2191_v46  ;;  %v2448_v38 = vadd.f32 0.7978846, %v2350_v51  ;;  %v6374_v46 = vld [vmem:[#allocation24_spill] sm:$0xff]  ;;  %v2250_v3 = vmul.f32 0.5, %v1785_v49 }
 0x2af   :  { %v2293_v11 = vmul.f32 0.035677407, %v2097_v43  ;;  %v1789_v30 = vpop.f32.mrf.mxu3 }
 0x2b0   :  { %v1850_v50 = vpop.f32.mrf.mxu0  ;;  %3071 = vmatmul.bf16.gmra.mxu2 %v6373_v63  ;;  %v4014_v16 = vpop.eup %4013  ;;  %v1790_v43 = vadd.f32 %v1789_v30, %v1657_v45  ;;  %v2861_v7 = vpack.c.bf16 %v2779_v25, %v2777_v29  ;;  %v2546_v48 = vmul.f32 %v2448_v38, %v5988_v27  ;;  %v6011_v30 = vmul.f32 %v2738_v21, %v2248_v18 }
 0x2b1   :  { %v2391_v56 = vadd.f32 0.7978846, %v2293_v11  ;;  %v1983_v22 = vpop.f32.mrf.mxu1  ;;  %v1851_v33 = vadd.f32 %v1850_v50, %v5695_v57  ;;  %v2740_v11 = vadd.f32 1.0, %v4014_v16 }
 0x2b2   :  { %v2156_v51 = vmul.f32 %v1790_v43, %v1790_v43 }
 0x2b3   :  { %v2489_v6 = vmul.f32 %v2391_v56, %v5986_v0  ;;  %v6003_v9 = vadd.f32 %v1983_v22, %v1851_v33  ;;  %1889 = vmatmul.bf16.gmra.mxu0 %v6374_v46  ;;  %v1659_v42 = vpop.f32.mrf.mxu2  ;;  %v6013_v35 = vmul.f32 %v2740_v11, %v2250_v3  ;;  %3204 = vmatmul.bf16.gmra.mxu3 %v2861_v7  ;;  %v4016_v22 = vpop.eup %4015 }
 0x2b4   :  { %2022 = vmatmul.bf16.gmra.mxu1 %v6375_v58  ;;  %v2352_v45 = vmul.f32 0.035677407, %v2156_v51  ;;  %v1660_v56 = vadd.f32 %v1659_v42, %v4801_v8  ;;  %v2683_v58 = vadd.f32 1.0, %v4016_v22  ;;  %v2195_v8 = vmul.f32 0.5, %v5986_v0 }
 0x2b5   :  { %4017 = vtanh.f32 %v2489_v6  ;;  %v2099_v1 = vmul.f32 %v6003_v9, %v6003_v9  ;;  %v2890_v50 = vpack.c.bf16 %v6013_v35, %v6011_v30  ;;  %v6376_v0 = vpack.c.bf16 %v5449_v5, %v5447_v34 }
 0x2b6   :  { %4019 = vtanh.f32 %v2546_v48  ;;  %v2450_v38 = vadd.f32 0.7978846, %v2352_v45  ;;  %v2193_v48 = vmul.f32 0.5, %v5967_v20 }
 0x2b7   :  { %v2295_v25 = vmul.f32 0.035677407, %v2099_v1  ;;  %v1792_v21 = vpop.f32.mrf.mxu3 }
 0x2b8   :  { %v1852_v40 = vpop.f32.mrf.mxu0  ;;  %v2548_v6 = vmul.f32 %v2450_v38, %v1790_v43  ;;  %v6019_v16 = vadd.f32 %v1792_v21, %v1660_v56 }
 0x2b9   :  { %v1985_v49 = vpop.f32.mrf.mxu1  ;;  %v1853_v33 = vadd.f32 %v1852_v40, %v5695_v57  ;;  %v2393_v63 = vadd.f32 0.7978846, %v2295_v25 }
 0x2ba   :  { %4021 = vtanh.f32 %v2548_v6  ;;  %v6377_v6 = vld [vmem:[#allocation26_spill] sm:$0xff] }
 0x2bb   :  { %v4018_v29 = vpop.eup %4017  ;;  %v1986_v46 = vadd.f32 %v1985_v49, %v1853_v33  ;;  %v1661_v3 = vpop.f32.mrf.mxu2  ;;  %v2491_v51 = vmul.f32 %v2393_v63, %v6003_v9  ;;  %v2781_v49 = vmul.f32 %v2683_v58, %v2193_v48  ;;  %v6378_v63 = vld [vmem:[#allocation27_spill] sm:$0xff]  ;;  %v2252_v58 = vmul.f32 0.5, %v5988_v27 }
 0x2bc   :  { %v2685_v7 = vadd.f32 1.0, %v4018_v29  ;;  %v4020_v11 = vpop.eup %4019 }
 0x2bd   :  { %v2101_v18 = vmul.f32 %v1986_v46, %v1986_v46  ;;  %v2742_v38 = vadd.f32 1.0, %v4020_v11  ;;  %4023 = vtanh.f32 %v2491_v51 }
 0x2be   :  { %v2783_v42 = vmul.f32 %v2685_v7, %v2195_v8  ;;  %v6035_v7 = vld [vmem:[%s6279_s6] ss:$0 sm:$0xff]  ;;  %v2254_v8 = vmul.f32 0.5, %v1790_v43 }
 0x2bf   :  { %v2297_v1 = vmul.f32 0.035677407, %v2101_v18  ;;  %v1794_v22 = vpop.f32.mrf.mxu3  ;;  %v6040_v3 = vmul.f32 %v2742_v38, %v2252_v58 }
 0x2c0   :  { %v1855_v45 = vpop.f32.mrf.mxu0  ;;  %3076 = vmatmul.bf16.gmra.mxu2 %v6376_v0  ;;  %v4022_v33 = vpop.eup %4021  ;;  %v2863_v21 = vpack.c.bf16 %v2783_v42, %v2781_v49  ;;  %v2199_v0 = vmul.f32 0.5, %v1986_v46 }
 0x2c1   :  { %v1988_v40 = vpop.f32.mrf.mxu1  ;;  %v2395_v25 = vadd.f32 0.7978846, %v2297_v1  ;;  %v1856_v56 = vadd.f32 %v1855_v45, %v5695_v57  ;;  %v2744_v34 = vadd.f32 1.0, %v4022_v33 }
 0x2c3   :  { %v2493_v29 = vmul.f32 %v2395_v25, %v1986_v46  ;;  %v6028_v20 = vadd.f32 %v1988_v40, %v1856_v56  ;;  %1894 = vmatmul.bf16.gmra.mxu0 %v6377_v6  ;;  %v3037_v18 = vpop.f32.mrf.mxu2  ;;  %v6042_v11 = vmul.f32 %v2744_v34, %v2254_v8  ;;  %3209 = vmatmul.bf16.gmra.mxu3 %v2863_v21  ;;  %v4024_v43 = vpop.eup %4023  ;;  %v2197_v6 = vmul.f32 0.5, %v6003_v9 }
 0x2c4   :  { %2027 = vmatmul.bf16.gmra.mxu1 %v6378_v63  ;;  %v3038_v51 = vadd.f32 %v6035_v7, %v3037_v18  ;;  %v2687_v22 = vadd.f32 1.0, %v4024_v43  ;;  %v6379_v46 = vpack.c.bf16 %v5493_v41, %v5502_v19 }
 0x2c5   :  { %v2103_v5 = vmul.f32 %v6028_v20, %v6028_v20  ;;  %4025 = vtanh.f32 %v2493_v29  ;;  %v2892_v27 = vpack.c.bf16 %v6042_v11, %v6040_v3 }
 0x2c7   :  { %v2299_v48 = vmul.f32 0.035677407, %v2103_v5  ;;  %v3170_v40 = vpop.f32.mrf.mxu3 }
 0x2c8   :  { %v1857_v1 = vpop.f32.mrf.mxu0  ;;  %v3171_v56 = vadd.f32 %v3170_v40, %v3038_v51 }
 0x2c9   :  { %v1990_v42 = vpop.f32.mrf.mxu1  ;;  %v1858_v45 = vadd.f32 %v1857_v1, %v5695_v57  ;;  %v2397_v25 = vadd.f32 0.7978846, %v2299_v48  ;;  %v2785_v48 = vmul.f32 %v2687_v22, %v2197_v6 }
 0x2ca   :  { %3294 = vst [vmem:[#allocation2] sm:$0xff] %v3171_v56  ;;  %v6381_v56 = vld [vmem:[#allocation29_spill] sm:$0xff] }
 0x2cb   :  { %v1991_v49 = vadd.f32 %v1990_v42, %v1858_v45  ;;  %v4026_v38 = vpop.eup %4025  ;;  %v3039_v29 = vpop.f32.mrf.mxu2  ;;  %v2495_v63 = vmul.f32 %v2397_v25, %v6028_v20  ;;  %v6380_v25 = vld [vmem:[#allocation28_spill] sm:$0xff] }
 0x2cc   :  { %v2689_v21 = vadd.f32 1.0, %v4026_v38  ;;  %v3040_v8 = vadd.f32 %v6035_v7, %v3039_v29 }
 0x2cd   :  { %v2105_v33 = vmul.f32 %v1991_v49, %v1991_v49  ;;  %4027 = vtanh.f32 %v2495_v63 }
 0x2ce   :  { %v2787_v34 = vmul.f32 %v2689_v21, %v2199_v0 }
 0x2cf   :  { %v2301_v58 = vmul.f32 0.035677407, %v2105_v33  ;;  %v3172_v42 = vpop.f32.mrf.mxu3 }
 0x2d0   :  { %v1860_v5 = vpop.f32.mrf.mxu0  ;;  %3081 = vmatmul.bf16.gmra.mxu2 %v6379_v46  ;;  %v2865_v43 = vpack.c.bf16 %v2787_v34, %v2785_v48  ;;  %v3173_v45 = vadd.f32 %v3172_v42, %v3040_v8  ;;  %v2201_v42 = vmul.f32 0.5, %v6028_v20 }
 0x2d1   :  { %v1993_v18 = vpop.f32.mrf.mxu1  ;;  %v2399_v51 = vadd.f32 0.7978846, %v2301_v58  ;;  %v1861_v1 = vadd.f32 %v1860_v5, %v5695_v57 }
 0x2d2   :  { %3295 = vst [vmem:[#allocation2 + $0x8] sm:$0xff] %v3173_v45 }
 0x2d3   :  { %v2497_v9 = vmul.f32 %v2399_v51, %v1991_v49  ;;  %v6055_v40 = vadd.f32 %v1993_v18, %v1861_v1  ;;  %1899 = vmatmul.bf16.gmra.mxu0 %v6380_v25  ;;  %v3042_v22 = vpop.f32.mrf.mxu2  ;;  %3214 = vmatmul.bf16.gmra.mxu3 %v2865_v43  ;;  %v4028_v29 = vpop.eup %4027  ;;  %v2203_v18 = vmul.f32 0.5, %v1991_v49  ;;  %v6382_v49 = vld [vmem:[#allocation32_spill] sm:$0xff] }
 0x2d4   :  { %2032 = vmatmul.bf16.gmra.mxu1 %v6381_v56  ;;  %v3043_v41 = vadd.f32 %v6035_v7, %v3042_v22  ;;  %v2691_v5 = vadd.f32 1.0, %v4028_v29 }
 0x2d5   :  { %4029 = vtanh.f32 %v2497_v9  ;;  %v2107_v38 = vmul.f32 %v6055_v40, %v6055_v40 }
 0x2d7   :  { %v2303_v0 = vmul.f32 0.035677407, %v2107_v38  ;;  %v3175_v6 = vpop.f32.mrf.mxu3  ;;  %v2789_v38 = vmul.f32 %v2691_v5, %v2201_v42 }
 0x2d8   :  { %v1862_v19 = vpop.f32.mrf.mxu0  ;;  %v3176_v8 = vadd.f32 %v3175_v6, %v3043_v41  ;;  %v6384_v6 = vld [vmem:[#allocation30_spill] sm:$0xff] }
 0x2d9   :  { %v1995_v33 = vpop.f32.mrf.mxu1  ;;  %v1863_v21 = vadd.f32 %v1862_v19, %v5695_v57  ;;  %v2401_v58 = vadd.f32 0.7978846, %v2303_v0  ;;  %v6383_v19 = vpack.c.bf16 %v5550_v36, %v6382_v49 }
 0x2da   :  { %3296 = vst [vmem:[#allocation2 + $0x10] sm:$0xff] %v3176_v8 }
 0x2db   :  { %v4030_v63 = vpop.eup %4029  ;;  %v1996_v34 = vadd.f32 %v1995_v33, %v1863_v21  ;;  %v3044_v1 = vpop.f32.mrf.mxu2  ;;  %v2499_v43 = vmul.f32 %v2401_v58, %v6055_v40 }
 0x2dc   :  { %v2693_v48 = vadd.f32 1.0, %v4030_v63  ;;  %v3045_v45 = vadd.f32 %v6035_v7, %v3044_v1  ;;  %v6385_v63 = vld [vmem:[#allocation31_spill] sm:$0xff] }
 0x2dd   :  { %v2109_v51 = vmul.f32 %v1996_v34, %v1996_v34  ;;  %4031 = vtanh.f32 %v2499_v43 }
 0x2de   :  { %v2791_v46 = vmul.f32 %v2693_v48, %v2203_v18 }
 0x2df   :  { %v2305_v9 = vmul.f32 0.035677407, %v2109_v51  ;;  %v3177_v41 = vpop.f32.mrf.mxu3 }
 0x2e0   :  { %v1865_v25 = vpop.f32.mrf.mxu0  ;;  %3086 = vmatmul.bf16.gmra.mxu2 %v6383_v19  ;;  %v2867_v33 = vpack.c.bf16 %v2791_v46, %v2789_v38  ;;  %v3178_v29 = vadd.f32 %v3177_v41, %v3045_v45  ;;  %v2205_v41 = vmul.f32 0.5, %v6055_v40 }
 0x2e1   :  { %v1998_v56 = vpop.f32.mrf.mxu1  ;;  %v2403_v22 = vadd.f32 0.7978846, %v2305_v9  ;;  %v1866_v0 = vadd.f32 %v1865_v25, %v5695_v57 }
 0x2e2   :  { %3297 = vst [vmem:[#allocation2 + $0x18] sm:$0xff] %v3178_v29 }
 0x2e3   :  { %v2501_v20 = vmul.f32 %v2403_v22, %v1996_v34  ;;  %v6070_v21 = vadd.f32 %v1998_v56, %v1866_v0  ;;  %1904 = vmatmul.bf16.gmra.mxu0 %v6384_v6  ;;  %v3047_v8 = vpop.f32.mrf.mxu2  ;;  %3219 = vmatmul.bf16.gmra.mxu3 %v2867_v33  ;;  %v4032_v51 = vpop.eup %4031  ;;  %v2207_v56 = vmul.f32 0.5, %v1996_v34  ;;  %v6386_v34 = vpack.c.bf16 %v5646_v44, %v5640_v14 }
 0x2e4   :  { %2037 = vmatmul.bf16.gmra.mxu1 %v6385_v63  ;;  %v3048_v36 = vadd.f32 %v6035_v7, %v3047_v8  ;;  %v2695_v25 = vadd.f32 1.0, %v4032_v51  ;;  %v6387_v51 = vld [vmem:[#allocation33_spill] sm:$0xff] }
 0x2e5   :  { %4033 = vtanh.f32 %v2501_v20  ;;  %v2111_v58 = vmul.f32 %v6070_v21, %v6070_v21 }
 0x2e6   :  { %v2793_v63 = vmul.f32 %v2695_v25, %v2205_v41 }
 0x2e7   :  { %v2307_v5 = vmul.f32 0.035677407, %v2111_v58  ;;  %v3180_v42 = vpop.f32.mrf.mxu3 }
 0x2e8   :  { %v1867_v18 = vpop.f32.mrf.mxu0  ;;  %v3181_v9 = vadd.f32 %v3180_v42, %v3048_v36 }
 0x2e9   :  { %v2000_v48 = vpop.f32.mrf.mxu1  ;;  %v1868_v1 = vadd.f32 %v1867_v18, %v5695_v57  ;;  %v2405_v43 = vadd.f32 0.7978846, %v2307_v5 }
 0x2ea   :  { %3298 = vst [vmem:[#allocation2 + $0x20] sm:$0xff] %v3181_v9 }
 0x2eb   :  { %v4034_v46 = vpop.eup %4033  ;;  %v2001_v45 = vadd.f32 %v2000_v48, %v1868_v1  ;;  %v3049_v0 = vpop.f32.mrf.mxu2  ;;  %v2503_v19 = vmul.f32 %v2405_v43, %v6070_v21  ;;  %v6388_v1 = vld [vmem:[#allocation34_spill] sm:$0xff] }
 0x2ec   :  { %v2697_v38 = vadd.f32 1.0, %v4034_v46  ;;  %v3050_v20 = vadd.f32 %v6035_v7, %v3049_v0 }
 0x2ed   :  { %v2113_v22 = vmul.f32 %v2001_v45, %v2001_v45  ;;  %4035 = vtanh.f32 %v2503_v19 }
 0x2ee   :  { %v2795_v49 = vmul.f32 %v2697_v38, %v2207_v56 }
 0x2ef   :  { %v2309_v33 = vmul.f32 0.035677407, %v2113_v22  ;;  %v3182_v5 = vpop.f32.mrf.mxu3 }
 0x2f0   :  { %v1870_v29 = vpop.f32.mrf.mxu0  ;;  %3091 = vmatmul.bf16.gmra.mxu2 %v6386_v34  ;;  %v2869_v36 = vpack.c.bf16 %v2795_v49, %v2793_v63  ;;  %v3183_v18 = vadd.f32 %v3182_v5, %v3050_v20  ;;  %v2209_v63 = vmul.f32 0.5, %v6070_v21 }
 0x2f1   :  { %v2003_v6 = vpop.f32.mrf.mxu1  ;;  %v2407_v58 = vadd.f32 0.7978846, %v2309_v33  ;;  %v1871_v8 = vadd.f32 %v1870_v29, %v5695_v57  ;;  %v2211_v33 = vmul.f32 0.5, %v2001_v45 }
 0x2f2   :  { %3299 = vst [vmem:[#allocation2 + $0x28] sm:$0xff] %v3183_v18 }
 0x2f3   :  { %v2505_v40 = vmul.f32 %v2407_v58, %v2001_v45  ;;  %v6085_v48 = vadd.f32 %v2003_v6, %v1871_v8  ;;  %1909 = vmatmul.bf16.gmra.mxu0 %v6387_v51  ;;  %v3052_v46 = vpop.f32.mrf.mxu2  ;;  %3224 = vmatmul.bf16.gmra.mxu3 %v2869_v36  ;;  %v4036_v25 = vpop.eup %4035  ;;  %v6389_v45 = vpack.c.bf16 %v5680_v24, %v5678_v12 }
 0x2f4   :  { %2042 = vmatmul.bf16.gmra.mxu1 %v6388_v1  ;;  %v3053_v44 = vadd.f32 %v6035_v7, %v3052_v46  ;;  %v2699_v19 = vadd.f32 1.0, %v4036_v25 }
 0x2f5   :  { %4037 = vtanh.f32 %v2505_v40  ;;  %v2115_v42 = vmul.f32 %v6085_v48, %v6085_v48 }
 0x2f6   :  { %v2797_v18 = vmul.f32 %v2699_v19, %v2209_v63 }
 0x2f7   :  { %v2311_v43 = vmul.f32 0.035677407, %v2115_v42  ;;  %v3185_v38 = vpop.f32.mrf.mxu3 }
 0x2f8   :  { %v1872_v14 = vpop.f32.mrf.mxu0  ;;  %v3186_v41 = vadd.f32 %v3185_v38, %v3053_v44 }
 0x2f9   :  { %v2005_v9 = vpop.f32.mrf.mxu1  ;;  %v1873_v56 = vadd.f32 %v1872_v14, %v5695_v57  ;;  %v2409_v0 = vadd.f32 0.7978846, %v2311_v43 }
 0x2fa   :  { %3300 = vst [vmem:[#allocation2 + $0x30] sm:$0xff] %v3186_v41 }
 0x2fb   :  { %v4038_v22 = vpop.eup %4037  ;;  %v2006_v49 = vadd.f32 %v2005_v9, %v1873_v56  ;;  %v3054_v6 = vpop.f32.mrf.mxu2  ;;  %v2507_v8 = vmul.f32 %v2409_v0, %v6085_v48 }
 0x2fc   :  { %v2701_v20 = vadd.f32 1.0, %v4038_v22  ;;  %v3055_v34 = vadd.f32 %v6035_v7, %v3054_v6 }
 0x2fd   :  { %v2117_v29 = vmul.f32 %v2006_v49, %v2006_v49  ;;  %4039 = vtanh.f32 %v2507_v8 }
 0x2fe   :  { %v2799_v58 = vmul.f32 %v2701_v20, %v2211_v33  ;;  %v2215_v20 = vmul.f32 0.5, %v2006_v49 }
 0x2ff   :  { %v2313_v5 = vmul.f32 0.035677407, %v2117_v29  ;;  %v3187_v42 = vpop.f32.mrf.mxu3 }
 0x300   :  { %v1875_v36 = vpop.f32.mrf.mxu0  ;;  %3096 = vmatmul.bf16.gmra.mxu2 %v6389_v45  ;;  %v2871_v46 = vpack.c.bf16 %v2799_v58, %v2797_v18  ;;  %v3188_v43 = vadd.f32 %v3187_v42, %v3055_v34  ;;  %v2213_v58 = vmul.f32 0.5, %v6085_v48 }
 0x301   :  { %v2008_v40 = vpop.f32.mrf.mxu1  ;;  %v2411_v51 = vadd.f32 0.7978846, %v2313_v5  ;;  %v1876_v1 = vadd.f32 %v1875_v36, %v5695_v57 }
 0x302   :  { %3301 = vst [vmem:[#allocation2 + $0x38] sm:$0xff] %v3188_v43 }
 0x303   :  { %v2509_v21 = vmul.f32 %v2411_v51, %v2006_v49  ;;  %v6100_v44 = vadd.f32 %v2008_v40, %v1876_v1  ;;  %1914 = vmatmul.bf16.gmra.mxu0 %v5648_v53  ;;  %v3057_v9 = vpop.f32.mrf.mxu2  ;;  %3229 = vmatmul.bf16.gmra.mxu3 %v2871_v46  ;;  %v4040_v38 = vpop.eup %4039  ;;  %v6390_v49 = vpack.c.bf16 %v5718_v39, %v5716_v61 }
 0x304   :  { %2047 = vmatmul.bf16.gmra.mxu1 %v5668_v23  ;;  %v3058_v12 = vadd.f32 %v6035_v7, %v3057_v9  ;;  %v2703_v33 = vadd.f32 1.0, %v4040_v38 }
 0x305   :  { %4041 = vtanh.f32 %v2509_v21  ;;  %v2119_v14 = vmul.f32 %v6100_v44, %v6100_v44 }
 0x306   :  { %v2801_v51 = vmul.f32 %v2703_v33, %v2213_v58 }
 0x307   :  { %v2315_v25 = vmul.f32 0.035677407, %v2119_v14  ;;  %v3190_v0 = vpop.f32.mrf.mxu3 }
 0x308   :  { %v1877_v24 = vpop.f32.mrf.mxu0  ;;  %v3191_v19 = vadd.f32 %v3190_v0, %v3058_v12 }
 0x309   :  { %v2010_v56 = vpop.f32.mrf.mxu1  ;;  %v1878_v22 = vadd.f32 %v1877_v24, %v5695_v57  ;;  %v2413_v53 = vadd.f32 0.7978846, %v2315_v25 }
 0x30a   :  { %3302 = vst [vmem:[#allocation2 + $0x40] sm:$0xff] %v3191_v19 }
 0x30b   :  { %v4042_v41 = vpop.eup %4041  ;;  %v2011_v23 = vadd.f32 %v2010_v56, %v1878_v22  ;;  %v3059_v63 = vpop.f32.mrf.mxu2  ;;  %v2511_v5 = vmul.f32 %v2413_v53, %v6100_v44 }
 0x30c   :  { %v2705_v29 = vadd.f32 1.0, %v4042_v41  ;;  %v3060_v36 = vadd.f32 %v6035_v7, %v3059_v63 }
 0x30d   :  { %v2121_v6 = vmul.f32 %v2011_v23, %v2011_v23  ;;  %4043 = vtanh.f32 %v2511_v5  ;;  %v2219_v41 = vmul.f32 0.5, %v2011_v23 }
 0x30e   :  { %v2803_v8 = vmul.f32 %v2705_v29, %v2215_v20  ;;  %v2217_v29 = vmul.f32 0.5, %v6100_v44 }
 0x30f   :  { %v2317_v34 = vmul.f32 0.035677407, %v2121_v6  ;;  %v3192_v45 = vpop.f32.mrf.mxu3 }
 0x310   :  { %v1880_v40 = vpop.f32.mrf.mxu0  ;;  %3101 = vmatmul.bf16.gmra.mxu2 %v6390_v49  ;;  %v2873_v46 = vpack.c.bf16 %v2803_v8, %v2801_v51  ;;  %v3193_v21 = vadd.f32 %v3192_v45, %v3060_v36  ;;  %v6391_v51 = vpack.c.bf16 %v5749_v4, %v5747_v54 }
 0x311   :  { %v2013_v18 = vpop.f32.mrf.mxu1  ;;  %v2415_v1 = vadd.f32 0.7978846, %v2317_v34  ;;  %v1881_v42 = vadd.f32 %v1880_v40, %v5695_v57 }
 0x312   :  { %3303 = vst [vmem:[#allocation2 + $0x48] sm:$0xff] %v3193_v21 }
 0x313   :  { %v2513_v48 = vmul.f32 %v2415_v1, %v2011_v23  ;;  %v6115_v43 = vadd.f32 %v2013_v18, %v1881_v42  ;;  %1919 = vmatmul.bf16.gmra.mxu0 %v5700_v47  ;;  %v3062_v9 = vpop.f32.mrf.mxu2  ;;  %3234 = vmatmul.bf16.gmra.mxu3 %v2873_v46  ;;  %v4044_v24 = vpop.eup %4043 }
 0x314   :  { %2052 = vmatmul.bf16.gmra.mxu1 %v5710_v52  ;;  %v3063_v61 = vadd.f32 %v6035_v7, %v3062_v9  ;;  %v2707_v52 = vadd.f32 1.0, %v4044_v24 }
 0x315   :  { %4045 = vtanh.f32 %v2513_v48  ;;  %v2123_v14 = vmul.f32 %v6115_v43, %v6115_v43 }
 0x316   :  { %v2805_v36 = vmul.f32 %v2707_v52, %v2217_v29 }
 0x317   :  { %v2319_v39 = vmul.f32 0.035677407, %v2123_v14  ;;  %v3195_v38 = vpop.f32.mrf.mxu3 }
 0x318   :  { %v1882_v25 = vpop.f32.mrf.mxu0  ;;  %v3196_v47 = vadd.f32 %v3195_v38, %v3063_v61 }
 0x319   :  { %v2015_v12 = vpop.f32.mrf.mxu1  ;;  %v1883_v56 = vadd.f32 %v1882_v25, %v5695_v57  ;;  %v2417_v19 = vadd.f32 0.7978846, %v2319_v39 }
 0x31a   :  { %3304 = vst [vmem:[#allocation2 + $0x50] sm:$0xff] %v3196_v47  ;;  %v2221_v47 = vmul.f32 0.5, %v6115_v43 }
 0x31b   :  { %v4046_v22 = vpop.eup %4045  ;;  %v2016_v0 = vadd.f32 %v2015_v12, %v1883_v56  ;;  %v3064_v20 = vpop.f32.mrf.mxu2  ;;  %v2515_v8 = vmul.f32 %v2417_v19, %v6115_v43 }
 0x31c   :  { %v2709_v53 = vadd.f32 1.0, %v4046_v22  ;;  %v3065_v58 = vadd.f32 %v6035_v7, %v3064_v20 }
 0x31d   :  { %v2125_v33 = vmul.f32 %v2016_v0, %v2016_v0  ;;  %4047 = vtanh.f32 %v2515_v8  ;;  %v2223_v56 = vmul.f32 0.5, %v2016_v0 }
 0x31e   :  { %v2807_v6 = vmul.f32 %v2709_v53, %v2219_v41 }
 0x31f   :  { %v2321_v63 = vmul.f32 0.035677407, %v2125_v33  ;;  %v3197_v23 = vpop.f32.mrf.mxu3 }
 0x320   :  { %v1885_v5 = vpop.f32.mrf.mxu0  ;;  %3106 = vmatmul.bf16.gmra.mxu2 %v6391_v51  ;;  %v2875_v1 = vpack.c.bf16 %v2807_v6, %v2805_v36  ;;  %v3198_v44 = vadd.f32 %v3197_v23, %v3065_v58 }
 0x321   :  { %v2018_v34 = vpop.f32.mrf.mxu1  ;;  %v2419_v40 = vadd.f32 0.7978846, %v2321_v63  ;;  %v1886_v18 = vadd.f32 %v1885_v5, %v5695_v57 }
 0x322   :  { %3305 = vst [vmem:[#allocation2 + $0x58] sm:$0xff] %v3198_v44 }
 0x323   :  { %v2517_v42 = vmul.f32 %v2419_v40, %v2016_v0  ;;  %v6130_v45 = vadd.f32 %v2018_v34, %v1886_v18  ;;  %1924 = vmatmul.bf16.gmra.mxu0 %v5732_v62  ;;  %v3067_v46 = vpop.f32.mrf.mxu2  ;;  %3239 = vmatmul.bf16.gmra.mxu3 %v2875_v1  ;;  %v4048_v9 = vpop.eup %4047  ;;  %v6392_v0 = vpack.c.bf16 %v5782_v13, %v5780_v60 }
 0x324   :  { %2057 = vmatmul.bf16.gmra.mxu1 %v5743_v15  ;;  %v3068_v54 = vadd.f32 %v6035_v7, %v3067_v46  ;;  %v2711_v24 = vadd.f32 1.0, %v4048_v9 }
 0x325   :  { %4049 = vtanh.f32 %v2517_v42  ;;  %v2127_v49 = vmul.f32 %v6130_v45, %v6130_v45 }
 0x326   :  { %v2809_v63 = vmul.f32 %v2711_v24, %v2221_v47 }
 0x327   :  { %v2323_v4 = vmul.f32 0.035677407, %v2127_v49  ;;  %v3200_v61 = vpop.f32.mrf.mxu3 }
 0x328   :  { %v1887_v48 = vpop.f32.mrf.mxu0  ;;  %v3201_v39 = vadd.f32 %v3200_v61, %v3068_v54  ;;  %v2225_v61 = vmul.f32 0.5, %v6130_v45 }
 0x329   :  { %v2020_v21 = vpop.f32.mrf.mxu1  ;;  %v1888_v14 = vadd.f32 %v1887_v48, %v5695_v57  ;;  %v2421_v12 = vadd.f32 0.7978846, %v2323_v4 }
 0x32a   :  { %3306 = vst [vmem:[#allocation2 + $0x60] sm:$0xff] %v3201_v39 }
 0x32b   :  { %v4050_v62 = vpop.eup %4049  ;;  %v2021_v15 = vadd.f32 %v2020_v21, %v1888_v14  ;;  %v3069_v22 = vpop.f32.mrf.mxu2  ;;  %v2519_v19 = vmul.f32 %v2421_v12, %v6130_v45 }
 0x32c   :  { %v2713_v25 = vadd.f32 1.0, %v4050_v62  ;;  %v3070_v41 = vadd.f32 %v6035_v7, %v3069_v22 }
 0x32d   :  { %v2129_v38 = vmul.f32 %v2021_v15, %v2021_v15  ;;  %4051 = vtanh.f32 %v2519_v19  ;;  %v2227_v21 = vmul.f32 0.5, %v2021_v15 }
 0x32e   :  { %v2811_v53 = vmul.f32 %v2713_v25, %v2223_v56 }
 0x32f   :  { %v2325_v52 = vmul.f32 0.035677407, %v2129_v38  ;;  %v3202_v58 = vpop.f32.mrf.mxu3 }
 0x330   :  { %v1890_v33 = vpop.f32.mrf.mxu0  ;;  %3111 = vmatmul.bf16.gmra.mxu2 %v6392_v0  ;;  %v3203_v5 = vadd.f32 %v3202_v58, %v3070_v41  ;;  %v2877_v34 = vpack.c.bf16 %v2811_v53, %v2809_v63 }
 0x331   :  { %v2023_v20 = vpop.f32.mrf.mxu1  ;;  %v2423_v29 = vadd.f32 0.7978846, %v2325_v52  ;;  %v1891_v6 = vadd.f32 %v1890_v33, %v5695_v57 }
 0x332   :  { %3307 = vst [vmem:[#allocation2 + $0x68] sm:$0xff] %v3203_v5 }
 0x333   :  { %v2521_v8 = vmul.f32 %v2423_v29, %v2021_v15  ;;  %v6145_v43 = vadd.f32 %v2023_v20, %v1891_v6  ;;  %v3072_v40 = vpop.f32.mrf.mxu2  ;;  %3244 = vmatmul.bf16.gmra.mxu3 %v2877_v34  ;;  %v4052_v13 = vpop.eup %4051  ;;  %v6393_v15 = vld [vmem:[#allocation7_spill] sm:$0xff] }
 0x334   :  { %v3073_v18 = vadd.f32 %v6035_v7, %v3072_v40  ;;  %v2715_v48 = vadd.f32 1.0, %v4052_v13  ;;  %v6394_v41 = vpack.c.bf16 %v5815_v10, %v6393_v15 }
 0x335   :  { %4053 = vtanh.f32 %v2521_v8  ;;  %v2131_v36 = vmul.f32 %v6145_v43, %v6145_v43 }
 0x336   :  { %v2813_v47 = vmul.f32 %v2715_v48, %v2225_v61 }
 0x337   :  { %v2327_v23 = vmul.f32 0.035677407, %v2131_v36  ;;  %v3205_v42 = vpop.f32.mrf.mxu3 }
 0x338   :  { %v1892_v51 = vpop.f32.mrf.mxu0  ;;  %v3206_v49 = vadd.f32 %v3205_v42, %v3073_v18  ;;  %v2229_v42 = vmul.f32 0.5, %v6145_v43 }
 0x339   :  { %v2025_v1 = vpop.f32.mrf.mxu1  ;;  %v1893_v60 = vadd.f32 %v1892_v51, %v5695_v57  ;;  %v2425_v4 = vadd.f32 0.7978846, %v2327_v23 }
 0x33a   :  { %3308 = vst [vmem:[#allocation2 + $0x70] sm:$0xff] %v3206_v49 }
 0x33b   :  { %v4054_v44 = vpop.eup %4053  ;;  %v2026_v46 = vadd.f32 %v2025_v1, %v1893_v60  ;;  %v3074_v9 = vpop.f32.mrf.mxu2  ;;  %v2523_v12 = vmul.f32 %v2425_v4, %v6145_v43 }
 0x33c   :  { %v2717_v54 = vadd.f32 1.0, %v4054_v44  ;;  %v3075_v39 = vadd.f32 %v6035_v7, %v3074_v9 }
 0x33d   :  { %v2133_v14 = vmul.f32 %v2026_v46, %v2026_v46  ;;  %4055 = vtanh.f32 %v2523_v12  ;;  %v2231_v1 = vmul.f32 0.5, %v2026_v46 }
 0x33e   :  { %v2815_v25 = vmul.f32 %v2717_v54, %v2227_v21 }
 0x33f   :  { %v2329_v62 = vmul.f32 0.035677407, %v2133_v14  ;;  %v3207_v52 = vpop.f32.mrf.mxu3 }
 0x340   :  { %v1895_v24 = vpop.f32.mrf.mxu0  ;;  %3116 = vmatmul.bf16.gmra.mxu2 %v6394_v41  ;;  %v3208_v19 = vadd.f32 %v3207_v52, %v3075_v39  ;;  %v2879_v33 = vpack.c.bf16 %v2815_v25, %v2813_v47 }
 0x341   :  { %v2028_v56 = vpop.f32.mrf.mxu1  ;;  %v2427_v38 = vadd.f32 0.7978846, %v2329_v62  ;;  %v1896_v22 = vadd.f32 %v1895_v24, %v5695_v57 }
 0x342   :  { %3309 = vst [vmem:[#allocation2 + $0x78] sm:$0xff] %v3208_v19 }
 0x343   :  { %v2525_v53 = vmul.f32 %v2427_v38, %v2026_v46  ;;  %v6158_v45 = vadd.f32 %v2028_v56, %v1896_v22  ;;  %v3077_v29 = vpop.f32.mrf.mxu2  ;;  %3249 = vmatmul.bf16.gmra.mxu3 %v2879_v33  ;;  %v4056_v8 = vpop.eup %4055  ;;  %v6395_v46 = vld [vmem:[#allocation5_spill] sm:$0xff] }
 0x344   :  { %v3078_v6 = vadd.f32 %v6035_v7, %v3077_v29  ;;  %v2719_v51 = vadd.f32 1.0, %v4056_v8  ;;  %v6396_v39 = vpack.c.bf16 %v5848_v59, %v6395_v46 }
 0x345   :  { %4057 = vtanh.f32 %v2525_v53  ;;  %v2135_v20 = vmul.f32 %v6158_v45, %v6158_v45  ;;  %v2233_v8 = vmul.f32 0.5, %v6158_v45 }
 0x346   :  { %v2817_v61 = vmul.f32 %v2719_v51, %v2229_v42 }
 0x347   :  { %v2331_v63 = vmul.f32 0.035677407, %v2135_v20  ;;  %v3210_v5 = vpop.f32.mrf.mxu3 }
 0x348   :  { %v1897_v58 = vpop.f32.mrf.mxu0  ;;  %v3211_v36 = vadd.f32 %v3210_v5, %v3078_v6 }
 0x349   :  { %v2030_v0 = vpop.f32.mrf.mxu1  ;;  %v1898_v10 = vadd.f32 %v1897_v58, %v5695_v57  ;;  %v2429_v23 = vadd.f32 0.7978846, %v2331_v63 }
 0x34a   :  { %3310 = vst [vmem:[#allocation2 + $0x80] sm:$0xff] %v3211_v36 }
 0x34b   :  { %v4058_v34 = vpop.eup %4057  ;;  %v2031_v40 = vadd.f32 %v2030_v0, %v1898_v10  ;;  %v3079_v13 = vpop.f32.mrf.mxu2  ;;  %v2527_v4 = vmul.f32 %v2429_v23, %v6158_v45 }
 0x34c   :  { %v2721_v18 = vadd.f32 1.0, %v4058_v34  ;;  %v3080_v49 = vadd.f32 %v6035_v7, %v3079_v13 }
 0x34d   :  { %v2137_v60 = vmul.f32 %v2031_v40, %v2031_v40  ;;  %4059 = vtanh.f32 %v2527_v4  ;;  %v2235_v58 = vmul.f32 0.5, %v2031_v40 }
 0x34e   :  { %v2819_v54 = vmul.f32 %v2721_v18, %v2231_v1 }
 0x34f   :  { %v2333_v44 = vmul.f32 0.035677407, %v2137_v60  ;;  %v3212_v62 = vpop.f32.mrf.mxu3 }
 0x350   :  { %v1900_v48 = vpop.f32.mrf.mxu0  ;;  %3121 = vmatmul.bf16.gmra.mxu2 %v6396_v39  ;;  %v3213_v12 = vadd.f32 %v3212_v62, %v3080_v49  ;;  %v2881_v24 = vpack.c.bf16 %v2819_v54, %v2817_v61 }
 0x351   :  { %v2033_v21 = vpop.f32.mrf.mxu1  ;;  %v2431_v14 = vadd.f32 0.7978846, %v2333_v44  ;;  %v1901_v9 = vadd.f32 %v1900_v48, %v5695_v57 }
 0x352   :  { %3311 = vst [vmem:[#allocation2 + $0x88] sm:$0xff] %v3213_v12 }
 0x353   :  { %v2529_v25 = vmul.f32 %v2431_v14, %v2031_v40  ;;  %v6171_v43 = vadd.f32 %v2033_v21, %v1901_v9  ;;  %v3082_v38 = vpop.f32.mrf.mxu2  ;;  %3254 = vmatmul.bf16.gmra.mxu3 %v2881_v24  ;;  %v4060_v41 = vpop.eup %4059  ;;  %v6397_v40 = vld [vmem:[#allocation6_spill] sm:$0xff] }
 0x354   :  { %v3083_v22 = vadd.f32 %v6035_v7, %v3082_v38  ;;  %v2723_v63 = vadd.f32 1.0, %v4060_v41  ;;  %v6398_v44 = vpack.c.bf16 %v5881_v26, %v6397_v40 }
 0x355   :  { %4061 = vtanh.f32 %v2529_v25  ;;  %v2139_v56 = vmul.f32 %v6171_v43, %v6171_v43 }
 0x356   :  { %v2821_v13 = vmul.f32 %v2723_v63, %v2233_v8 }
 0x357   :  { %v2335_v47 = vmul.f32 0.035677407, %v2139_v56  ;;  %v3215_v53 = vpop.f32.mrf.mxu3 }
 0x358   :  { %v1902_v52 = vpop.f32.mrf.mxu0  ;;  %v3216_v33 = vadd.f32 %v3215_v53, %v3083_v22 }
 0x359   :  { %v2035_v15 = vpop.f32.mrf.mxu1  ;;  %v1903_v59 = vadd.f32 %v1902_v52, %v5695_v57  ;;  %v2433_v6 = vadd.f32 0.7978846, %v2335_v47 }
 0x35a   :  { %3312 = vst [vmem:[#allocation2 + $0x90] sm:$0xff] %v3216_v33 }
 0x35b   :  { %v4062_v19 = vpop.eup %4061  ;;  %v2036_v20 = vadd.f32 %v2035_v15, %v1903_v59  ;;  %v3084_v10 = vpop.f32.mrf.mxu2  ;;  %v2531_v18 = vmul.f32 %v2433_v6, %v6171_v43  ;;  %v2237_v59 = vmul.f32 0.5, %v6171_v43 }
 0x35c   :  { %v2725_v29 = vadd.f32 1.0, %v4062_v19  ;;  %v3085_v34 = vadd.f32 %v6035_v7, %v3084_v10 }
 0x35d   :  { %v2141_v0 = vmul.f32 %v2036_v20, %v2036_v20  ;;  %4063 = vtanh.f32 %v2531_v18  ;;  %v2239_v47 = vmul.f32 0.5, %v2036_v20 }
 0x35e   :  { %v2823_v36 = vmul.f32 %v2725_v29, %v2235_v58 }
 0x35f   :  { %v2337_v5 = vmul.f32 0.035677407, %v2141_v0  ;;  %v3217_v42 = vpop.f32.mrf.mxu3 }
 0x360   :  { %v1905_v23 = vpop.f32.mrf.mxu0  ;;  %3126 = vmatmul.bf16.gmra.mxu2 %v6398_v44  ;;  %v3218_v54 = vadd.f32 %v3217_v42, %v3085_v34  ;;  %v2883_v4 = vpack.c.bf16 %v2823_v36, %v2821_v13 }
 0x361   :  { %v2038_v51 = vpop.f32.mrf.mxu1  ;;  %v2435_v1 = vadd.f32 0.7978846, %v2337_v5  ;;  %v1906_v60 = vadd.f32 %v1905_v23, %v5695_v57 }
 0x362   :  { %3313 = vst [vmem:[#allocation2 + $0x98] sm:$0xff] %v3218_v54 }
 0x363   :  { %v2533_v49 = vmul.f32 %v2435_v1, %v2036_v20  ;;  %v6184_v45 = vadd.f32 %v2038_v51, %v1906_v60  ;;  %v3087_v21 = vpop.f32.mrf.mxu2  ;;  %3259 = vmatmul.bf16.gmra.mxu3 %v2883_v4  ;;  %v4064_v46 = vpop.eup %4063  ;;  %v6399_v20 = vpack.c.bf16 %v5914_v37, %v5912_v28 }
 0x364   :  { %v3088_v14 = vadd.f32 %v6035_v7, %v3087_v21  ;;  %v2727_v22 = vadd.f32 1.0, %v4064_v46 }
 0x365   :  { %4065 = vtanh.f32 %v2533_v49  ;;  %v2143_v48 = vmul.f32 %v6184_v45, %v6184_v45 }
 0x366   :  { %v2825_v0 = vmul.f32 %v2727_v22, %v2237_v59 }
 0x367   :  { %v2339_v9 = vmul.f32 0.035677407, %v2143_v48  ;;  %v3220_v39 = vpop.f32.mrf.mxu3 }
 0x368   :  { %v1907_v61 = vpop.f32.mrf.mxu0  ;;  %v3221_v12 = vadd.f32 %v3220_v39, %v3088_v14 }
 0x369   :  { %v2040_v62 = vpop.f32.mrf.mxu1  ;;  %v1908_v26 = vadd.f32 %v1907_v61, %v5695_v57  ;;  %v2437_v38 = vadd.f32 0.7978846, %v2339_v9  ;;  %v2241_v9 = vmul.f32 0.5, %v6184_v45 }
 0x36a   :  { %3314 = vst [vmem:[#allocation2 + $0xa0] sm:$0xff] %v3221_v12 }
 0x36b   :  { %v4066_v25 = vpop.eup %4065  ;;  %v2041_v24 = vadd.f32 %v2040_v62, %v1908_v26  ;;  %v3089_v15 = vpop.f32.mrf.mxu2  ;;  %v2535_v33 = vmul.f32 %v2437_v38, %v6184_v45 }
 0x36c   :  { %v2729_v56 = vadd.f32 1.0, %v4066_v25  ;;  %v3090_v53 = vadd.f32 %v6035_v7, %v3089_v15 }
 0x36d   :  { %v2145_v52 = vmul.f32 %v2041_v24, %v2041_v24  ;;  %4067 = vtanh.f32 %v2535_v33  ;;  %v2243_v48 = vmul.f32 0.5, %v2041_v24 }
 0x36e   :  { %v2827_v19 = vmul.f32 %v2729_v56, %v2239_v47 }
 0x36f   :  { %v2341_v41 = vmul.f32 0.035677407, %v2145_v52  ;;  %v3222_v10 = vpop.f32.mrf.mxu3 }
 0x370   :  { %v1910_v29 = vpop.f32.mrf.mxu0  ;;  %3131 = vmatmul.bf16.gmra.mxu2 %v6399_v20  ;;  %v3223_v5 = vadd.f32 %v3222_v10, %v3090_v53  ;;  %v2885_v34 = vpack.c.bf16 %v2827_v19, %v2825_v0 }
 0x371   :  { %v2043_v6 = vpop.f32.mrf.mxu1  ;;  %v2439_v63 = vadd.f32 0.7978846, %v2341_v41  ;;  %v1911_v58 = vadd.f32 %v1910_v29, %v5695_v57 }
 0x372   :  { %3315 = vst [vmem:[#allocation2 + $0xa8] sm:$0xff] %v3223_v5 }
 0x373   :  { %v2537_v8 = vmul.f32 %v2439_v63, %v2041_v24  ;;  %v6197_v43 = vadd.f32 %v2043_v6, %v1911_v58  ;;  %v3092_v18 = vpop.f32.mrf.mxu2  ;;  %3264 = vmatmul.bf16.gmra.mxu3 %v2885_v34  ;;  %v4068_v37 = vpop.eup %4067 }
 0x374   :  { %v3093_v23 = vadd.f32 %v6035_v7, %v3092_v18  ;;  %v2731_v4 = vadd.f32 1.0, %v4068_v37 }
 0x375   :  { %4069 = vtanh.f32 %v2537_v8  ;;  %v2147_v36 = vmul.f32 %v6197_v43, %v6197_v43  ;;  %v2245_v34 = vmul.f32 0.5, %v6197_v43 }
 0x376   :  { %v2829_v38 = vmul.f32 %v2731_v4, %v2241_v9 }
 0x377   :  { %v2343_v51 = vmul.f32 0.035677407, %v2147_v36  ;;  %v3225_v13 = vpop.f32.mrf.mxu3 }
 0x378   :  { %v1912_v1 = vpop.f32.mrf.mxu0  ;;  %v3226_v40 = vadd.f32 %v3225_v13, %v3093_v23 }
 0x379   :  { %v2045_v60 = vpop.f32.mrf.mxu1  ;;  %v1913_v28 = vadd.f32 %v1912_v1, %v5695_v57  ;;  %v2441_v54 = vadd.f32 0.7978846, %v2343_v51 }
 0x37a   :  { %3316 = vst [vmem:[#allocation2 + $0xb0] sm:$0xff] %v3226_v40  ;;  %v6400_v40 = vpack.c.bf16 %v5980_v17, %v5978_v55 }
 0x37b   :  { %v4070_v42 = vpop.eup %4069  ;;  %v2046_v44 = vadd.f32 %v2045_v60, %v1913_v28  ;;  %v3094_v14 = vpop.f32.mrf.mxu2  ;;  %v2539_v46 = vmul.f32 %v2441_v54, %v6197_v43 }
 0x37c   :  { %v2733_v49 = vadd.f32 1.0, %v4070_v42  ;;  %v3095_v62 = vadd.f32 %v6035_v7, %v3094_v14 }
 0x37d   :  { %v2149_v21 = vmul.f32 %v2046_v44, %v2046_v44  ;;  %4071 = vtanh.f32 %v2539_v46  ;;  %v2247_v20 = vmul.f32 0.5, %v2046_v44 }
 0x37e   :  { %v2831_v26 = vmul.f32 %v2733_v49, %v2243_v48  ;;  %v6230_v48 = vld [vmem:[%s6279_s6] ss:$0 sm:$0xff]  ;;  %s4115_s6 = smov [#allocation2]  }
 0x37f   :  { %v2345_v61 = vmul.f32 0.035677407, %v2149_v21  ;;  %v3227_v22 = vpop.f32.mrf.mxu3  ;;  %s3347_s27 = sshll.u32 %s4115_s6, 4  ;;  %s3348_s27 = int_to_ptr.vmem [resolvable:$true] %s3347_s27 }
 0x380   :  { %v1915_v39 = vpop.f32.mrf.mxu0  ;;  %3136 = vmatmul.bf16.gmra.mxu2 %v2886_v2  ;;  %v3228_v47 = vadd.f32 %v3227_v22, %v3095_v62  ;;  %v2887_v52 = vpack.c.bf16 %v2831_v26, %v2829_v38 }
 0x381   :  { %v2048_v25 = vpop.f32.mrf.mxu1  ;;  %v2443_v12 = vadd.f32 0.7978846, %v2345_v61  ;;  %v1916_v56 = vadd.f32 %v1915_v39, %v5695_v57 }
 0x382   :  { %3317 = vst [vmem:[#allocation2 + $0xb8] sm:$0xff] %v3228_v47  ;;  %v2158_v47 = vmul.f32 %v6019_v16, %v6019_v16 }
 0x383   :  { %v2541_v24 = vmul.f32 %v2443_v12, %v2046_v44  ;;  %v6210_v45 = vadd.f32 %v2048_v25, %v1916_v56  ;;  %v3097_v59 = vpop.f32.mrf.mxu2  ;;  %3269 = vmatmul.bf16.gmra.mxu3 %v2887_v52  ;;  %v4072_v32 = vpop.eup %4071 }
 0x384   :  { %v3098_v41 = vadd.f32 %v6035_v7, %v3097_v59  ;;  %v2735_v10 = vadd.f32 1.0, %v4072_v32 }
 0x385   :  { %4073 = vtanh.f32 %v2541_v24  ;;  %v2151_v15 = vmul.f32 %v6210_v45, %v6210_v45  ;;  %v2249_v52 = vmul.f32 0.5, %v6210_v45 }
 0x386   :  { %v2833_v13 = vmul.f32 %v2735_v10, %v2245_v34 }
 0x387   :  { %v2347_v53 = vmul.f32 0.035677407, %v2151_v15  ;;  %v3230_v2 = vpop.f32.mrf.mxu3 }
 0x388   :  { %v1917_v19 = vpop.f32.mrf.mxu0  ;;  %v3231_v6 = vadd.f32 %v3230_v2, %v3098_v41 }
 0x389   :  { %v2050_v33 = vpop.f32.mrf.mxu1  ;;  %v1918_v31 = vadd.f32 %v1917_v19, %v5695_v57  ;;  %v2445_v0 = vadd.f32 0.7978846, %v2347_v53 }
 0x38a   :  { %3318 = vst [vmem:[#allocation2 + $0xc0] sm:$0xff] %v3231_v6 }
 0x38b   :  { %v4074_v29 = vpop.eup %4073  ;;  %v2051_v63 = vadd.f32 %v2050_v33, %v1918_v31  ;;  %v3099_v5 = vpop.f32.mrf.mxu2  ;;  %v2543_v51 = vmul.f32 %v2445_v0, %v6210_v45 }
 0x38c   :  { %v2737_v58 = vadd.f32 1.0, %v4074_v29  ;;  %v3100_v18 = vadd.f32 %v6035_v7, %v3099_v5  ;;  %v2354_v29 = vmul.f32 0.035677407, %v2158_v47 }
 0x38d   :  { %v2153_v8 = vmul.f32 %v2051_v63, %v2051_v63  ;;  %4075 = vtanh.f32 %v2543_v51  ;;  %v2251_v38 = vmul.f32 0.5, %v2051_v63 }
 0x38e   :  { %v2835_v23 = vmul.f32 %v2737_v58, %v2247_v20 }
 0x38f   :  { %v2349_v36 = vmul.f32 0.035677407, %v2153_v8  ;;  %v3232_v42 = vpop.f32.mrf.mxu3  ;;  %v2452_v8 = vadd.f32 0.7978846, %v2354_v29 }
 0x390   :  { %v1920_v1 = vpop.f32.mrf.mxu0  ;;  %3141 = vmatmul.bf16.gmra.mxu2 %v6400_v40  ;;  %v3233_v49 = vadd.f32 %v3232_v42, %v3100_v18  ;;  %v2889_v54 = vpack.c.bf16 %v2835_v23, %v2833_v13 }
 0x391   :  { %v2053_v60 = vpop.f32.mrf.mxu1  ;;  %v2447_v28 = vadd.f32 0.7978846, %v2349_v36  ;;  %v1921_v37 = vadd.f32 %v1920_v1, %v5695_v57  ;;  %v2550_v35 = vmul.f32 %v2452_v8, %v6019_v16 }
 0x392   :  { %3319 = vst [vmem:[#allocation2 + $0xc8] sm:$0xff] %v3233_v49 }
 0x393   :  { %v2545_v44 = vmul.f32 %v2447_v28, %v2051_v63  ;;  %v6223_v43 = vadd.f32 %v2053_v60, %v1921_v37  ;;  %v3102_v4 = vpop.f32.mrf.mxu2  ;;  %3274 = vmatmul.bf16.gmra.mxu3 %v2889_v54  ;;  %v4076_v61 = vpop.eup %4075 }
 0x394   :  { %v3103_v55 = vadd.f32 %v6230_v48, %v3102_v4  ;;  %v2739_v56 = vadd.f32 1.0, %v4076_v61 }
 0x395   :  { %4077 = vtanh.f32 %v2545_v44  ;;  %v2155_v7 = vmul.f32 %v6223_v43, %v6223_v43  ;;  %v2253_v13 = vmul.f32 0.5, %v6223_v43 }
 0x396   :  { %v2837_v2 = vmul.f32 %v2739_v56, %v2249_v52 }
 0x397   :  { %v2351_v17 = vmul.f32 0.035677407, %v2155_v7  ;;  %v3235_v62 = vpop.f32.mrf.mxu3 }
 0x398   :  { %v1922_v21 = vpop.f32.mrf.mxu0  ;;  %v3236_v46 = vadd.f32 %v3235_v62, %v3103_v55 }
 0x399   :  { %v2055_v14 = vpop.f32.mrf.mxu1  ;;  %v1923_v9 = vadd.f32 %v1922_v21, %v5695_v57  ;;  %v2449_v12 = vadd.f32 0.7978846, %v2351_v17 }
 0x39a   :  { %3320 = vst [vmem:[#allocation2 + $0xd0] sm:$0xff] %v3236_v46 }
 0x39b   :  { %v4078_v26 = vpop.eup %4077  ;;  %v2056_v39 = vadd.f32 %v2055_v14, %v1923_v9  ;;  %v3104_v24 = vpop.f32.mrf.mxu2  ;;  %v2547_v53 = vmul.f32 %v2449_v12, %v6223_v43  ;;  %v2256_v9 = vmul.f32 0.5, %v6019_v16 }
 0x39c   :  { %v2741_v25 = vadd.f32 1.0, %v4078_v26  ;;  %v3105_v59 = vadd.f32 %v6230_v48, %v3104_v24 }
 0x39d   :  { %v2157_v22 = vmul.f32 %v2056_v39, %v2056_v39  ;;  %4079 = vtanh.f32 %v2547_v53  ;;  %v2255_v28 = vmul.f32 0.5, %v2056_v39 }
 0x39e   :  { %v2839_v41 = vmul.f32 %v2741_v25, %v2251_v38 }
 0x39f   :  { %v2353_v15 = vmul.f32 0.035677407, %v2157_v22  ;;  %v3237_v6 = vpop.f32.mrf.mxu3 }
 0x3a0   :  { %v1925_v19 = vpop.f32.mrf.mxu0  ;;  %3146 = vmatmul.bf16.gmra.mxu2 %v2890_v50  ;;  %v3238_v45 = vadd.f32 %v3237_v6, %v3105_v59  ;;  %v2891_v0 = vpack.c.bf16 %v2839_v41, %v2837_v2 }
 0x3a1   :  { %v2058_v33 = vpop.f32.mrf.mxu1  ;;  %v2451_v31 = vadd.f32 0.7978846, %v2353_v15  ;;  %v1926_v32 = vadd.f32 %v1925_v19, %v5695_v57 }
 0x3a2   :  { %3321 = vst [vmem:[#allocation2 + $0xd8] sm:$0xff] %v3238_v45 }
 0x3a3   :  { %v2549_v63 = vmul.f32 %v2451_v31, %v2056_v39  ;;  %v2059_v58 = vadd.f32 %v2058_v33, %v1926_v32  ;;  %v3107_v20 = vpop.f32.mrf.mxu2  ;;  %3279 = vmatmul.bf16.gmra.mxu3 %v2891_v0  ;;  %v4080_v18 = vpop.eup %4079 }
 0x3a4   :  { %v3108_v57 = vadd.f32 %v6230_v48, %v3107_v20  ;;  %v2743_v60 = vadd.f32 1.0, %v4080_v18 }
 0x3a5   :  { %4081 = vtanh.f32 %v2549_v63  ;;  %v2159_v10 = vmul.f32 %v2059_v58, %v2059_v58  ;;  %v2257_v11 = vmul.f32 0.5, %v2059_v58 }
 0x3a6   :  { %4083 = vtanh.f32 %v2550_v35  ;;  %v2841_v49 = vmul.f32 %v2743_v60, %v2253_v13 }
 0x3a7   :  { %v2355_v5 = vmul.f32 0.035677407, %v2159_v10  ;;  %v3240_v23 = vpop.f32.mrf.mxu3 }
 0x3a8   :  { %v1927_v34 = vpop.f32.mrf.mxu0  ;;  %v3241_v50 = vadd.f32 %v3240_v23, %v3108_v57 }
 0x3a9   :  { %v2060_v36 = vpop.f32.mrf.mxu1  ;;  %v2453_v1 = vadd.f32 0.7978846, %v2355_v5 }
 0x3aa   :  { %3322 = vst [vmem:[#allocation2 + $0xe0] sm:$0xff] %v3241_v50 }
 0x3ab   :  { %v4082_v30 = vpop.eup %4081  ;;  %v3109_v37 = vpop.f32.mrf.mxu2  ;;  %v2551_v44 = vmul.f32 %v2453_v1, %v2059_v58 }
 0x3ac   :  { %v2745_v51 = vadd.f32 1.0, %v4082_v30  ;;  %v3110_v42 = vadd.f32 %v6230_v48, %v3109_v37  ;;  %v4084_v55 = vpop.eup %4083 }
 0x3ad   :  { %4085 = vtanh.f32 %v2551_v44  ;;  %v2746_v43 = vadd.f32 1.0, %v4084_v55 }
 0x3ae   :  { %v2843_v40 = vmul.f32 %v2745_v51, %v2255_v28 }
 0x3af   :  { %v3242_v54 = vpop.f32.mrf.mxu3  ;;  %v2844_v26 = vmul.f32 %v2746_v43, %v2256_v9 }
 0x3b0   :  { %3151 = vmatmul.bf16.gmra.mxu2 %v2892_v27  ;;  %v3243_v7 = vadd.f32 %v3242_v54, %v3110_v42  ;;  %v2893_v4 = vpack.c.bf16 %v2843_v40, %v2841_v49 }
 0x3b1   :  { %v2894_v39 = vpack.c.bf16 %v2844_v26, %v2844_v26 }
 0x3b2   :  { %3323 = vst [vmem:[#allocation2 + $0xe8] sm:$0xff] %v3243_v7 }
 0x3b3   :  { %v3112_v17 = vpop.f32.mrf.mxu2  ;;  %3284 = vmatmul.bf16.gmra.mxu3 %v2893_v4  ;;  %v4086_v14 = vpop.eup %4085 }
 0x3b4   :  { %v3113_v21 = vadd.f32 %v6230_v48, %v3112_v17  ;;  %v2747_v3 = vadd.f32 1.0, %v4086_v14 }
 0x3b6   :  { %v2845_v25 = vmul.f32 %v2747_v3, %v2257_v11 }
 0x3b7   :  { %v3245_v61 = vpop.f32.mrf.mxu3 }
 0x3b8   :  { %v3246_v62 = vadd.f32 %v3245_v61, %v3113_v21  ;;  %v2895_v38 = vpack.c.bf16 %v2845_v25, %v2845_v25 }
 0x3ba   :  { %3324 = vst [vmem:[#allocation2 + $0xf0] sm:$0xff] %v3246_v62 }
 0x3bb   :  { %v3114_v46 = vpop.f32.mrf.mxu2 }
 0x3bc   :  { %v3115_v27 = vadd.f32 %v6230_v48, %v3114_v46 }
 0x3bf   :  { %v3247_v12 = vpop.f32.mrf.mxu3 }
 0x3c0   :  { %3156 = vmatmul.bf16.gmra.mxu2 %v2894_v39  ;;  %v3248_v56 = vadd.f32 %v3247_v12, %v3115_v27 }
 0x3c2   :  { %3325 = vst [vmem:[#allocation2 + $0xf8] sm:$0xff] %v3248_v56 }
 0x3c3   :  { %v3117_v22 = vpop.f32.mrf.mxu2  ;;  %3289 = vmatmul.bf16.gmra.mxu3 %v2895_v38 }
 0x3c4   :  { %v3118_v16 = vadd.f32 %v6230_v48, %v3117_v22 }
 0x3c7   :  { %v3250_v24 = vpop.f32.mrf.mxu3 }
 0x3c8   :  { %v3251_v47 = vadd.f32 %v3250_v24, %v3118_v16 }
 0x3ca   :  { %3326 = vst [vmem:[#allocation2 + $0x100] sm:$0xff] %v3251_v47 }
 0x3cb   :  { %v3119_v52 = vpop.f32.mrf.mxu2 }
 0x3cc   :  { %v3120_v15 = vadd.f32 %v6230_v48, %v3119_v52 }
 0x3cf   :  { %v3252_v59 = vpop.f32.mrf.mxu3 }
 0x3d0   :  { %v3253_v41 = vadd.f32 %v3252_v59, %v3120_v15 }
 0x3d2   :  { %3327 = vst [vmem:[#allocation2 + $0x108] sm:$0xff] %v3253_v41 }
 0x3d3   :  { %v3122_v53 = vpop.f32.mrf.mxu2 }
 0x3d4   :  { %v3123_v19 = vadd.f32 %v6230_v48, %v3122_v53 }
 0x3d7   :  { %v3255_v33 = vpop.f32.mrf.mxu3 }
 0x3d8   :  { %v3256_v31 = vadd.f32 %v3255_v33, %v3123_v19 }
 0x3da   :  { %3328 = vst [vmem:[#allocation2 + $0x110] sm:$0xff] %v3256_v31 }
 0x3db   :  { %v3124_v32 = vpop.f32.mrf.mxu2 }
 0x3dc   :  { %v3125_v2 = vadd.f32 %v6230_v48, %v3124_v32 }
 0x3df   :  { %v3257_v29 = vpop.f32.mrf.mxu3 }
 0x3e0   :  { %v3258_v6 = vadd.f32 %v3257_v29, %v3125_v2 }
 0x3e2   :  { %3329 = vst [vmem:[#allocation2 + $0x118] sm:$0xff] %v3258_v6 }
 0x3e3   :  { %v3127_v63 = vpop.f32.mrf.mxu2 }
 0x3e4   :  { %v3128_v45 = vadd.f32 %v6230_v48, %v3127_v63 }
 0x3e7   :  { %v3260_v58 = vpop.f32.mrf.mxu3 }
 0x3e8   :  { %v3261_v0 = vadd.f32 %v3260_v58, %v3128_v45 }
 0x3ea   :  { %3330 = vst [vmem:[#allocation2 + $0x120] sm:$0xff] %v3261_v0 }
 0x3eb   :  { %v3129_v10 = vpop.f32.mrf.mxu2 }
 0x3ec   :  { %v3130_v20 = vadd.f32 %v6230_v48, %v3129_v10 }
 0x3ef   :  { %v3262_v8 = vpop.f32.mrf.mxu3 }
 0x3f0   :  { %v3263_v57 = vadd.f32 %v3262_v8, %v3130_v20 }
 0x3f2   :  { %3331 = vst [vmem:[#allocation2 + $0x128] sm:$0xff] %v3263_v57 }
 0x3f3   :  { %v3132_v5 = vpop.f32.mrf.mxu2 }
 0x3f4   :  { %v3133_v34 = vadd.f32 %v6230_v48, %v3132_v5 }
 0x3f7   :  { %v3265_v36 = vpop.f32.mrf.mxu3 }
 0x3f8   :  { %v3266_v18 = vadd.f32 %v3265_v36, %v3133_v34 }
 0x3fa   :  { %3332 = vst [vmem:[#allocation2 + $0x130] sm:$0xff] %v3266_v18 }
 0x3fb   :  { %v3134_v23 = vpop.f32.mrf.mxu2 }
 0x3fc   :  { %v3135_v30 = vadd.f32 %v6230_v48, %v3134_v23 }
 0x3ff   :  { %v3267_v35 = vpop.f32.mrf.mxu3 }
 0x400   :  { %v3268_v50 = vadd.f32 %v3267_v35, %v3135_v30 }
 0x402   :  { %3333 = vst [vmem:[#allocation2 + $0x138] sm:$0xff] %v3268_v50 }
 0x403   :  { %v3137_v51 = vpop.f32.mrf.mxu2 }
 0x404   :  { %v3138_v1 = vadd.f32 %v6230_v48, %v3137_v51 }
 0x407   :  { %v3270_v60 = vpop.f32.mrf.mxu3 }
 0x408   :  { %v3271_v28 = vadd.f32 %v3270_v60, %v3138_v1 }
 0x40a   :  { %3334 = vst [vmem:[#allocation2 + $0x140] sm:$0xff] %v3271_v28 }
 0x40b   :  { %v3139_v37 = vpop.f32.mrf.mxu2 }
 0x40c   :  { %v3140_v13 = vadd.f32 %v6230_v48, %v3139_v37 }
 0x40f   :  { %v3272_v42 = vpop.f32.mrf.mxu3 }
 0x410   :  { %v3273_v40 = vadd.f32 %v3272_v42, %v3140_v13 }
 0x412   :  { %3335 = vst [vmem:[#allocation2 + $0x148] sm:$0xff] %v3273_v40 }
 0x413   :  { %v3142_v44 = vpop.f32.mrf.mxu2 }
 0x414   :  { %v3143_v49 = vadd.f32 %v6230_v48, %v3142_v44 }
 0x417   :  { %v3275_v54 = vpop.f32.mrf.mxu3 }
 0x418   :  { %v3276_v7 = vadd.f32 %v3275_v54, %v3143_v49 }
 0x41a   :  { %3336 = vst [vmem:[#allocation2 + $0x150] sm:$0xff] %v3276_v7 }
 0x41b   :  { %v3144_v4 = vpop.f32.mrf.mxu2 }
 0x41c   :  { %v3145_v55 = vadd.f32 %v6230_v48, %v3144_v4 }
 0x41f   :  { %v3277_v17 = vpop.f32.mrf.mxu3 }
 0x420   :  { %v3278_v21 = vadd.f32 %v3277_v17, %v3145_v55 }
 0x422   :  { %3337 = vst [vmem:[#allocation2 + $0x158] sm:$0xff] %v3278_v21 }
 0x423   :  { %v3147_v43 = vpop.f32.mrf.mxu2 }
 0x424   :  { %v3148_v14 = vadd.f32 %v6230_v48, %v3147_v43 }
 0x427   :  { %v3280_v9 = vpop.f32.mrf.mxu3 }
 0x428   :  { %v3281_v61 = vadd.f32 %v3280_v9, %v3148_v14 }
 0x42a   :  { %3338 = vst [vmem:[#allocation2 + $0x160] sm:$0xff] %v3281_v61 }
 0x42b   :  { %v3149_v62 = vpop.f32.mrf.mxu2 }
 0x42c   :  { %v3150_v26 = vadd.f32 %v6230_v48, %v3149_v62 }
 0x42f   :  { %v3282_v46 = vpop.f32.mrf.mxu3 }
 0x430   :  { %v3283_v3 = vadd.f32 %v3282_v46, %v3150_v26 }
 0x432   :  { %3339 = vst [vmem:[#allocation2 + $0x168] sm:$0xff] %v3283_v3 }
 0x433   :  { %v3152_v11 = vpop.f32.mrf.mxu2 }
 0x434   :  { %v3153_v27 = vadd.f32 %v6230_v48, %v3152_v11 }
 0x437   :  { %v3285_v39 = vpop.f32.mrf.mxu3 }
 0x438   :  { %v3286_v25 = vadd.f32 %v3285_v39, %v3153_v27 }
 0x43a   :  { %3340 = vst [vmem:[#allocation2 + $0x170] sm:$0xff] %v3286_v25 }
 0x43b   :  { %v3154_v12 = vpop.f32.mrf.mxu2 }
 0x43c   :  { %v3155_v56 = vadd.f32 %v6230_v48, %v3154_v12 }
 0x43f   :  { %v3287_v38 = vpop.f32.mrf.mxu3 }
 0x440   :  { %v3288_v22 = vadd.f32 %v3287_v38, %v3155_v56 }
 0x442   :  { %3341 = vst [vmem:[#allocation2 + $0x178] sm:$0xff] %v3288_v22 }
 0x443   :  { %v3157_v16 = vpop.f32.mrf.mxu2 }
 0x444   :  { %v3158_v24 = vadd.f32 %v6230_v48, %v3157_v16 }
 0x447   :  { %v3290_v47 = vpop.f32.mrf.mxu3 }
 0x448   :  { %v3291_v52 = vadd.f32 %v3290_v47, %v3158_v24 }
 0x44a   :  { %3342 = vst [vmem:[#allocation2 + $0x180] sm:$0xff] %v3291_v52 }
 0x44b   :  { %v3159_v15 = vpop.f32.mrf.mxu2  ;;  %3355 = dma.vmem_to_hbm [thread:$0]  %s3348_s27, 6272, %s3350_s29, [#allocation3], %s4116_s30, %s4116_s30, %s4117_s8  }
 0x44f   :  { %v3292_v59 = vpop.f32.mrf.mxu3 }
 0x450   :  { %4113 = dma.done.wait [#allocation3], 6272  }
 0x451   :  { %4114 = vsyncadd [#allocation3], 4294961024 }
 0x452   :  { %3360 = vsyncpa [#allocation3], 1 }

</bundles_post_ra>
